<compile_context>
chip_gen: v6e
topology: v6e:2x2x1
jax: 0.10.0
libtpu: 0.0.40
codegen_flags: <defaults>
</compile_context>

<pallas_src>
from typing import NamedTuple, Tuple

import jax
import jax.numpy as jnp
from jax.experimental import pallas as pl
from jax.experimental.pallas import tpu as pltpu


# --------------------------------------------------------------------------- #
# Helpers
# --------------------------------------------------------------------------- #

def _round_up(x, m):
    return ((x + m - 1) // m) * m


def _vmem_budget_bytes():
    # Leave headroom below physical VMEM (v7x has only 64 MiB per TensorCore).
    try:
        phys = int(pltpu.get_tpu_info().vmem_capacity_bytes)
    except Exception:
        phys = 64 << 20
    return min(phys * 3 // 4, 96 << 20)


def _preferred_tile_b():
    # v5e's MXU is 128x128 -> tB=128 already fills an M pass; v6e/v7x MXUs are 256-wide.
    try:
        name = str(pltpu.get_tpu_info().chip_version).lower()
        if "v5e" in name or "v5lite" in name or "v5_lite" in name:
            return 128
    except Exception:
        pass
    return 256


def _estimate_vmem_bytes(tB, K, Cp, Ap):
    """Rough VMEM footprint: Pallas double-buffers every input/output block."""
    feat_blk = tB * K * 4                                    # f32 features
    out_blks = tB * (Cp + Ap + Cp) * 4                       # f32 h / f / a tiles
    w_bytes = 2 * (K * Cp + Cp * 256 + 256 * 512 + 512 * Ap  # bf16 weights (resident)
                   + Ap * 512 + 512 * 256 + 256 * Cp)
    b_bytes = 4 * (Cp + 256 + 512 + Ap + 512 + 256 + Cp)     # f32 biases
    return 2 * (feat_blk + out_blks + w_bytes + b_bytes)


def _select_tiles(B, K, Cp, Ap, vmem_budget):
    """Pick (tile_b, padded_B). Prefer >=2 batch tiles (v7x TC sharding), respect VMEM."""
    pref = _preferred_tile_b()
    cands = (256, 128, 64, 32, 16, 8) if pref == 256 else (128, 64, 32, 16, 8)

    def fits(t):
        return _estimate_vmem_bytes(t, K, Cp, Ap) <= vmem_budget

    for t in cands:                       # >=2 tiles so the "parallel" axis can shard
        if B % t == 0 and B // t >= 2 and fits(t):
            return t, B
    for t in cands:                       # exact divisor, single tile OK (tiny B)
        if B % t == 0 and fits(t):
            return t, B
    t = next((c for c in reversed(cands) if fits(c)), cands[-1])
    return t, _round_up(B, t)             # pad batch instead of one giant block


# --------------------------------------------------------------------------- #
# Parameter preparation (run ONCE, not per forward call)
# --------------------------------------------------------------------------- #

class PreparedParams(NamedTuple):
    arrays: Tuple[jax.Array, ...]   # padded, bf16 weights / f32 biases
    code_length: int                # original C (pre-padding)
    attr_dim: int                   # original attribute width (1000)


def prepare_params(params):
    """Pad to lane-dense shapes (C->128, 1000->1024) and cast weights to bf16. Call once."""
    (wh, bh, wf1, bf1, wf2, bf2, wf3, bf3,
     wa1, ba1, wa2, ba2, wa3, ba3) = params

    K, C = wh.shape
    A = wf3.shape[1]
    Cp = _round_up(max(C, 1), 128)
    Ap = _round_up(A, 128)

    def pad_cols(w, n):
        return jnp.pad(w, ((0, 0), (0, n - w.shape[1])))

    def pad_rows(w, n):
        return jnp.pad(w, ((0, n - w.shape[0]), (0, 0)))

    bf16 = jnp.bfloat16
    arrays = (
        pad_cols(wh, Cp).astype(bf16),  pad_cols(bh, Cp).astype(jnp.float32),
        pad_rows(wf1, Cp).astype(bf16), bf1.astype(jnp.float32),
        wf2.astype(bf16),               bf2.astype(jnp.float32),
        pad_cols(wf3, Ap).astype(bf16), pad_cols(bf3, Ap).astype(jnp.float32),
        pad_rows(wa1, Ap).astype(bf16), ba1.astype(jnp.float32),
        wa2.astype(bf16),               ba2.astype(jnp.float32),
        pad_cols(wa3, Cp).astype(bf16), pad_cols(ba3, Cp).astype(jnp.float32),
    )
    return PreparedParams(arrays=arrays, code_length=C, attr_dim=A)


# --------------------------------------------------------------------------- #
# Kernel
# --------------------------------------------------------------------------- #

def _model_wrapper_kernel(
    feat_ref, wh_ref, bh_ref,
    wf1_ref, bf1_ref, wf2_ref, bf2_ref, wf3_ref, bf3_ref,
    wa1_ref, ba1_ref, wa2_ref, ba2_ref, wa3_ref, ba3_ref,
    h_ref, f_ref, a_ref,
):
    # One grid step = one batch tile: hash layer + both heads, all lane-dense.
    def dense(v, w_ref, b_ref):
        # bf16 MXU operands, f32 accumulation, f32 bias add.
        return jnp.dot(v.astype(jnp.bfloat16), w_ref[...],
                       preferred_element_type=jnp.float32) + b_ref[...]

    x = jnp.maximum(feat_ref[...], 0.0)                 # hash_layer: ReLU -> Linear -> Tanh
    h = jnp.tanh(dense(x, wh_ref, bh_ref))
    h_ref[...] = h.astype(h_ref.dtype)

    f = jnp.maximum(dense(h, wf1_ref, bf1_ref), 0.0)    # fake_attribute (3x Linear+ReLU)
    f = jnp.maximum(dense(f, wf2_ref, bf2_ref), 0.0)
    f = jnp.maximum(dense(f, wf3_ref, bf3_ref), 0.0)
    f_ref[...] = f.astype(f_ref.dtype)

    a = jnp.maximum(dense(f, wa1_ref, ba1_ref), 0.0)    # attribute_code (2x ReLU, Tanh out)
    a = jnp.maximum(dense(a, wa2_ref, ba2_ref), 0.0)
    a_ref[...] = jnp.tanh(dense(a, wa3_ref, ba3_ref)).astype(a_ref.dtype)


# --------------------------------------------------------------------------- #
# Forward wrapper
# --------------------------------------------------------------------------- #

def model_wrapper_forward(feat, prepared: PreparedParams):
    """feat: (B, last_node) f32 backbone features (already squeezed).
    prepared: output of prepare_params (padded bf16 weights / f32 biases).
    Returns (hash_code (B,C), fake_attribute (B,1000), attribute_code (B,C))."""
    arrays = prepared.arrays
    C, A = prepared.code_length, prepared.attr_dim
    K, Cp = arrays[0].shape              # padded hash weight
    Ap = arrays[6].shape[1]              # padded attribute width (1024)

    B = feat.shape[0]
    assert feat.shape[1] == K, "feature width must match hash_layer fan-in"

    budget = _vmem_budget_bytes()
    tB, Bp = _select_tiles(B, K, Cp, Ap, budget)
    if Bp != B:
        feat = jnp.pad(feat, ((0, Bp - B), (0, 0)))
    grid = (Bp // tB,)

    def pinned(arr):
        # Resident block (same index every grid step) -> DMA'd once, not re-fetched.
        return pl.BlockSpec(arr.shape, lambda i: (0, 0))

    in_specs = [pl.BlockSpec((tB, K), lambda i: (i, 0))]  # feat, batch-tiled, full K
    in_specs += [pinned(arr) for arr in arrays]

    h, f, a = pl.pallas_call(
        _model_wrapper_kernel,
        out_shape=(
            jax.ShapeDtypeStruct((Bp, Cp), jnp.float32),   # h  (hash_layer, padded)
            jax.ShapeDtypeStruct((Bp, Ap), jnp.float32),   # f  (fake_attribute, padded)
            jax.ShapeDtypeStruct((Bp, Cp), jnp.float32),   # a  (attribute_code, padded)
        ),
        grid_spec=pltpu.PrefetchScalarGridSpec(
            num_scalar_prefetch=0,
            grid=grid,
            in_specs=in_specs,
            out_specs=(
                pl.BlockSpec((tB, Cp), lambda i: (i, 0)),
                pl.BlockSpec((tB, Ap), lambda i: (i, 0)),
                pl.BlockSpec((tB, Cp), lambda i: (i, 0)),
            ),
        ),
        compiler_params=pltpu.CompilerParams(
            dimension_semantics=("parallel",),
            vmem_limit_bytes=budget,
        ),
    )(feat, *arrays)

    # Slice the lane-padding / batch-padding off outside the kernel.
    return h[:B, :C], f[:B, :A], a[:B, :C]


# --------------------------------------------------------------------------- #
# Init + pure-JAX reference
# --------------------------------------------------------------------------- #

def init_params(key, last_node, code_length):
    dims = [
        (last_node, code_length),                      # hash_layer Linear
        (code_length, 256), (256, 512), (512, 1000),   # fake_attribute
        (1000, 512), (512, 256), (256, code_length),   # attribute_code
    ]
    keys = jax.random.split(key, 2 * len(dims))
    params = []
    for idx, (fan_in, fan_out) in enumerate(dims):
        bound = 1.0 / (fan_in ** 0.5)                  # PyTorch default Linear init
        params.append(jax.random.uniform(keys[2 * idx], (fan_in, fan_out),
                                         jnp.float32, -bound, bound))
        params.append(jax.random.uniform(keys[2 * idx + 1], (1, fan_out),
                                         jnp.float32, -bound, bound))
    return tuple(params)


def _reference(feat, params):
    """Pure-JAX reference mirroring the kernel's bf16-weight / f32-accum math."""
    (wh, bh, wf1, bf1, wf2, bf2, wf3, bf3,
     wa1, ba1, wa2, ba2, wa3, ba3) = params

    def dense(v, w, b):
        return jnp.dot(v.astype(jnp.bfloat16), w.astype(jnp.bfloat16),
                       preferred_element_type=jnp.float32) + b

    h = jnp.tanh(dense(jnp.maximum(feat, 0.0), wh, bh))
    f = jax.nn.relu(dense(h, wf1, bf1))
    f = jax.nn.relu(dense(f, wf2, bf2))
    f = jax.nn.relu(dense(f, wf3, bf3))
    a = jax.nn.relu(dense(f, wa1, ba1))
    a = jax.nn.relu(dense(a, wa2, ba2))
    a = jnp.tanh(dense(a, wa3, ba3))
    return h, f, a


# --------------------------------------------------------------------------- #
# Test
# --------------------------------------------------------------------------- #

if __name__ == "__main__":
    key = jax.random.PRNGKey(0)
    k_feat, k_param = jax.random.split(key)

    batch = 8
    last_node = 1024        # backbone feature width
    code_length = 32

    feat = jax.random.normal(k_feat, (batch, last_node), jnp.float32)
    params = init_params(k_param, last_node, code_length)

    prepared = prepare_params(params)          # one-time bf16 cast + lane padding
    h, f, a = model_wrapper_forward(feat, prepared)
    jax.block_until_ready((h, f, a))

    h_ref, f_ref, a_ref = _reference(feat, params)

    assert h.shape == (batch, code_length)
    assert f.shape == (batch, 1000)
    assert a.shape == (batch, code_length)
    assert jnp.allclose(h, h_ref, atol=1e-2, rtol=1e-2)
    assert jnp.allclose(f, f_ref, atol=1e-2, rtol=1e-2)
    assert jnp.allclose(a, a_ref, atol=1e-2, rtol=1e-2)

    print("KERNEL_OK")
</pallas_src>

<mosaic_0001>
module attributes {stable_mosaic.version = 11 : i64} {
  func.func @_model_wrapper_kernel(%arg0: i32, %arg1: memref<8x1024xf32, #tpu.memory_space<vmem>>, %arg2: memref<1024x128xbf16, #tpu.memory_space<vmem>>, %arg3: memref<1x128xf32, #tpu.memory_space<vmem>>, %arg4: memref<128x256xbf16, #tpu.memory_space<vmem>>, %arg5: memref<1x256xf32, #tpu.memory_space<vmem>>, %arg6: memref<256x512xbf16, #tpu.memory_space<vmem>>, %arg7: memref<1x512xf32, #tpu.memory_space<vmem>>, %arg8: memref<512x1024xbf16, #tpu.memory_space<vmem>>, %arg9: memref<1x1024xf32, #tpu.memory_space<vmem>>, %arg10: memref<1024x512xbf16, #tpu.memory_space<vmem>>, %arg11: memref<1x512xf32, #tpu.memory_space<vmem>>, %arg12: memref<512x256xbf16, #tpu.memory_space<vmem>>, %arg13: memref<1x256xf32, #tpu.memory_space<vmem>>, %arg14: memref<256x128xbf16, #tpu.memory_space<vmem>>, %arg15: memref<1x128xf32, #tpu.memory_space<vmem>>, %arg16: memref<8x128xf32, #tpu.memory_space<vmem>>, %arg17: memref<8x1024xf32, #tpu.memory_space<vmem>>, %arg18: memref<8x128xf32, #tpu.memory_space<vmem>>) attributes {dimension_semantics = [#tpu.dimension_semantics<parallel>], iteration_bounds = array<i64: 1>, scalar_prefetch = 0 : i64, scratch_operands = 0 : i64, tpu.core_type = #tpu.core_type<tc>, window_params = [{transform_indices = @transform_0, window_bounds = array<i64: 8, 1024>}, {pipeline_mode = #tpu.pipeline_mode<synchronous>, transform_indices = @transform_1, window_bounds = array<i64: 1024, 128>}, {pipeline_mode = #tpu.pipeline_mode<synchronous>, transform_indices = @transform_2, window_bounds = array<i64: 1, 128>}, {pipeline_mode = #tpu.pipeline_mode<synchronous>, transform_indices = @transform_3, window_bounds = array<i64: 128, 256>}, {pipeline_mode = #tpu.pipeline_mode<synchronous>, transform_indices = @transform_4, window_bounds = array<i64: 1, 256>}, {pipeline_mode = #tpu.pipeline_mode<synchronous>, transform_indices = @transform_5, window_bounds = array<i64: 256, 512>}, {pipeline_mode = #tpu.pipeline_mode<synchronous>, transform_indices = @transform_6, window_bounds = array<i64: 1, 512>}, {pipeline_mode = #tpu.pipeline_mode<synchronous>, transform_indices = @transform_7, window_bounds = array<i64: 512, 1024>}, {pipeline_mode = #tpu.pipeline_mode<synchronous>, transform_indices = @transform_8, window_bounds = array<i64: 1, 1024>}, {pipeline_mode = #tpu.pipeline_mode<synchronous>, transform_indices = @transform_9, window_bounds = array<i64: 1024, 512>}, {pipeline_mode = #tpu.pipeline_mode<synchronous>, transform_indices = @transform_10, window_bounds = array<i64: 1, 512>}, {pipeline_mode = #tpu.pipeline_mode<synchronous>, transform_indices = @transform_11, window_bounds = array<i64: 512, 256>}, {pipeline_mode = #tpu.pipeline_mode<synchronous>, transform_indices = @transform_12, window_bounds = array<i64: 1, 256>}, {pipeline_mode = #tpu.pipeline_mode<synchronous>, transform_indices = @transform_13, window_bounds = array<i64: 256, 128>}, {pipeline_mode = #tpu.pipeline_mode<synchronous>, transform_indices = @transform_14, window_bounds = array<i64: 1, 128>}, {transform_indices = @transform_15, window_bounds = array<i64: 8, 128>}, {transform_indices = @transform_16, window_bounds = array<i64: 8, 1024>}, {transform_indices = @transform_17, window_bounds = array<i64: 8, 128>}]} {
    %c0 = arith.constant 0 : index
    %c0_0 = arith.constant 0 : index
    %0 = vector.load %arg1[%c0, %c0_0] : memref<8x1024xf32, #tpu.memory_space<vmem>>, vector<8x1024xf32>
    %cst = arith.constant 0.000000e+00 : f32
    %1 = vector.broadcast %cst : f32 to vector<8x1024xf32>
    %2 = arith.maximumf %0, %1 : vector<8x1024xf32>
    %3 = arith.truncf %2 : vector<8x1024xf32> to vector<8x1024xbf16>
    %c0_1 = arith.constant 0 : index
    %c0_2 = arith.constant 0 : index
    %4 = vector.load %arg2[%c0_1, %c0_2] : memref<1024x128xbf16, #tpu.memory_space<vmem>>, vector<1024x128xbf16>
    %cst_3 = arith.constant dense<0.000000e+00> : vector<8x128xf32>
    %5 = tpu.matmul %3, %4, %cst_3 {dimension_numbers = #tpu.dot_dimension_numbers<[1], [0], [0], [1], [0, 0, 1, 1], [], []>} : vector<8x1024xbf16>, vector<1024x128xbf16>, vector<8x128xf32> -> vector<8x128xf32>
    %c0_4 = arith.constant 0 : index
    %c0_5 = arith.constant 0 : index
    %6 = vector.load %arg3[%c0_4, %c0_5] : memref<1x128xf32, #tpu.memory_space<vmem>>, vector<1x128xf32>
    %7 = vector.broadcast %6 : vector<1x128xf32> to vector<8x128xf32>
    %8 = arith.addf %5, %7 : vector<8x128xf32>
    %9 = math.tanh %8 : vector<8x128xf32>
    %c0_6 = arith.constant 0 : index
    %c0_7 = arith.constant 0 : index
    %10 = vector.load %arg16[%c0_6, %c0_7] : memref<8x128xf32, #tpu.memory_space<vmem>>, vector<8x128xf32>
    tpu.vector_store %arg16[%c0_6, %c0_7], %9 {strides = array<i32>} : memref<8x128xf32, #tpu.memory_space<vmem>>, vector<8x128xf32>,
    %11 = arith.truncf %9 : vector<8x128xf32> to vector<8x128xbf16>
    %c0_8 = arith.constant 0 : index
    %c0_9 = arith.constant 0 : index
    %12 = vector.load %arg4[%c0_8, %c0_9] : memref<128x256xbf16, #tpu.memory_space<vmem>>, vector<128x256xbf16>
    %cst_10 = arith.constant dense<0.000000e+00> : vector<8x256xf32>
    %13 = tpu.matmul %11, %12, %cst_10 {dimension_numbers = #tpu.dot_dimension_numbers<[1], [0], [0], [1], [0, 0, 1, 1], [], []>} : vector<8x128xbf16>, vector<128x256xbf16>, vector<8x256xf32> -> vector<8x256xf32>
    %c0_11 = arith.constant 0 : index
    %c0_12 = arith.constant 0 : index
    %14 = vector.load %arg5[%c0_11, %c0_12] : memref<1x256xf32, #tpu.memory_space<vmem>>, vector<1x256xf32>
    %15 = vector.broadcast %14 : vector<1x256xf32> to vector<8x256xf32>
    %16 = arith.addf %13, %15 : vector<8x256xf32>
    %cst_13 = arith.constant 0.000000e+00 : f32
    %17 = vector.broadcast %cst_13 : f32 to vector<8x256xf32>
    %18 = arith.maximumf %16, %17 : vector<8x256xf32>
    %19 = arith.truncf %18 : vector<8x256xf32> to vector<8x256xbf16>
    %c0_14 = arith.constant 0 : index
    %c0_15 = arith.constant 0 : index
    %20 = vector.load %arg6[%c0_14, %c0_15] : memref<256x512xbf16, #tpu.memory_space<vmem>>, vector<256x512xbf16>
    %cst_16 = arith.constant dense<0.000000e+00> : vector<8x512xf32>
    %21 = tpu.matmul %19, %20, %cst_16 {dimension_numbers = #tpu.dot_dimension_numbers<[1], [0], [0], [1], [0, 0, 1, 1], [], []>} : vector<8x256xbf16>, vector<256x512xbf16>, vector<8x512xf32> -> vector<8x512xf32>
    %c0_17 = arith.constant 0 : index
    %c0_18 = arith.constant 0 : index
    %22 = vector.load %arg7[%c0_17, %c0_18] : memref<1x512xf32, #tpu.memory_space<vmem>>, vector<1x512xf32>
    %23 = vector.broadcast %22 : vector<1x512xf32> to vector<8x512xf32>
    %24 = arith.addf %21, %23 : vector<8x512xf32>
    %cst_19 = arith.constant 0.000000e+00 : f32
    %25 = vector.broadcast %cst_19 : f32 to vector<8x512xf32>
    %26 = arith.maximumf %24, %25 : vector<8x512xf32>
    %27 = arith.truncf %26 : vector<8x512xf32> to vector<8x512xbf16>
    %c0_20 = arith.constant 0 : index
    %c0_21 = arith.constant 0 : index
    %28 = vector.load %arg8[%c0_20, %c0_21] : memref<512x1024xbf16, #tpu.memory_space<vmem>>, vector<512x1024xbf16>
    %cst_22 = arith.constant dense<0.000000e+00> : vector<8x1024xf32>
    %29 = tpu.matmul %27, %28, %cst_22 {dimension_numbers = #tpu.dot_dimension_numbers<[1], [0], [0], [1], [0, 0, 1, 1], [], []>} : vector<8x512xbf16>, vector<512x1024xbf16>, vector<8x1024xf32> -> vector<8x1024xf32>
    %c0_23 = arith.constant 0 : index
    %c0_24 = arith.constant 0 : index
    %30 = vector.load %arg9[%c0_23, %c0_24] : memref<1x1024xf32, #tpu.memory_space<vmem>>, vector<1x1024xf32>
    %31 = vector.broadcast %30 : vector<1x1024xf32> to vector<8x1024xf32>
    %32 = arith.addf %29, %31 : vector<8x1024xf32>
    %cst_25 = arith.constant 0.000000e+00 : f32
    %33 = vector.broadcast %cst_25 : f32 to vector<8x1024xf32>
    %34 = arith.maximumf %32, %33 : vector<8x1024xf32>
    %c0_26 = arith.constant 0 : index
    %c0_27 = arith.constant 0 : index
    %35 = vector.load %arg17[%c0_26, %c0_27] : memref<8x1024xf32, #tpu.memory_space<vmem>>, vector<8x1024xf32>
    tpu.vector_store %arg17[%c0_26, %c0_27], %34 {strides = array<i32>} : memref<8x1024xf32, #tpu.memory_space<vmem>>, vector<8x1024xf32>,
    %36 = arith.truncf %34 : vector<8x1024xf32> to vector<8x1024xbf16>
    %c0_28 = arith.constant 0 : index
    %c0_29 = arith.constant 0 : index
    %37 = vector.load %arg10[%c0_28, %c0_29] : memref<1024x512xbf16, #tpu.memory_space<vmem>>, vector<1024x512xbf16>
    %cst_30 = arith.constant dense<0.000000e+00> : vector<8x512xf32>
    %38 = tpu.matmul %36, %37, %cst_30 {dimension_numbers = #tpu.dot_dimension_numbers<[1], [0], [0], [1], [0, 0, 1, 1], [], []>} : vector<8x1024xbf16>, vector<1024x512xbf16>, vector<8x512xf32> -> vector<8x512xf32>
    %c0_31 = arith.constant 0 : index
    %c0_32 = arith.constant 0 : index
    %39 = vector.load %arg11[%c0_31, %c0_32] : memref<1x512xf32, #tpu.memory_space<vmem>>, vector<1x512xf32>
    %40 = vector.broadcast %39 : vector<1x512xf32> to vector<8x512xf32>
    %41 = arith.addf %38, %40 : vector<8x512xf32>
    %cst_33 = arith.constant 0.000000e+00 : f32
    %42 = vector.broadcast %cst_33 : f32 to vector<8x512xf32>
    %43 = arith.maximumf %41, %42 : vector<8x512xf32>
    %44 = arith.truncf %43 : vector<8x512xf32> to vector<8x512xbf16>
    %c0_34 = arith.constant 0 : index
    %c0_35 = arith.constant 0 : index
    %45 = vector.load %arg12[%c0_34, %c0_35] : memref<512x256xbf16, #tpu.memory_space<vmem>>, vector<512x256xbf16>
    %cst_36 = arith.constant dense<0.000000e+00> : vector<8x256xf32>
    %46 = tpu.matmul %44, %45, %cst_36 {dimension_numbers = #tpu.dot_dimension_numbers<[1], [0], [0], [1], [0, 0, 1, 1], [], []>} : vector<8x512xbf16>, vector<512x256xbf16>, vector<8x256xf32> -> vector<8x256xf32>
    %c0_37 = arith.constant 0 : index
    %c0_38 = arith.constant 0 : index
    %47 = vector.load %arg13[%c0_37, %c0_38] : memref<1x256xf32, #tpu.memory_space<vmem>>, vector<1x256xf32>
    %48 = vector.broadcast %47 : vector<1x256xf32> to vector<8x256xf32>
    %49 = arith.addf %46, %48 : vector<8x256xf32>
    %cst_39 = arith.constant 0.000000e+00 : f32
    %50 = vector.broadcast %cst_39 : f32 to vector<8x256xf32>
    %51 = arith.maximumf %49, %50 : vector<8x256xf32>
    %52 = arith.truncf %51 : vector<8x256xf32> to vector<8x256xbf16>
    %c0_40 = arith.constant 0 : index
    %c0_41 = arith.constant 0 : index
    %53 = vector.load %arg14[%c0_40, %c0_41] : memref<256x128xbf16, #tpu.memory_space<vmem>>, vector<256x128xbf16>
    %cst_42 = arith.constant dense<0.000000e+00> : vector<8x128xf32>
    %54 = tpu.matmul %52, %53, %cst_42 {dimension_numbers = #tpu.dot_dimension_numbers<[1], [0], [0], [1], [0, 0, 1, 1], [], []>} : vector<8x256xbf16>, vector<256x128xbf16>, vector<8x128xf32> -> vector<8x128xf32>
    %c0_43 = arith.constant 0 : index
    %c0_44 = arith.constant 0 : index
    %55 = vector.load %arg15[%c0_43, %c0_44] : memref<1x128xf32, #tpu.memory_space<vmem>>, vector<1x128xf32>
    %56 = vector.broadcast %55 : vector<1x128xf32> to vector<8x128xf32>
    %57 = arith.addf %54, %56 : vector<8x128xf32>
    %58 = math.tanh %57 : vector<8x128xf32>
    %c0_45 = arith.constant 0 : index
    %c0_46 = arith.constant 0 : index
    %59 = vector.load %arg18[%c0_45, %c0_46] : memref<8x128xf32, #tpu.memory_space<vmem>>, vector<8x128xf32>
    tpu.vector_store %arg18[%c0_45, %c0_46], %58 {strides = array<i32>} : memref<8x128xf32, #tpu.memory_space<vmem>>, vector<8x128xf32>,
    return
  }
  func.func @transform_0(%arg0: i32) -> (i32, i32) {
    %c0_i32 = arith.constant 0 : i32
    %c0_i32_0 = arith.constant 0 : i32
    return %arg0, %c0_i32 : i32, i32
  }
  func.func @transform_1(%arg0: i32) -> (i32, i32) {
    %c0_i32 = arith.constant 0 : i32
    %c0_i32_0 = arith.constant 0 : i32
    %c0_i32_1 = arith.constant 0 : i32
    return %c0_i32, %c0_i32_0 : i32, i32
  }
  func.func @transform_2(%arg0: i32) -> (i32, i32) {
    %c0_i32 = arith.constant 0 : i32
    %c0_i32_0 = arith.constant 0 : i32
    %c0_i32_1 = arith.constant 0 : i32
    return %c0_i32, %c0_i32_0 : i32, i32
  }
  func.func @transform_3(%arg0: i32) -> (i32, i32) {
    %c0_i32 = arith.constant 0 : i32
    %c0_i32_0 = arith.constant 0 : i32
    %c0_i32_1 = arith.constant 0 : i32
    return %c0_i32, %c0_i32_0 : i32, i32
  }
  func.func @transform_4(%arg0: i32) -> (i32, i32) {
    %c0_i32 = arith.constant 0 : i32
    %c0_i32_0 = arith.constant 0 : i32
    %c0_i32_1 = arith.constant 0 : i32
    return %c0_i32, %c0_i32_0 : i32, i32
  }
  func.func @transform_5(%arg0: i32) -> (i32, i32) {
    %c0_i32 = arith.constant 0 : i32
    %c0_i32_0 = arith.constant 0 : i32
    %c0_i32_1 = arith.constant 0 : i32
    return %c0_i32, %c0_i32_0 : i32, i32
  }
  func.func @transform_6(%arg0: i32) -> (i32, i32) {
    %c0_i32 = arith.constant 0 : i32
    %c0_i32_0 = arith.constant 0 : i32
    %c0_i32_1 = arith.constant 0 : i32
    return %c0_i32, %c0_i32_0 : i32, i32
  }
  func.func @transform_7(%arg0: i32) -> (i32, i32) {
    %c0_i32 = arith.constant 0 : i32
    %c0_i32_0 = arith.constant 0 : i32
    %c0_i32_1 = arith.constant 0 : i32
    return %c0_i32, %c0_i32_0 : i32, i32
  }
  func.func @transform_8(%arg0: i32) -> (i32, i32) {
    %c0_i32 = arith.constant 0 : i32
    %c0_i32_0 = arith.constant 0 : i32
    %c0_i32_1 = arith.constant 0 : i32
    return %c0_i32, %c0_i32_0 : i32, i32
  }
  func.func @transform_9(%arg0: i32) -> (i32, i32) {
    %c0_i32 = arith.constant 0 : i32
    %c0_i32_0 = arith.constant 0 : i32
    %c0_i32_1 = arith.constant 0 : i32
    return %c0_i32, %c0_i32_0 : i32, i32
  }
  func.func @transform_10(%arg0: i32) -> (i32, i32) {
    %c0_i32 = arith.constant 0 : i32
    %c0_i32_0 = arith.constant 0 : i32
    %c0_i32_1 = arith.constant 0 : i32
    return %c0_i32, %c0_i32_0 : i32, i32
  }
  func.func @transform_11(%arg0: i32) -> (i32, i32) {
    %c0_i32 = arith.constant 0 : i32
    %c0_i32_0 = arith.constant 0 : i32
    %c0_i32_1 = arith.constant 0 : i32
    return %c0_i32, %c0_i32_0 : i32, i32
  }
  func.func @transform_12(%arg0: i32) -> (i32, i32) {
    %c0_i32 = arith.constant 0 : i32
    %c0_i32_0 = arith.constant 0 : i32
    %c0_i32_1 = arith.constant 0 : i32
    return %c0_i32, %c0_i32_0 : i32, i32
  }
  func.func @transform_13(%arg0: i32) -> (i32, i32) {
    %c0_i32 = arith.constant 0 : i32
    %c0_i32_0 = arith.constant 0 : i32
    %c0_i32_1 = arith.constant 0 : i32
    return %c0_i32, %c0_i32_0 : i32, i32
  }
  func.func @transform_14(%arg0: i32) -> (i32, i32) {
    %c0_i32 = arith.constant 0 : i32
    %c0_i32_0 = arith.constant 0 : i32
    %c0_i32_1 = arith.constant 0 : i32
    return %c0_i32, %c0_i32_0 : i32, i32
  }
  func.func @transform_15(%arg0: i32) -> (i32, i32) {
    %c0_i32 = arith.constant 0 : i32
    %c0_i32_0 = arith.constant 0 : i32
    return %arg0, %c0_i32 : i32, i32
  }
  func.func @transform_16(%arg0: i32) -> (i32, i32) {
    %c0_i32 = arith.constant 0 : i32
    %c0_i32_0 = arith.constant 0 : i32
    return %arg0, %c0_i32 : i32, i32
  }
  func.func @transform_17(%arg0: i32) -> (i32, i32) {
    %c0_i32 = arith.constant 0 : i32
    %c0_i32_0 = arith.constant 0 : i32
    return %arg0, %c0_i32 : i32, i32
  }
}

</mosaic_0001>

<bundles_post_ra>
// kernel: tpu_custom_call.1
= control target key start
LH: loop header
LB: loop body
LE: loop exit
PB: predicated region body
PF: predicated region fallthrough
CT: control target
= control target key end

     0   :  { %s8199_s0 = inlined_call_operand.hbm [shape: f32[8,1024], index: 0, kind: input, shape index: {}]   ;;  %s8200_s1 = inlined_call_operand.hbm [shape: bf16[1024,128], index: 1, kind: input, shape index: {}]   ;;  %s8201_s2 = inlined_call_operand.hbm [shape: f32[1,128], index: 2, kind: input, shape index: {}]   ;;  %s8202_s3 = inlined_call_operand.hbm [shape: bf16[128,256], index: 3, kind: input, shape index: {}]   ;;  %s8203_s4 = inlined_call_operand.hbm [shape: f32[1,256], index: 4, kind: input, shape index: {}]   ;;  %s8204_s5 = inlined_call_operand.hbm [shape: bf16[256,512], index: 5, kind: input, shape index: {}]   ;;  %s8205_s6 = inlined_call_operand.vmem [shape: f32[1,512], index: 6, kind: input, shape index: {}]   ;;  %s8206_s7 = inlined_call_operand.hbm [shape: bf16[512,1024], index: 7, kind: input, shape index: {}]   ;;  %s8207_s8 = inlined_call_operand.vmem [shape: f32[1,1024], index: 8, kind: input, shape index: {}]   ;;  %s8208_s9 = inlined_call_operand.hbm [shape: bf16[1024,512], index: 9, kind: input, shape index: {}]   ;;  %s8209_s10 = inlined_call_operand.vmem [shape: f32[1,512], index: 10, kind: input, shape index: {}]   ;;  %s8210_s11 = inlined_call_operand.hbm [shape: bf16[512,256], index: 11, kind: input, shape index: {}]   ;;  %s8211_s12 = inlined_call_operand.vmem [shape: f32[1,256], index: 12, kind: input, shape index: {}]   ;;  %s8212_s13 = inlined_call_operand.hbm [shape: bf16[256,128], index: 13, kind: input, shape index: {}]   ;;  %s8213_s14 = inlined_call_operand.vmem [shape: f32[1,128], index: 14, kind: input, shape index: {}]   ;;  %s8214_s15 = inlined_call_operand.hbm [shape: f32[8,128], index: 15, kind: output, shape index: {0}]   ;;  %s8215_s16 = inlined_call_operand.hbm [shape: f32[8,1024], index: 16, kind: output, shape index: {1}]   ;;  %s8216_s17 = inlined_call_operand.hbm [shape: f32[8,128], index: 17, kind: output, shape index: {2}]  }
   0x1   :  { %8219 = sst [smem:[#allocation31_spill]] %s8199_s0 }
   0x2   :  { %8220 = sst [smem:[#allocation32_spill]] %s8200_s1 }
   0x3   :  { %23 = vsyncpa [#allocation3], 0 }
   0x4   :  { %24 = vsyncpa [#allocation6], 0 }
   0x5   :  { %25 = vsyncpa [#allocation9], 0 }
   0x6   :  { %26 = vsyncpa [#allocation12], 0 }
   0x7   :  { %27 = vsyncpa [#allocation15], 0 }
   0x8   :  { %28 = vsyncpa [#allocation18], 0 }
   0x9   :  { %29 = vsyncpa [#allocation4], 0 }
   0xa   :  { %30 = vsyncpa [#allocation21], 0  ;;  %s7901_s24 = smov [#allocation5]  }
   0xb   :  { %s46_s25 = sshll.u32 %s7901_s24, 4  ;;  %s47_s25 = int_to_ptr.vmem [resolvable:$true] %s46_s25 }
   0xc   :  { %s7633_s26 = scalar_lea.vmem %s47_s25, 8192  ;;  %p7638_p1 = scmp.lt.s32.totalorder %s47_s25, %s47_s25 }
   0xd   :  { %p7634_p0 = scmp.ne.s32.totalorder %s47_s25, %s7633_s26  ;;  %p7639_p2 = scmp.lt.s32.totalorder %s7633_s26, %s7633_s26 }
   0xf   :  { %p7640_p3 = por %p7639_p2, %p7638_p1 }
  0x11   :  { %p7641_p4 = pnand %p7640_p3, %p7634_p0 }
  0x13   :  { %7644 = shalt.err (!%p7641_p4)
}
  0x14   :  { %s8217_s27 = smov 64   ;;  %s8218_s28 = smov 4  }
  0x15   :  { %s8221_s30 = sld [smem:[#allocation32_spill]]  ;;  %s7904_s18 = smov [#allocation8]  }
  0x16   :  { %s68_s19 = sshll.u32 %s7904_s18, 4  ;;  %s69_s19 = int_to_ptr.vmem [resolvable:$true] %s68_s19 }
  0x17   :  { %s7653_s1 = scalar_lea.vmem %s69_s19, 2048  ;;  %p7658_p6 = scmp.lt.s32.totalorder %s69_s19, %s69_s19 }
  0x18   :  { %p7654_p5 = scmp.ne.s32.totalorder %s69_s19, %s7653_s1  ;;  %p7659_p7 = scmp.lt.s32.totalorder %s7653_s1, %s7653_s1 }
  0x1a   :  { %p7660_p8 = por %p7659_p7, %p7658_p6 }
  0x1b   :  { %52 = dma.hbm_to_vmem [thread:$0]  %s8221_s30, 8192, %s47_s25, [#allocation6], %s8217_s27, %s8217_s27, %s8218_s28  }
  0x1c   :  { %p7661_p9 = pnand %p7660_p8, %p7654_p5 }
  0x1e   :  { %7664 = shalt.err (!%p7661_p9)
}
  0x1f   :  { %s7905_s20 = smov 128   ;;  %s7906_s21 = smov 8  }
  0x20   :  { %74 = dma.hbm_to_vmem [thread:$0]  %s8202_s3, 2048, %s69_s19, [#allocation9], %s7905_s20, %s7905_s20, %s7906_s21  }
  0x21   :  { %s7907_s24 = smov [#allocation11]  }
  0x22   :  { %s90_s25 = sshll.u32 %s7907_s24, 4  ;;  %s91_s25 = int_to_ptr.vmem [resolvable:$true] %s90_s25 }
  0x23   :  { %s7673_s26 = scalar_lea.vmem %s91_s25, 8192  ;;  %p7678_p11 = scmp.lt.s32.totalorder %s91_s25, %s91_s25 }
  0x24   :  { %p7674_p10 = scmp.ne.s32.totalorder %s91_s25, %s7673_s26  ;;  %p7679_p12 = scmp.lt.s32.totalorder %s7673_s26, %s7673_s26 }
  0x26   :  { %p7680_p13 = por %p7679_p12, %p7678_p11 }
  0x28   :  { %p7681_p0 = pnand %p7680_p13, %p7674_p10 }
  0x2a   :  { %7684 = shalt.err (!%p7681_p0)
}
  0x2b   :  { %s7908_s29 = smov 256   ;;  %s7909_s0 = smov 16  }
  0x2c   :  { %96 = dma.hbm_to_vmem [thread:$0]  %s8204_s5, 8192, %s91_s25, [#allocation12], %s7908_s29, %s7908_s29, %s7909_s0  }
  0x2d   :  { %s7910_s1 = smov [#allocation14]   ;;  %s7911_s3 = smov [#allocation2]  }
  0x2e   :  { %s118_s27 = sshll.u32 %s7910_s1, 4  ;;  %s37_s19 = sshll.u32 %s7911_s3, 4  ;;  %s119_s27 = int_to_ptr.vmem [resolvable:$true] %s118_s27  ;;  %s38_s19 = int_to_ptr.vmem [resolvable:$true] %s37_s19 }
  0x2f   :  { %s7693_s22 = scalar_lea.vmem %s119_s27, 32768  ;;  %p7698_p2 = scmp.lt.s32.totalorder %s119_s27, %s119_s27 }
  0x30   :  { %p7694_p1 = scmp.ne.s32.totalorder %s119_s27, %s7693_s22  ;;  %p7699_p3 = scmp.lt.s32.totalorder %s7693_s22, %s7693_s22 }
  0x32   :  { %p7700_p4 = por %p7699_p3, %p7698_p2 }
  0x34   :  { %p7701_p5 = pnand %p7700_p4, %p7694_p1 }
  0x36   :  { %7704 = shalt.err (!%p7701_p5)
}
  0x37   :  { %124 = dma.hbm_to_vmem [thread:$0]  %s8208_s9, 32768, %s119_s27, [#allocation15], %s7908_s29, %s7908_s29, %s7909_s0  }
  0x38   :  { %s7713_s26 = scalar_lea.vmem %s38_s19, 1024  ;;  %p7718_p7 = scmp.lt.s32.totalorder %s38_s19, %s38_s19 }
  0x39   :  { %p7714_p6 = scmp.ne.s32.totalorder %s38_s19, %s7713_s26  ;;  %p7719_p8 = scmp.lt.s32.totalorder %s7713_s26, %s7713_s26 }
  0x3b   :  { %p7720_p9 = por %p7719_p8, %p7718_p7 }
  0x3d   :  { %p7721_p10 = pnand %p7720_p9, %p7714_p6 }
  0x3f   :  { %7724 = shalt.err (!%p7721_p10)
}
  0x40   :  { %s8222_s30 = sld [smem:[#allocation31_spill]]  ;;  %s7912_s18 = smov [#allocation7]  }
  0x41   :  { %s59_s1 = sshll.u32 %s7912_s18, 4  ;;  %s7913_s3 = smov [#allocation10]   ;;  %s60_s1 = int_to_ptr.vmem [resolvable:$true] %s59_s1 }
  0x42   :  { %s81_s22 = sshll.u32 %s7913_s3, 4  ;;  %s7733_s28 = scalar_lea.vmem %s60_s1, 16  ;;  %s82_s22 = int_to_ptr.vmem [resolvable:$true] %s81_s22 }
  0x43   :  { %p7734_p11 = scmp.ne.s32.totalorder %s60_s1, %s7733_s28  ;;  %s7737_s9 = scalar_lea.vmem %s60_s1, 32 }
  0x44   :  { %p7738_p12 = scmp.lt.s32.totalorder %s60_s1, %s60_s1  ;;  %p7739_p13 = scmp.lt.s32.totalorder %s7737_s9, %s7733_s28 }
  0x46   :  { %40 = dma.hbm_to_vmem [thread:$0]  %s8222_s30, 1024, %s38_s19, [#allocation3]  }
  0x47   :  { %p7740_p0 = por %p7739_p13, %p7738_p12 }
  0x49   :  { %p7741_p1 = pnand %p7740_p0, %p7734_p11 }
  0x4b   :  { %7744 = shalt.err (!%p7741_p1)
}
  0x4c   :  { %62 = dma.hbm_to_vmem [thread:$0]  %s8201_s2, 16, %s60_s1, [#allocation6]  }
  0x4d   :  { %s7753_s0 = scalar_lea.vmem %s82_s22, 32  ;;  %p7758_p3 = scmp.lt.s32.totalorder %s82_s22, %s82_s22 }
  0x4e   :  { %p7754_p2 = scmp.ne.s32.totalorder %s82_s22, %s7753_s0  ;;  %p7759_p4 = scmp.lt.s32.totalorder %s7753_s0, %s7753_s0 }
  0x50   :  { %p7760_p5 = por %p7759_p4, %p7758_p3 }
  0x52   :  { %p7761_p6 = pnand %p7760_p5, %p7754_p2 }
  0x54   :  { %7764 = shalt.err (!%p7761_p6)
}
  0x55   :  { %84 = dma.hbm_to_vmem [thread:$0]  %s8203_s4, 32, %s82_s22, [#allocation9]  }
  0x56   :  { %s7914_s28 = smov [#allocation13]  }
  0x57   :  { %s104_s24 = sshll.u32 %s7914_s28, 4  ;;  %s105_s24 = int_to_ptr.vmem [resolvable:$true] %s104_s24 }
  0x58   :  { %s7773_s26 = scalar_lea.vmem %s105_s24, 32768  ;;  %p7778_p8 = scmp.lt.s32.totalorder %s105_s24, %s105_s24 }
  0x59   :  { %p7774_p7 = scmp.ne.s32.totalorder %s105_s24, %s7773_s26  ;;  %p7779_p9 = scmp.lt.s32.totalorder %s7773_s26, %s7773_s26 }
  0x5b   :  { %p7780_p10 = por %p7779_p9, %p7778_p8 }
  0x5d   :  { %p7781_p11 = pnand %p7780_p10, %p7774_p7 }
  0x5f   :  { %7784 = shalt.err (!%p7781_p11)
}
  0x60   :  { %s7915_s2 = smov 512   ;;  %s7916_s5 = smov 32  }
  0x61   :  { %110 = dma.hbm_to_vmem [thread:$0]  %s8206_s7, 32768, %s105_s24, [#allocation12], %s7915_s2, %s7915_s2, %s7916_s5  }
  0x62   :  { %s7917_s18 = smov [#allocation16]   ;;  %s7918_s3 = smov [#allocation17]  }
  0x63   :  { %s132_s1 = sshll.u32 %s7917_s18, 4  ;;  %s146_s4 = sshll.u32 %s7918_s3, 4  ;;  %s133_s1 = int_to_ptr.vmem [resolvable:$true] %s132_s1  ;;  %s147_s4 = int_to_ptr.vmem [resolvable:$true] %s146_s4 }
  0x64   :  { %s7793_s22 = scalar_lea.vmem %s133_s1, 8192  ;;  %p7798_p13 = scmp.lt.s32.totalorder %s133_s1, %s133_s1 }
  0x65   :  { %p7794_p12 = scmp.ne.s32.totalorder %s133_s1, %s7793_s22  ;;  %p7799_p0 = scmp.lt.s32.totalorder %s7793_s22, %s7793_s22 }
  0x67   :  { %p7800_p1 = por %p7799_p0, %p7798_p13 }
  0x69   :  { %p7801_p2 = pnand %p7800_p1, %p7794_p12 }
  0x6b   :  { %7804 = shalt.err (!%p7801_p2)
}
  0x6c   :  { %138 = dma.hbm_to_vmem [thread:$0]  %s8210_s11, 8192, %s133_s1, [#allocation15], %s7905_s20, %s7905_s20, %s7906_s21  }
  0x6d   :  { %s7813_s7 = scalar_lea.vmem %s147_s4, 2048  ;;  %p7818_p4 = scmp.lt.s32.totalorder %s147_s4, %s147_s4 }
  0x6e   :  { %p7814_p3 = scmp.ne.s32.totalorder %s147_s4, %s7813_s7  ;;  %p7819_p5 = scmp.lt.s32.totalorder %s7813_s7, %s7813_s7 }
  0x70   :  { %p7820_p6 = por %p7819_p5, %p7818_p4 }
  0x72   :  { %p7821_p7 = pnand %p7820_p6, %p7814_p3 }
  0x74   :  { %7824 = shalt.err (!%p7821_p7)
}
  0x75   :  { %s8223_s29 = smov 4   ;;  %s8224_s0 = smov 64  }
  0x76   :  { %152 = dma.hbm_to_vmem [thread:$0]  %s8212_s13, 2048, %s147_s4, [#allocation18], %s8224_s0, %s8224_s0, %s8223_s29  }
  0x77   :  { %7885 = dma.done.wait [#allocation3], 1024  }
  0x78   :  { %7886 = vsyncadd [#allocation3], 4294966272 }
  0x79   :  { %7887 = dma.done.wait [#allocation6], 8208  }
  0x7a   :  { %7888 = vsyncadd [#allocation6], 4294959088 }
  0x7b   :  { %7889 = dma.done.wait [#allocation9], 2080  }
  0x7c   :  { %7890 = vsyncadd [#allocation9], 4294965216 }
  0x7d   :  { %7891 = dma.done.wait [#allocation12], 40960  }
  0x7e   :  { %7892 = vsyncadd [#allocation12], 4294926336 }
  0x7f   :  { %7893 = dma.done.wait [#allocation15], 40960  }
  0x80   :  { %7894 = vsyncadd [#allocation15], 4294926336 }
  0x81   :  { %7895 = dma.done.wait [#allocation18], 2048  }
  0x82   :  { %7896 = vsyncadd [#allocation18], 4294965248  ;;  %v6941_v0 = vld [vmem:[#allocation5 + $0x78] sm:$0xff]   ;;  %v6945_v4 = vld [vmem:[#allocation5 + $0x70] sm:$0xff]   ;;  %s7920_s24 = smov [#allocation20]   ;;  %s7921_s26 = smov [#allocation19]  }
  0x83   :  { %v6942_v1 = vld [vmem:[#allocation5 + $0xf8] sm:$0xff]   ;;  %6809 = vmatprep.subr.bf16.mxu0 %v6941_v0  ;;  %v6946_v5 = vld [vmem:[#allocation5 + $0xf0] sm:$0xff]   ;;  %v6949_v8 = vld [vmem:[#allocation5 + $0x68] sm:$0xff]   ;;  %s6030_s2 = sshll.u32 %s7921_s26, 4  ;;  %s6031_s2 = int_to_ptr.vmem [resolvable:$true] %s6030_s2 }
  0x84   :  { %v6943_v2 = vld [vmem:[#allocation5 + $0x38] sm:$0xff]   ;;  %6831 = vmatprep.subr.bf16.mxu1 %v6942_v1  ;;  %v6947_v6 = vld [vmem:[#allocation5 + $0x30] sm:$0xff]   ;;  %v6950_v9 = vld [vmem:[#allocation5 + $0xe8] sm:$0xff]  }
  0x85   :  { %v6944_v3 = vld [vmem:[#allocation5 + $0xb8] sm:$0xff]   ;;  %6810 = vmatpush3.bf16.msra.mxu0 %v6943_v2  ;;  %v6948_v7 = vld [vmem:[#allocation5 + $0xb0] sm:$0xff]   ;;  %v6951_v10 = vld [vmem:[#allocation5 + $0x28] sm:$0xff]  }
  0x86   :  { %6832 = vmatpush3.bf16.msra.mxu1 %v6944_v3  ;;  %6811 = vmatprep.subr.bf16.mxu0 %v6945_v4  ;;  %v6952_v11 = vld [vmem:[#allocation5 + $0xa8] sm:$0xff]   ;;  %v6953_v12 = vld [vmem:[#allocation5 + $0x60] sm:$0xff]   ;;  %v6957_v16 = vld [vmem:[#allocation5 + $0x58] sm:$0xff]  }
  0x87   :  { %6833 = vmatprep.subr.bf16.mxu1 %v6946_v5  ;;  %v6954_v13 = vld [vmem:[#allocation5 + $0xe0] sm:$0xff]   ;;  %v6958_v17 = vld [vmem:[#allocation5 + $0xd8] sm:$0xff]   ;;  %v6961_v20 = vld [vmem:[#allocation5 + $0x50] sm:$0xff]  }
  0x88   :  { %v6955_v14 = vld [vmem:[#allocation5 + $0x20] sm:$0xff]   ;;  %v6959_v18 = vld [vmem:[#allocation5 + $0x18] sm:$0xff]   ;;  %v6962_v21 = vld [vmem:[#allocation5 + $0xd0] sm:$0xff]  }
  0x89   :  { %6812 = vmatpush3.bf16.msra.mxu0 %v6947_v6  ;;  %v6956_v15 = vld [vmem:[#allocation5 + $0xa0] sm:$0xff]   ;;  %v6960_v19 = vld [vmem:[#allocation5 + $0x98] sm:$0xff]   ;;  %v6963_v22 = vld [vmem:[#allocation5 + $0x10] sm:$0xff]  }
  0x8a   :  { %6834 = vmatpush3.bf16.msra.mxu1 %v6948_v7  ;;  %6813 = vmatprep.subr.bf16.mxu0 %v6949_v8  ;;  %v6964_v23 = vld [vmem:[#allocation5 + $0x90] sm:$0xff]   ;;  %v6965_v24 = vld [vmem:[#allocation5 + $0x48] sm:$0xff]   ;;  %v6969_v28 = vld [vmem:[#allocation5 + $0x40] sm:$0xff]  }
  0x8b   :  { %6835 = vmatprep.subr.bf16.mxu1 %v6950_v9  ;;  %v6966_v25 = vld [vmem:[#allocation5 + $0xc8] sm:$0xff]   ;;  %v6970_v29 = vld [vmem:[#allocation5 + $0xc0] sm:$0xff]   ;;  %v189_v33 = vld [vmem:[#allocation2 + $0x18] sm:$0xff] }
  0x8c   :  { %v6967_v26 = vld [vmem:[#allocation5 + $0x8] sm:$0xff]   ;;  %v6971_v30 = vld [vmem:[#allocation5] sm:$0xff]   ;;  %v197_v36 = vmax.f32 %v189_v33, 0.0  ;;  %v188_v38 = vld [vmem:[#allocation2 + $0x10] sm:$0xff] }
  0x8d   :  { %6814 = vmatpush3.bf16.msra.mxu0 %v6951_v10  ;;  %v6968_v27 = vld [vmem:[#allocation5 + $0x88] sm:$0xff]   ;;  %v6972_v31 = vld [vmem:[#allocation5 + $0x80] sm:$0xff]   ;;  %v196_v39 = vmax.f32 %v188_v38, 0.0  ;;  %v6973_v40 = vld [vmem:[#allocation5 + $0x178] sm:$0xff]  }
  0x8e   :  { %6836 = vmatpush3.bf16.msra.mxu1 %v6952_v11  ;;  %6815 = vmatprep.subr.bf16.mxu0 %v6953_v12  ;;  %v187_v32 = vld [vmem:[#allocation2 + $0x8] sm:$0xff]  ;;  %v186_v34 = vld [vmem:[#allocation2] sm:$0xff]  ;;  %v205_v42 = vpack.c.bf16 %v197_v36, %v197_v36  ;;  %v6974_v44 = vld [vmem:[#allocation5 + $0x1f8] sm:$0xff]  }
  0x8f   :  { %6837 = vmatprep.subr.bf16.mxu1 %v6954_v13  ;;  %v195_v35 = vmax.f32 %v187_v32, 0.0  ;;  %v194_v37 = vmax.f32 %v186_v34, 0.0  ;;  %v204_v45 = vpack.c.bf16 %v196_v39, %v196_v39  ;;  %v6975_v46 = vld [vmem:[#allocation5 + $0x138] sm:$0xff]   ;;  %v6977_v48 = vld [vmem:[#allocation5 + $0x170] sm:$0xff]   ;;  %v6981_v52 = vld [vmem:[#allocation5 + $0x168] sm:$0xff]  }
  0x90   :  { %801 = vmatprep.mubr.bf16.mxu1 %v205_v42  ;;  %v6976_v47 = vld [vmem:[#allocation5 + $0x1b8] sm:$0xff]   ;;  %v6978_v49 = vld [vmem:[#allocation5 + $0x1f0] sm:$0xff]   ;;  %v6982_v53 = vld [vmem:[#allocation5 + $0x1e8] sm:$0xff]  }
  0x91   :  { %6816 = vmatpush3.bf16.msra.mxu0 %v6955_v14  ;;  %v203_v41 = vpack.c.bf16 %v195_v35, %v195_v35  ;;  %v202_v43 = vpack.c.bf16 %v194_v37, %v194_v37  ;;  %v6979_v50 = vld [vmem:[#allocation5 + $0x130] sm:$0xff]   ;;  %v6983_v54 = vld [vmem:[#allocation5 + $0x128] sm:$0xff]   ;;  %v6985_v56 = vld [vmem:[#allocation5 + $0x160] sm:$0xff]  }
  0x92   :  { %6838 = vmatpush3.bf16.msra.mxu1 %v6956_v15  ;;  %6817 = vmatprep.subr.bf16.mxu0 %v6957_v16  ;;  %v6980_v51 = vld [vmem:[#allocation5 + $0x1b0] sm:$0xff]   ;;  %v6984_v55 = vld [vmem:[#allocation5 + $0x1a8] sm:$0xff]   ;;  %v6986_v57 = vld [vmem:[#allocation5 + $0x1e0] sm:$0xff]  }
  0x93   :  { %6839 = vmatprep.subr.bf16.mxu1 %v6958_v17  ;;  %761 = vmatprep.mubr.bf16.mxu0 %v203_v41  ;;  %v6987_v58 = vld [vmem:[#allocation5 + $0x120] sm:$0xff]   ;;  %v6989_v60 = vld [vmem:[#allocation5 + $0x158] sm:$0xff]   ;;  %v6993_v0 = vld [vmem:[#allocation5 + $0x150] sm:$0xff]  }
  0x94   :  { %v6988_v59 = vld [vmem:[#allocation5 + $0x1a0] sm:$0xff]   ;;  %v6990_v61 = vld [vmem:[#allocation5 + $0x1d8] sm:$0xff]   ;;  %v6994_v1 = vld [vmem:[#allocation5 + $0x1d0] sm:$0xff]  }
  0x95   :  { %6818 = vmatpush3.bf16.msra.mxu0 %v6959_v18  ;;  %v6991_v62 = vld [vmem:[#allocation5 + $0x118] sm:$0xff]   ;;  %v6995_v2 = vld [vmem:[#allocation5 + $0x110] sm:$0xff]   ;;  %v6997_v4 = vld [vmem:[#allocation5 + $0x148] sm:$0xff]  }
  0x96   :  { %6840 = vmatpush3.bf16.msra.mxu1 %v6960_v19  ;;  %6819 = vmatprep.subr.bf16.mxu0 %v6961_v20  ;;  %v6992_v63 = vld [vmem:[#allocation5 + $0x198] sm:$0xff]   ;;  %v6996_v3 = vld [vmem:[#allocation5 + $0x190] sm:$0xff]   ;;  %v6998_v5 = vld [vmem:[#allocation5 + $0x1c8] sm:$0xff]  }
  0x97   :  { %6841 = vmatprep.subr.bf16.mxu1 %v6962_v21  ;;  %v6999_v6 = vld [vmem:[#allocation5 + $0x108] sm:$0xff]   ;;  %v7001_v8 = vld [vmem:[#allocation5 + $0x140] sm:$0xff]   ;;  %v193_v14 = vld [vmem:[#allocation2 + $0x38] sm:$0xff] }
  0x98   :  { %v7000_v7 = vld [vmem:[#allocation5 + $0x188] sm:$0xff]   ;;  %v7002_v9 = vld [vmem:[#allocation5 + $0x1c0] sm:$0xff]   ;;  %v192_v16 = vld [vmem:[#allocation2 + $0x30] sm:$0xff]  ;;  %v201_v17 = vmax.f32 %v193_v14, 0.0 }
  0x99   :  { %6820 = vmatpush3.bf16.msra.mxu0 %v6963_v22  ;;  %v7003_v10 = vld [vmem:[#allocation5 + $0x100] sm:$0xff]   ;;  %v191_v12 = vld [vmem:[#allocation2 + $0x28] sm:$0xff]  ;;  %v200_v19 = vmax.f32 %v192_v16, 0.0  ;;  %v7017_v33 = vld [vmem:[#allocation8 + $0x30] ss:$8 sps:$4 sm:$0xff]  }
  0x9a   :  { %6842 = vmatpush3.bf16.msra.mxu1 %v6964_v23  ;;  %6821 = vmatprep.subr.bf16.mxu0 %v6965_v24  ;;  %v7004_v11 = vld [vmem:[#allocation5 + $0x180] sm:$0xff]   ;;  %v199_v13 = vmax.f32 %v191_v12, 0.0  ;;  %v209_v21 = vpack.c.bf16 %v201_v17, %v201_v17  ;;  %v7005_v24 = vld [vmem:[#allocation8 + $0x70] ss:$8 sps:$4 sm:$0xff]  }
  0x9b   :  { %6843 = vmatprep.subr.bf16.mxu1 %v6966_v25  ;;  %v190_v15 = vld [vmem:[#allocation2 + $0x20] sm:$0xff]  ;;  %v208_v23 = vpack.c.bf16 %v200_v19, %v200_v19  ;;  %v7023_v37 = vld [vmem:[#allocation8 + $0x10] ss:$8 sps:$4 sm:$0xff]  }
  0x9c   :  { %v198_v18 = vmax.f32 %v190_v15, 0.0  ;;  %v207_v20 = vpack.c.bf16 %v199_v13, %v199_v13  ;;  %v7007_v25 = vld [vmem:[#allocation8 + $0x74] ss:$8 sps:$4 sm:$0xff]   ;;  %v7022_v34 = vld [vmem:[#allocation8 + $0x24] ss:$8 sps:$4 sm:$0xff]  }
  0x9d   :  { %6822 = vmatpush3.bf16.msra.mxu0 %v6967_v26  ;;  %v7008_v26 = vld [vmem:[#allocation8 + $0x60] ss:$8 sps:$4 sm:$0xff]   ;;  %v7019_v32 = vld [vmem:[#allocation8 + $0x34] ss:$8 sps:$4 sm:$0xff]   ;;  %v7028_v38 = vld [vmem:[#allocation8 + $0x4] ss:$8 sps:$4 sm:$0xff]  }
  0x9e   :  { %6844 = vmatpush3.bf16.msra.mxu1 %v6968_v27  ;;  %6823 = vmatprep.subr.bf16.mxu0 %v6969_v28  ;;  %v206_v22 = vpack.c.bf16 %v198_v18, %v198_v18  ;;  %v7010_v27 = vld [vmem:[#allocation8 + $0x64] ss:$8 sps:$4 sm:$0xff]   ;;  %v7013_v28 = vld [vmem:[#allocation8 + $0x54] ss:$8 sps:$4 sm:$0xff]   ;;  %v7020_v35 = vld [vmem:[#allocation8 + $0x20] ss:$8 sps:$4 sm:$0xff]  }
  0x9f   :  { %6845 = vmatprep.subr.bf16.mxu1 %v6970_v29  ;;  %v7011_v29 = vld [vmem:[#allocation8 + $0x50] ss:$8 sps:$4 sm:$0xff]   ;;  %v7025_v36 = vld [vmem:[#allocation8 + $0x14] ss:$8 sps:$4 sm:$0xff]   ;;  %v7026_v39 = vld [vmem:[#allocation8] ss:$8 sps:$4 sm:$0xff]  }
  0xa0   :  { %v7029_v41 = vld [vmem:[#allocation11 + $0xe0] ss:$16 sps:$4 sm:$0xff]   ;;  %v7031_v42 = vld [vmem:[#allocation11 + $0xe4] ss:$16 sps:$4 sm:$0xff]   ;;  %v6071_v15 = vld [vmem:[#allocation7] ss:$0 sm:$0xff] }
  0xa1   :  { %6824 = vmatpush3.bf16.msra.mxu0 %v6971_v30  ;;  %v7016_v30 = vld [vmem:[#allocation8 + $0x44] ss:$8 sps:$4 sm:$0xff]  }
  0xa2   :  { %6846 = vmatpush3.bf16.msra.mxu1 %v6972_v31  ;;  %6853 = vmatprep.subr.bf16.mxu0 %v6973_v40  ;;  %v7014_v31 = vld [vmem:[#allocation8 + $0x40] ss:$8 sps:$4 sm:$0xff]   ;;  %v7919_v40 = vmov 0  }
  0xa3   :  { %6875 = vmatprep.subr.bf16.mxu1 %v6974_v44  ;;  %v7037_v44 = vld [vmem:[#allocation11 + $0xc4] ss:$16 sps:$4 sm:$0xff]  }
  0xa4   :  { %762 = vmatmul.mubr.bf16.vlgmr.msra.gmra.mxu0 %v202_v43  ;;  %v7034_v43 = vld [vmem:[#allocation11 + $0xec] ss:$16 sps:$4 sm:$0xff]  }
  0xa5   :  { %802 = vmatmul.mubr.bf16.vlgmr.msra.gmra.mxu1 %v204_v45  ;;  %6854 = vmatpush3.bf16.msra.mxu0 %v6975_v46  ;;  %v7035_v45 = vld [vmem:[#allocation11 + $0xc0] ss:$16 sps:$4 sm:$0xff]   ;;  %v7043_v46 = vld [vmem:[#allocation11 + $0xa4] ss:$16 sps:$4 sm:$0xff]  }
  0xa6   :  { %6876 = vmatpush3.bf16.msra.mxu1 %v6976_v47  ;;  %6855 = vmatprep.subr.bf16.mxu0 %v6977_v48  ;;  %v7041_v47 = vld [vmem:[#allocation11 + $0xa0] ss:$16 sps:$4 sm:$0xff]   ;;  %v7049_v48 = vld [vmem:[#allocation11 + $0x84] ss:$16 sps:$4 sm:$0xff]  }
  0xa7   :  { %6877 = vmatprep.subr.bf16.mxu1 %v6978_v49  ;;  %841 = vmatprep.mubr.bf16.mxu0 %v207_v20  ;;  %v7047_v49 = vld [vmem:[#allocation11 + $0x80] ss:$16 sps:$4 sm:$0xff]  }
  0xa8   :  { %881 = vmatprep.mubr.bf16.mxu1 %v209_v21 }
  0xa9   :  { %6856 = vmatpush3.bf16.msra.mxu0 %v6979_v50  ;;  %v7055_v50 = vld [vmem:[#allocation11 + $0x64] ss:$16 sps:$4 sm:$0xff]  }
  0xaa   :  { %6878 = vmatpush3.bf16.msra.mxu1 %v6980_v51  ;;  %6857 = vmatprep.subr.bf16.mxu0 %v6981_v52  ;;  %v7053_v51 = vld [vmem:[#allocation11 + $0x60] ss:$16 sps:$4 sm:$0xff]   ;;  %v7061_v52 = vld [vmem:[#allocation11 + $0x44] ss:$16 sps:$4 sm:$0xff]  }
  0xab   :  { %6879 = vmatprep.subr.bf16.mxu1 %v6982_v53  ;;  %v7059_v53 = vld [vmem:[#allocation11 + $0x40] ss:$16 sps:$4 sm:$0xff]  }
  0xad   :  { %6858 = vmatpush3.bf16.msra.mxu0 %v6983_v54  ;;  %v7067_v54 = vld [vmem:[#allocation11 + $0x24] ss:$16 sps:$4 sm:$0xff]  }
  0xae   :  { %6880 = vmatpush3.bf16.msra.mxu1 %v6984_v55  ;;  %6859 = vmatprep.subr.bf16.mxu0 %v6985_v56  ;;  %v7065_v55 = vld [vmem:[#allocation11 + $0x20] ss:$16 sps:$4 sm:$0xff]   ;;  %v7073_v56 = vld [vmem:[#allocation11 + $0x4] ss:$16 sps:$4 sm:$0xff]  }
  0xaf   :  { %6881 = vmatprep.subr.bf16.mxu1 %v6986_v57  ;;  %v7071_v57 = vld [vmem:[#allocation11] ss:$16 sps:$4 sm:$0xff]  }
  0xb1   :  { %6860 = vmatpush3.bf16.msra.mxu0 %v6987_v58  ;;  %v7079_v58 = vld [vmem:[#allocation11 + $0x1e4] ss:$16 sps:$4 sm:$0xff]  }
  0xb2   :  { %6882 = vmatpush3.bf16.msra.mxu1 %v6988_v59  ;;  %6861 = vmatprep.subr.bf16.mxu0 %v6989_v60  ;;  %v7077_v59 = vld [vmem:[#allocation11 + $0x1e0] ss:$16 sps:$4 sm:$0xff]   ;;  %v7085_v60 = vld [vmem:[#allocation11 + $0x1c4] ss:$16 sps:$4 sm:$0xff]  }
  0xb3   :  { %6883 = vmatprep.subr.bf16.mxu1 %v6990_v61  ;;  %v7083_v61 = vld [vmem:[#allocation11 + $0x1c0] ss:$16 sps:$4 sm:$0xff]  }
  0xb5   :  { %6862 = vmatpush3.bf16.msra.mxu0 %v6991_v62  ;;  %v7091_v62 = vld [vmem:[#allocation11 + $0x1a4] ss:$16 sps:$4 sm:$0xff]  }
  0xb6   :  { %6884 = vmatpush3.bf16.msra.mxu1 %v6992_v63  ;;  %6863 = vmatprep.subr.bf16.mxu0 %v6993_v0  ;;  %v7089_v63 = vld [vmem:[#allocation11 + $0x1a0] ss:$16 sps:$4 sm:$0xff]   ;;  %v7097_v0 = vld [vmem:[#allocation11 + $0x184] ss:$16 sps:$4 sm:$0xff]  }
  0xb7   :  { %6885 = vmatprep.subr.bf16.mxu1 %v6994_v1  ;;  %v7095_v1 = vld [vmem:[#allocation11 + $0x180] ss:$16 sps:$4 sm:$0xff]  }
  0xb9   :  { %6864 = vmatpush3.bf16.msra.mxu0 %v6995_v2  ;;  %v7103_v2 = vld [vmem:[#allocation11 + $0x164] ss:$16 sps:$4 sm:$0xff]  }
  0xba   :  { %6886 = vmatpush3.bf16.msra.mxu1 %v6996_v3  ;;  %6865 = vmatprep.subr.bf16.mxu0 %v6997_v4  ;;  %v7101_v3 = vld [vmem:[#allocation11 + $0x160] ss:$16 sps:$4 sm:$0xff]   ;;  %v7109_v4 = vld [vmem:[#allocation11 + $0x144] ss:$16 sps:$4 sm:$0xff]  }
  0xbb   :  { %6887 = vmatprep.subr.bf16.mxu1 %v6998_v5  ;;  %v7107_v5 = vld [vmem:[#allocation11 + $0x140] ss:$16 sps:$4 sm:$0xff]  }
  0xbd   :  { %6866 = vmatpush3.bf16.msra.mxu0 %v6999_v6 }
  0xbe   :  { %6888 = vmatpush3.bf16.msra.mxu1 %v7000_v7  ;;  %6867 = vmatprep.subr.bf16.mxu0 %v7001_v8 }
  0xbf   :  { %6889 = vmatprep.subr.bf16.mxu1 %v7002_v9 }
  0xc1   :  { %6868 = vmatpush3.bf16.msra.mxu0 %v7003_v10 }
  0xc2   :  { %6890 = vmatpush3.bf16.msra.mxu1 %v7004_v11  ;;  %1000 = vmatprep.subr.bf16.mxu0 %v7007_v25 }
  0xc3   :  { %1451 = vmatprep.subr.bf16.mxu1 %v7031_v42  ;;  %v7064_v42 = vld [vmem:[#allocation11 + $0x4c] ss:$16 sps:$4 sm:$0xff]  }
  0xc4   :  { %842 = vmatmul.mubr.bf16.vlgmr.msra.gmra.mxu0 %v206_v22 }
  0xc5   :  { %882 = vmatmul.mubr.bf16.vlgmr.msra.gmra.mxu1 %v208_v23  ;;  %1001 = vmatpush1.bf16.msra.mxu0 %v7005_v24 }
  0xc6   :  { %1002 = vmatprep.subr.bf16.mxu0 %v7010_v27  ;;  %1032 = vmatprep.mubr.bf16.mxu0 %v7919_v40  ;;  %v7058_v40 = vld [vmem:[#allocation11 + $0x6c] ss:$16 sps:$4 sm:$0xff]  }
  0xc7   :  { %1452 = vmatpush1.bf16.msra.mxu1 %v7029_v41  ;;  %v7056_v41 = vld [vmem:[#allocation11 + $0x68] ss:$16 sps:$4 sm:$0xff]  }
  0xc8   :  { %1453 = vmatprep.subr.bf16.mxu1 %v7037_v44  ;;  %v7070_v44 = vld [vmem:[#allocation11 + $0x2c] ss:$16 sps:$4 sm:$0xff]  }
  0xc9   :  { %1003 = vmatpush1.bf16.msra.mxu0 %v7008_v26 }
  0xca   :  { %1004 = vmatprep.subr.bf16.mxu0 %v7013_v28 }
  0xcb   :  { %1454 = vmatpush1.bf16.msra.mxu1 %v7035_v45  ;;  %v7068_v45 = vld [vmem:[#allocation11 + $0x28] ss:$16 sps:$4 sm:$0xff]  }
  0xcc   :  { %1455 = vmatprep.subr.bf16.mxu1 %v7043_v46  ;;  %v7076_v46 = vld [vmem:[#allocation11 + $0xc] ss:$16 sps:$4 sm:$0xff]  }
  0xcd   :  { %1005 = vmatpush1.bf16.msra.mxu0 %v7011_v29 }
  0xce   :  { %1006 = vmatprep.subr.bf16.mxu0 %v7016_v30 }
  0xcf   :  { %1456 = vmatpush1.bf16.msra.mxu1 %v7041_v47  ;;  %v7074_v47 = vld [vmem:[#allocation11 + $0x8] ss:$16 sps:$4 sm:$0xff]  }
  0xd0   :  { %1457 = vmatprep.subr.bf16.mxu1 %v7049_v48  ;;  %v7082_v48 = vld [vmem:[#allocation11 + $0x1ec] ss:$16 sps:$4 sm:$0xff]  }
  0xd1   :  { %1007 = vmatpush1.bf16.msra.mxu0 %v7014_v31 }
  0xd2   :  { %1008 = vmatprep.subr.bf16.mxu0 %v7019_v32  ;;  %v7032_v32 = vld [vmem:[#allocation11 + $0xe8] ss:$16 sps:$4 sm:$0xff]  }
  0xd3   :  { %1458 = vmatpush1.bf16.msra.mxu1 %v7047_v49  ;;  %v7080_v49 = vld [vmem:[#allocation11 + $0x1e8] ss:$16 sps:$4 sm:$0xff]  }
  0xd4   :  { %1459 = vmatprep.subr.bf16.mxu1 %v7055_v50  ;;  %v7088_v50 = vld [vmem:[#allocation11 + $0x1cc] ss:$16 sps:$4 sm:$0xff]  }
  0xd5   :  { %1009 = vmatpush1.bf16.msra.mxu0 %v7017_v33 }
  0xd6   :  { %1010 = vmatprep.subr.bf16.mxu0 %v7022_v34  ;;  %v7040_v34 = vld [vmem:[#allocation11 + $0xcc] ss:$16 sps:$4 sm:$0xff]  }
  0xd7   :  { %1460 = vmatpush1.bf16.msra.mxu1 %v7053_v51  ;;  %v7086_v51 = vld [vmem:[#allocation11 + $0x1c8] ss:$16 sps:$4 sm:$0xff]  }
  0xd8   :  { %1461 = vmatprep.subr.bf16.mxu1 %v7061_v52  ;;  %v7094_v52 = vld [vmem:[#allocation11 + $0x1ac] ss:$16 sps:$4 sm:$0xff]  }
  0xd9   :  { %1011 = vmatpush1.bf16.msra.mxu0 %v7020_v35  ;;  %v7038_v35 = vld [vmem:[#allocation11 + $0xc8] ss:$16 sps:$4 sm:$0xff]  }
  0xda   :  { %1012 = vmatprep.subr.bf16.mxu0 %v7025_v36  ;;  %v7046_v36 = vld [vmem:[#allocation11 + $0xac] ss:$16 sps:$4 sm:$0xff]  }
  0xdb   :  { %1462 = vmatpush1.bf16.msra.mxu1 %v7059_v53  ;;  %v7092_v53 = vld [vmem:[#allocation11 + $0x1a8] ss:$16 sps:$4 sm:$0xff]  }
  0xdc   :  { %1463 = vmatprep.subr.bf16.mxu1 %v7067_v54  ;;  %v7100_v54 = vld [vmem:[#allocation11 + $0x18c] ss:$16 sps:$4 sm:$0xff]  }
  0xdd   :  { %1013 = vmatpush1.bf16.msra.mxu0 %v7023_v37  ;;  %v7044_v37 = vld [vmem:[#allocation11 + $0xa8] ss:$16 sps:$4 sm:$0xff]  }
  0xde   :  { %1014 = vmatprep.subr.bf16.mxu0 %v7028_v38  ;;  %v7052_v38 = vld [vmem:[#allocation11 + $0x8c] ss:$16 sps:$4 sm:$0xff]  }
  0xdf   :  { %1464 = vmatpush1.bf16.msra.mxu1 %v7065_v55  ;;  %v7098_v55 = vld [vmem:[#allocation11 + $0x188] ss:$16 sps:$4 sm:$0xff]  }
  0xe0   :  { %1465 = vmatprep.subr.bf16.mxu1 %v7073_v56  ;;  %v7106_v56 = vld [vmem:[#allocation11 + $0x16c] ss:$16 sps:$4 sm:$0xff]  }
  0xe1   :  { %1015 = vmatpush1.bf16.msra.mxu0 %v7026_v39  ;;  %v7050_v39 = vld [vmem:[#allocation11 + $0x88] ss:$16 sps:$4 sm:$0xff]  }
  0xe2   :  { %1492 = vmatprep.subr.bf16.mxu0 %v7034_v43  ;;  %v7062_v43 = vld [vmem:[#allocation11 + $0x48] ss:$16 sps:$4 sm:$0xff]  }
  0xe3   :  { %1466 = vmatpush1.bf16.msra.mxu1 %v7071_v57  ;;  %v7104_v57 = vld [vmem:[#allocation11 + $0x168] ss:$16 sps:$4 sm:$0xff]  }
  0xe4   :  { %1467 = vmatprep.subr.bf16.mxu1 %v7079_v58  ;;  %v7112_v58 = vld [vmem:[#allocation11 + $0x14c] ss:$16 sps:$4 sm:$0xff]  }
  0xe7   :  { %1468 = vmatpush2.bf16.msra.mxu1 %v7077_v59  ;;  %v7110_v59 = vld [vmem:[#allocation11 + $0x148] ss:$16 sps:$4 sm:$0xff]  }
  0xe8   :  { %1469 = vmatprep.subr.bf16.mxu1 %v7085_v60  ;;  %v7115_v60 = vld [vmem:[#allocation11 + $0x124] ss:$16 sps:$4 sm:$0xff]  }
  0xeb   :  { %1470 = vmatpush2.bf16.msra.mxu1 %v7083_v61  ;;  %v7118_v61 = vld [vmem:[#allocation11 + $0x12c] ss:$16 sps:$4 sm:$0xff]  }
  0xec   :  { %1471 = vmatprep.subr.bf16.mxu1 %v7091_v62  ;;  %v7113_v62 = vld [vmem:[#allocation11 + $0x120] ss:$16 sps:$4 sm:$0xff]  }
  0xef   :  { %1472 = vmatpush2.bf16.msra.mxu1 %v7089_v63  ;;  %v7116_v63 = vld [vmem:[#allocation11 + $0x128] ss:$16 sps:$4 sm:$0xff]  }
  0xf0   :  { %1473 = vmatprep.subr.bf16.mxu1 %v7097_v0  ;;  %v7121_v0 = vld [vmem:[#allocation11 + $0x104] ss:$16 sps:$4 sm:$0xff]  }
  0xf3   :  { %1474 = vmatpush2.bf16.msra.mxu1 %v7095_v1  ;;  %v7124_v1 = vld [vmem:[#allocation11 + $0x10c] ss:$16 sps:$4 sm:$0xff]  }
  0xf4   :  { %1475 = vmatprep.subr.bf16.mxu1 %v7103_v2  ;;  %v7119_v2 = vld [vmem:[#allocation11 + $0x100] ss:$16 sps:$4 sm:$0xff]  }
  0xf7   :  { %1476 = vmatpush2.bf16.msra.mxu1 %v7101_v3  ;;  %v7122_v3 = vld [vmem:[#allocation11 + $0x108] ss:$16 sps:$4 sm:$0xff]  }
  0xf8   :  { %1477 = vmatprep.subr.bf16.mxu1 %v7109_v4  ;;  %v1597_v4 = vld [vmem:[#allocation13 + $0x1c0] sm:$0xff] }
  0xfb   :  { %1478 = vmatpush2.bf16.msra.mxu1 %v7107_v5  ;;  %v1601_v5 = vld [vmem:[#allocation13 + $0x1e0] sm:$0xff] }
  0xfc   :  { %1479 = vmatprep.subr.bf16.mxu1 %v7115_v60  ;;  %v1561_v60 = vld [vmem:[#allocation13 + $0xa0] sm:$0xff] }
  0xff   :  { %1480 = vmatpush2.bf16.msra.mxu1 %v7113_v62  ;;  %v1689_v62 = vld [vmem:[#allocation13 + $0x4a0] sm:$0xff] }
 0x100   :  { %1481 = vmatprep.subr.bf16.mxu1 %v7121_v0 }
 0x103   :  { %1482 = vmatpush2.bf16.msra.mxu1 %v7119_v2 }
 0x164   :  { %v6825_v6 = vpop.f32.mrf.mxu0 }
 0x165   :  { %v6847_v7 = vpop.f32.mrf.mxu1 }
 0x166   :  { %v6826_v8 = vpop.f32.mrf.mxu0 }
 0x167   :  { %v6848_v9 = vpop.f32.mrf.mxu1  ;;  %v6827_v14 = vadd.f32 %v6826_v8, %v6825_v6  ;;  %v1725_v6 = vld [vmem:[#allocation13 + $0x5c0] sm:$0xff]  ;;  %v6273_v8 = vcombine.high %v1597_v4, %v1601_v5 }
 0x168   :  { %v6828_v10 = vpop.f32.mrf.mxu0  ;;  %v6849_v17 = vadd.f32 %v6848_v9, %v6847_v7  ;;  %v6272_v7 = vcombine.low %v1597_v4, %v1601_v5  ;;  %v1729_v9 = vld [vmem:[#allocation13 + $0x5e0] sm:$0xff] }
 0x169   :  { %v6850_v11 = vpop.f32.mrf.mxu1  ;;  %v764_v16 = vadd.f32 %v6827_v14, %v6071_v15  ;;  %v6400_v10 = vcombine.low %v1725_v6, %v1729_v9  ;;  %3119 = vmatprep.subr.bf16.mxu1 %v6273_v8  ;;  %v908_v15 = vld [vmem:[#allocation10] sm:$0x3]  ;;  %v1553_v4 = vld [vmem:[#allocation13 + $0x60] sm:$0xff] }
 0x16a   :  { %v6829_v12 = vpop.f32.mrf.mxu0  ;;  %v6401_v11 = vcombine.high %v1725_v6, %v1729_v9  ;;  %v1677_v5 = vld [vmem:[#allocation13 + $0x440] sm:$0xff] }
 0x16b   :  { %v6851_v13 = vpop.f32.mrf.mxu1  ;;  %v804_v21 = vadd.f32 %v6849_v17, %v764_v16  ;;  %v910_v12 = vlaneseq  ;;  %v1681_v6 = vld [vmem:[#allocation13 + $0x460] sm:$0xff] }
 0x16d   :  { %v8055_v13 = vshrl.u32 %v910_v12, 7  ;;  %v1545_v12 = vld [vmem:[#allocation13 + $0x20] sm:$0xff] }
 0x16f   :  { %v8058_v14 = vsub.s32 0, %v8055_v13  ;;  %v8061_v16 = vsub.s32 1, %v8055_v13 }
 0x171   :  { %v913_v17 = vrot.slane %v908_v15, %v8058_v14 }
 0x184   :  { %v6869_v18 = vpop.f32.mrf.mxu0 }
 0x185   :  { %v6891_v19 = vpop.f32.mrf.mxu1 }
 0x186   :  { %v6870_v20 = vpop.f32.mrf.mxu0 }
 0x187   :  { %v6871_v22 = vadd.f32 %v6870_v20, %v6869_v18  ;;  %v6892_v23 = vpop.f32.mrf.mxu1  ;;  %v917_v18 = vrot.slane %v908_v15, %v8061_v16  ;;  %v1669_v15 = vld [vmem:[#allocation13 + $0x400] sm:$0xff] }
 0x188   :  { %v6872_v24 = vpop.f32.mrf.mxu0  ;;  %v6893_v26 = vadd.f32 %v6892_v23, %v6891_v19 }
 0x189   :  { %v844_v25 = vadd.f32 %v6871_v22, %v804_v21  ;;  %v6894_v27 = vpop.f32.mrf.mxu1 }
 0x18a   :  { %v6873_v28 = vpop.f32.mrf.mxu0  ;;  %v1593_v27 = vld [vmem:[#allocation13 + $0x1a0] sm:$0xff] }
 0x18b   :  { %v884_v29 = vadd.f32 %v6893_v26, %v844_v25  ;;  %v6895_v30 = vpop.f32.mrf.mxu1  ;;  %v1589_v25 = vld [vmem:[#allocation13 + $0x180] sm:$0xff] }
 0x18c   :  { %v1717_v28 = vld [vmem:[#allocation13 + $0x580] sm:$0xff] }
 0x18d   :  { %7621 = vtanh.f32 %v884_v29  ;;  %v1721_v29 = vld [vmem:[#allocation13 + $0x5a0] sm:$0xff] }
 0x19a   :  { %v7622_v31 = vpop.eup %7621 }
 0x19b   :  { %890 = vst [vmem:[#allocation19] sm:$0xff] %v7622_v31  ;;  %v891_v33 = vpack.c.bf16 %v7622_v31, %v7622_v31 }
 0x19d   :  { %1033 = vmatmul.mubr.bf16.vlgmr.msra.gmra.mxu0 %v891_v33  ;;  %v6265_v33 = vcombine.high %v1589_v25, %v1593_v27 }
 0x19e   :  { %1493 = vmatpush1.bf16.msra.mxu0 %v7032_v32 }
 0x19f   :  { %1494 = vmatprep.subr.bf16.mxu0 %v7040_v34  ;;  %v6393_v34 = vcombine.high %v1717_v28, %v1721_v29 }
 0x1a2   :  { %1495 = vmatpush1.bf16.msra.mxu0 %v7038_v35  ;;  %v1581_v35 = vld [vmem:[#allocation13 + $0x140] sm:$0xff] }
 0x1a3   :  { %1496 = vmatprep.subr.bf16.mxu0 %v7046_v36  ;;  %v1585_v36 = vld [vmem:[#allocation13 + $0x160] sm:$0xff] }
 0x1a6   :  { %1497 = vmatpush1.bf16.msra.mxu0 %v7044_v37  ;;  %v1709_v37 = vld [vmem:[#allocation13 + $0x540] sm:$0xff] }
 0x1a7   :  { %1498 = vmatprep.subr.bf16.mxu0 %v7052_v38  ;;  %v1713_v38 = vld [vmem:[#allocation13 + $0x560] sm:$0xff] }
 0x1aa   :  { %1499 = vmatpush1.bf16.msra.mxu0 %v7050_v39  ;;  %v6264_v39 = vcombine.low %v1589_v25, %v1593_v27  ;;  %v1793_v25 = vld [vmem:[#allocation13 + $0x7e0] sm:$0xff] }
 0x1ab   :  { %1500 = vmatprep.subr.bf16.mxu0 %v7058_v40  ;;  %v6392_v40 = vcombine.low %v1717_v28, %v1721_v29 }
 0x1ae   :  { %1501 = vmatpush1.bf16.msra.mxu0 %v7056_v41  ;;  %v6257_v41 = vcombine.high %v1581_v35, %v1585_v36 }
 0x1af   :  { %1502 = vmatprep.subr.bf16.mxu0 %v7064_v42  ;;  %v6385_v42 = vcombine.high %v1709_v37, %v1713_v38 }
 0x1b2   :  { %1503 = vmatpush1.bf16.msra.mxu0 %v7062_v43  ;;  %v1573_v43 = vld [vmem:[#allocation13 + $0x100] sm:$0xff] }
 0x1b3   :  { %1504 = vmatprep.subr.bf16.mxu0 %v7070_v44  ;;  %v1577_v44 = vld [vmem:[#allocation13 + $0x120] sm:$0xff] }
 0x1b6   :  { %1505 = vmatpush1.bf16.msra.mxu0 %v7068_v45  ;;  %v1701_v45 = vld [vmem:[#allocation13 + $0x500] sm:$0xff] }
 0x1b7   :  { %1506 = vmatprep.subr.bf16.mxu0 %v7076_v46  ;;  %v1705_v46 = vld [vmem:[#allocation13 + $0x520] sm:$0xff] }
 0x1ba   :  { %1507 = vmatpush1.bf16.msra.mxu0 %v7074_v47  ;;  %v6256_v47 = vcombine.low %v1581_v35, %v1585_v36 }
 0x1bb   :  { %1508 = vmatprep.subr.bf16.mxu0 %v7082_v48  ;;  %v6384_v48 = vcombine.low %v1709_v37, %v1713_v38  ;;  %v1645_v38 = vld [vmem:[#allocation13 + $0x340] sm:$0xff] }
 0x1be   :  { %1509 = vmatpush2.bf16.msra.mxu0 %v7080_v49  ;;  %v6249_v49 = vcombine.high %v1573_v43, %v1577_v44 }
 0x1bf   :  { %1510 = vmatprep.subr.bf16.mxu0 %v7088_v50  ;;  %v6377_v50 = vcombine.high %v1701_v45, %v1705_v46 }
 0x1c2   :  { %1511 = vmatpush2.bf16.msra.mxu0 %v7086_v51  ;;  %v1565_v51 = vld [vmem:[#allocation13 + $0xc0] sm:$0xff] }
 0x1c3   :  { %1512 = vmatprep.subr.bf16.mxu0 %v7094_v52  ;;  %v1569_v52 = vld [vmem:[#allocation13 + $0xe0] sm:$0xff] }
 0x1c6   :  { %1513 = vmatpush2.bf16.msra.mxu0 %v7092_v53  ;;  %v1693_v53 = vld [vmem:[#allocation13 + $0x4c0] sm:$0xff] }
 0x1c7   :  { %1514 = vmatprep.subr.bf16.mxu0 %v7100_v54  ;;  %v1697_v54 = vld [vmem:[#allocation13 + $0x4e0] sm:$0xff] }
 0x1c8   :  { %v6368_v0 = vcombine.low %v1693_v53, %v1697_v54 }
 0x1ca   :  { %1515 = vmatpush2.bf16.msra.mxu0 %v7098_v55  ;;  %v6248_v55 = vcombine.low %v1573_v43, %v1577_v44 }
 0x1cb   :  { %1516 = vmatprep.subr.bf16.mxu0 %v7106_v56  ;;  %v6376_v56 = vcombine.low %v1701_v45, %v1705_v46  ;;  %v1637_v46 = vld [vmem:[#allocation13 + $0x300] sm:$0xff] }
 0x1ce   :  { %1517 = vmatpush2.bf16.msra.mxu0 %v7104_v57  ;;  %v6241_v57 = vcombine.high %v1565_v51, %v1569_v52 }
 0x1cf   :  { %1518 = vmatprep.subr.bf16.mxu0 %v7112_v58  ;;  %v6369_v58 = vcombine.high %v1693_v53, %v1697_v54  ;;  %v1629_v54 = vld [vmem:[#allocation13 + $0x2c0] sm:$0xff] }
 0x1d2   :  { %1519 = vmatpush2.bf16.msra.mxu0 %v7110_v59  ;;  %v1557_v59 = vld [vmem:[#allocation13 + $0x80] sm:$0xff] }
 0x1d3   :  { %1520 = vmatprep.subr.bf16.mxu0 %v7118_v61  ;;  %v1685_v61 = vld [vmem:[#allocation13 + $0x480] sm:$0xff] }
 0x1d4   :  { %v6361_v2 = vcombine.high %v1685_v61, %v1689_v62  ;;  %v6360_v8 = vcombine.low %v1685_v61, %v1689_v62  ;;  %v1621_v62 = vld [vmem:[#allocation13 + $0x280] sm:$0xff] }
 0x1d6   :  { %1521 = vmatpush2.bf16.msra.mxu0 %v7116_v63  ;;  %v6240_v63 = vcombine.low %v1565_v51, %v1569_v52 }
 0x1d7   :  { %1522 = vmatprep.subr.bf16.mxu0 %v7124_v1  ;;  %v6233_v1 = vcombine.high %v1557_v59, %v1561_v60 }
 0x1da   :  { %1523 = vmatpush2.bf16.msra.mxu0 %v7122_v3  ;;  %v1549_v3 = vld [vmem:[#allocation13 + $0x40] sm:$0xff] }
 0x1db   :  { %3160 = vmatprep.subr.bf16.mxu0 %v6401_v11  ;;  %v6225_v9 = vcombine.high %v1549_v3, %v1553_v4  ;;  %v1541_v11 = vld [vmem:[#allocation13] sm:$0xff] }
 0x25d   :  { %v1034_v19 = vpop.f32.mrf.mxu0 }
 0x25e   :  { %v1035_v20 = vadd.f32 %v1034_v19, %v913_v17  ;;  %v1673_v17 = vld [vmem:[#allocation13 + $0x420] sm:$0xff]  ;;  %v6352_v19 = vcombine.low %v1677_v5, %v1681_v6 }
 0x25f   :  { %v1036_v21 = vpop.f32.mrf.mxu0  ;;  %v6344_v27 = vcombine.low %v1669_v15, %v1673_v17 }
 0x260   :  { %v1037_v22 = vadd.f32 %v1036_v21, %v917_v18  ;;  %v1041_v23 = vmax.f32 %v1035_v20, 0.0  ;;  %v6224_v18 = vcombine.low %v1549_v3, %v1553_v4  ;;  %v6217_v20 = vcombine.high %v1541_v11, %v1545_v12 }
 0x261   :  { %v1038_v24 = vpop.f32.mrf.mxu0  ;;  %v6345_v21 = vcombine.high %v1669_v15, %v1673_v17 }
 0x262   :  { %v1042_v26 = vmax.f32 %v1037_v22, 0.0  ;;  %v1043_v32 = vpack.c.bf16 %v1041_v23, %v1041_v23  ;;  %v1661_v22 = vld [vmem:[#allocation13 + $0x3c0] sm:$0xff] }
 0x263   :  { %v1039_v30 = vpop.f32.mrf.mxu0  ;;  %v1665_v23 = vld [vmem:[#allocation13 + $0x3e0] sm:$0xff] }
 0x264   :  { %v1044_v31 = vpack.c.bf16 %v1042_v26, %v1042_v26  ;;  %v1789_v24 = vld [vmem:[#allocation13 + $0x7c0] sm:$0xff]  ;;  %v6216_v26 = vcombine.low %v1541_v11, %v1545_v12  ;;  %v6337_v28 = vcombine.high %v1661_v22, %v1665_v23 }
 0x265   :  { %v6465_v29 = vcombine.high %v1789_v24, %v1793_v25  ;;  %v1653_v30 = vld [vmem:[#allocation13 + $0x380] sm:$0xff]  ;;  %v6464_v35 = vcombine.low %v1789_v24, %v1793_v25 }
 0x266   :  { %1483 = vmatprep.mubr.bf16.mxu1 %v1044_v31  ;;  %1524 = vmatprep.mubr.bf16.mxu0 %v1044_v31  ;;  %v1657_v31 = vld [vmem:[#allocation13 + $0x3a0] sm:$0xff] }
 0x267   :  { %1484 = vmatmul.mubr.bf16.vlgmr.msra.gmra.mxu1 %v1043_v32  ;;  %1525 = vmatmul.mubr.bf16.vlgmr.msra.gmra.mxu0 %v1043_v32  ;;  %v1781_v32 = vld [vmem:[#allocation13 + $0x780] sm:$0xff]  ;;  %v6329_v36 = vcombine.high %v1653_v30, %v1657_v31 }
 0x268   :  { %3120 = vmatpush1.bf16.msra.mxu1 %v6272_v7  ;;  %3161 = vmatpush1.bf16.msra.mxu0 %v6400_v10  ;;  %v6232_v7 = vcombine.low %v1557_v59, %v1561_v60  ;;  %v6353_v10 = vcombine.high %v1677_v5, %v1681_v6  ;;  %v1745_v12 = vld [vmem:[#allocation13 + $0x660] sm:$0xff] }
 0x269   :  { %3121 = vmatprep.subr.bf16.mxu1 %v6265_v33  ;;  %3162 = vmatprep.subr.bf16.mxu0 %v6393_v34  ;;  %v1785_v33 = vld [vmem:[#allocation13 + $0x7a0] sm:$0xff]  ;;  %v6336_v34 = vcombine.low %v1661_v22, %v1665_v23 }
 0x26a   :  { %v6457_v37 = vcombine.high %v1781_v32, %v1785_v33  ;;  %v6456_v43 = vcombine.low %v1781_v32, %v1785_v33  ;;  %v1737_v23 = vld [vmem:[#allocation13 + $0x620] sm:$0xff] }
 0x26c   :  { %3122 = vmatpush1.bf16.msra.mxu1 %v6264_v39  ;;  %3163 = vmatpush1.bf16.msra.mxu0 %v6392_v40  ;;  %v1649_v39 = vld [vmem:[#allocation13 + $0x360] sm:$0xff] }
 0x26d   :  { %3123 = vmatprep.subr.bf16.mxu1 %v6257_v41  ;;  %3164 = vmatprep.subr.bf16.mxu0 %v6385_v42  ;;  %v1773_v40 = vld [vmem:[#allocation13 + $0x740] sm:$0xff]  ;;  %v6328_v42 = vcombine.low %v1653_v30, %v1657_v31  ;;  %v6321_v44 = vcombine.high %v1645_v38, %v1649_v39  ;;  %v1730_v31 = vld [vmem:[#allocation13 + $0x5e8] sm:$0xff] }
 0x26e   :  { %v1777_v41 = vld [vmem:[#allocation13 + $0x760] sm:$0xff] }
 0x26f   :  { %v6449_v45 = vcombine.high %v1773_v40, %v1777_v41  ;;  %v6448_v51 = vcombine.low %v1773_v40, %v1777_v41 }
 0x270   :  { %3124 = vmatpush1.bf16.msra.mxu1 %v6256_v47  ;;  %3165 = vmatpush1.bf16.msra.mxu0 %v6384_v48  ;;  %v1641_v47 = vld [vmem:[#allocation13 + $0x320] sm:$0xff] }
 0x271   :  { %3125 = vmatprep.subr.bf16.mxu1 %v6249_v49  ;;  %3166 = vmatprep.subr.bf16.mxu0 %v6377_v50  ;;  %v1765_v48 = vld [vmem:[#allocation13 + $0x700] sm:$0xff]  ;;  %v6320_v50 = vcombine.low %v1645_v38, %v1649_v39  ;;  %v6313_v52 = vcombine.high %v1637_v46, %v1641_v47 }
 0x272   :  { %v1769_v49 = vld [vmem:[#allocation13 + $0x720] sm:$0xff] }
 0x273   :  { %v6441_v53 = vcombine.high %v1765_v48, %v1769_v49  ;;  %v6440_v59 = vcombine.low %v1765_v48, %v1769_v49 }
 0x274   :  { %3126 = vmatpush1.bf16.msra.mxu1 %v6248_v55  ;;  %3167 = vmatpush1.bf16.msra.mxu0 %v6376_v56  ;;  %v1633_v55 = vld [vmem:[#allocation13 + $0x2e0] sm:$0xff] }
 0x275   :  { %3127 = vmatprep.subr.bf16.mxu1 %v6241_v57  ;;  %3168 = vmatprep.subr.bf16.mxu0 %v6369_v58  ;;  %v1757_v56 = vld [vmem:[#allocation13 + $0x6c0] sm:$0xff]  ;;  %v6312_v58 = vcombine.low %v1637_v46, %v1641_v47  ;;  %v6305_v60 = vcombine.high %v1629_v54, %v1633_v55 }
 0x276   :  { %v1761_v57 = vld [vmem:[#allocation13 + $0x6e0] sm:$0xff] }
 0x277   :  { %v6433_v61 = vcombine.high %v1757_v56, %v1761_v57  ;;  %v6432_v3 = vcombine.low %v1757_v56, %v1761_v57  ;;  %v1590_v56 = vld [vmem:[#allocation13 + $0x188] sm:$0xff] }
 0x278   :  { %3128 = vmatpush1.bf16.msra.mxu1 %v6240_v63  ;;  %3169 = vmatpush1.bf16.msra.mxu0 %v6368_v0  ;;  %v1625_v63 = vld [vmem:[#allocation13 + $0x2a0] sm:$0xff] }
 0x279   :  { %3129 = vmatprep.subr.bf16.mxu1 %v6233_v1  ;;  %3170 = vmatprep.subr.bf16.mxu0 %v6361_v2  ;;  %v1749_v0 = vld [vmem:[#allocation13 + $0x680] sm:$0xff]  ;;  %v6304_v2 = vcombine.low %v1629_v54, %v1633_v55  ;;  %v6297_v4 = vcombine.high %v1621_v62, %v1625_v63  ;;  %v6296_v6 = vcombine.low %v1621_v62, %v1625_v63 }
 0x27a   :  { %v1753_v1 = vld [vmem:[#allocation13 + $0x6a0] sm:$0xff] }
 0x27b   :  { %v6425_v5 = vcombine.high %v1749_v0, %v1753_v1 }
 0x27c   :  { %3130 = vmatpush1.bf16.msra.mxu1 %v6232_v7  ;;  %3171 = vmatpush1.bf16.msra.mxu0 %v6360_v8  ;;  %v6424_v7 = vcombine.low %v1749_v0, %v1753_v1  ;;  %v1613_v8 = vld [vmem:[#allocation13 + $0x240] sm:$0xff] }
 0x27d   :  { %3131 = vmatprep.subr.bf16.mxu1 %v6225_v9  ;;  %3172 = vmatprep.subr.bf16.mxu0 %v6353_v10  ;;  %v1617_v9 = vld [vmem:[#allocation13 + $0x260] sm:$0xff] }
 0x27e   :  { %v1741_v10 = vld [vmem:[#allocation13 + $0x640] sm:$0xff]  ;;  %v6289_v11 = vcombine.high %v1613_v8, %v1617_v9  ;;  %v6288_v15 = vcombine.low %v1613_v8, %v1617_v9 }
 0x27f   :  { %v6416_v17 = vcombine.low %v1741_v10, %v1745_v12 }
 0x280   :  { %3132 = vmatpush1.bf16.msra.mxu1 %v6224_v18  ;;  %3173 = vmatpush1.bf16.msra.mxu0 %v6352_v19  ;;  %v6417_v18 = vcombine.high %v1741_v10, %v1745_v12  ;;  %v1605_v19 = vld [vmem:[#allocation13 + $0x200] sm:$0xff]  ;;  %v1574_v12 = vld [vmem:[#allocation13 + $0x108] sm:$0xff] }
 0x281   :  { %3133 = vmatprep.subr.bf16.mxu1 %v6217_v20  ;;  %3174 = vmatprep.subr.bf16.mxu0 %v6345_v21  ;;  %v1609_v20 = vld [vmem:[#allocation13 + $0x220] sm:$0xff] }
 0x282   :  { %v1733_v21 = vld [vmem:[#allocation13 + $0x600] sm:$0xff]  ;;  %v6281_v22 = vcombine.high %v1605_v19, %v1609_v20  ;;  %v6280_v24 = vcombine.low %v1605_v19, %v1609_v20 }
 0x283   :  { %v6408_v25 = vcombine.low %v1733_v21, %v1737_v23 }
 0x284   :  { %3134 = vmatpush1.bf16.msra.mxu1 %v6216_v26  ;;  %3175 = vmatpush1.bf16.msra.mxu0 %v6344_v27  ;;  %v6409_v26 = vcombine.high %v1733_v21, %v1737_v23  ;;  %v1598_v27 = vld [vmem:[#allocation13 + $0x1c8] sm:$0xff] }
 0x285   :  { %3135 = vmatprep.subr.bf16.mxu1 %v6337_v28  ;;  %3176 = vmatprep.subr.bf16.mxu0 %v6465_v29  ;;  %v1602_v28 = vld [vmem:[#allocation13 + $0x1e8] sm:$0xff] }
 0x286   :  { %v1726_v29 = vld [vmem:[#allocation13 + $0x5c8] sm:$0xff]  ;;  %v6275_v30 = vcombine.high %v1598_v27, %v1602_v28  ;;  %v6274_v32 = vcombine.low %v1598_v27, %v1602_v28 }
 0x287   :  { %v6402_v33 = vcombine.low %v1726_v29, %v1730_v31  ;;  %v1566_v23 = vld [vmem:[#allocation13 + $0xc8] sm:$0xff] }
 0x288   :  { %3136 = vmatpush2.bf16.msra.mxu1 %v6336_v34  ;;  %3177 = vmatpush2.bf16.msra.mxu0 %v6464_v35  ;;  %v6403_v34 = vcombine.high %v1726_v29, %v1730_v31  ;;  %v8066_v35 = vsub.s32 2, %v8055_v13  ;;  %v1558_v31 = vld [vmem:[#allocation13 + $0x88] sm:$0xff] }
 0x289   :  { %3137 = vmatprep.subr.bf16.mxu1 %v6329_v36  ;;  %3178 = vmatprep.subr.bf16.mxu0 %v6457_v37  ;;  %v1109_v36 = vld [vmem:[%s8205_s6] sm:$0xf]  ;;  %v8072_v37 = vsub.s32 3, %v8055_v13 }
 0x28a   :  { %v1114_v38 = vrot.slane %v1109_v36, %v8058_v14  ;;  %v1122_v39 = vrot.slane %v1109_v36, %v8066_v35  ;;  %v1118_v40 = vrot.slane %v1109_v36, %v8061_v16 }
 0x28b   :  { %v1126_v41 = vrot.slane %v1109_v36, %v8072_v37 }
 0x28c   :  { %3138 = vmatpush2.bf16.msra.mxu1 %v6328_v42  ;;  %3179 = vmatpush2.bf16.msra.mxu0 %v6456_v43 }
 0x28d   :  { %3139 = vmatprep.subr.bf16.mxu1 %v6321_v44  ;;  %3180 = vmatprep.subr.bf16.mxu0 %v6449_v45 }
 0x290   :  { %3140 = vmatpush2.bf16.msra.mxu1 %v6320_v50  ;;  %3181 = vmatpush2.bf16.msra.mxu0 %v6448_v51 }
 0x291   :  { %3141 = vmatprep.subr.bf16.mxu1 %v6313_v52  ;;  %3182 = vmatprep.subr.bf16.mxu0 %v6441_v53 }
 0x294   :  { %3142 = vmatpush2.bf16.msra.mxu1 %v6312_v58  ;;  %3183 = vmatpush2.bf16.msra.mxu0 %v6440_v59  ;;  %v1594_v59 = vld [vmem:[#allocation13 + $0x1a8] sm:$0xff] }
 0x295   :  { %3143 = vmatprep.subr.bf16.mxu1 %v6305_v60  ;;  %3184 = vmatprep.subr.bf16.mxu0 %v6433_v61  ;;  %v1718_v60 = vld [vmem:[#allocation13 + $0x588] sm:$0xff]  ;;  %v6266_v8 = vcombine.low %v1590_v56, %v1594_v59 }
 0x296   :  { %v1722_v61 = vld [vmem:[#allocation13 + $0x5a8] sm:$0xff] }
 0x297   :  { %v6394_v9 = vcombine.low %v1718_v60, %v1722_v61 }
 0x298   :  { %3144 = vmatpush2.bf16.msra.mxu1 %v6304_v2  ;;  %3185 = vmatpush2.bf16.msra.mxu0 %v6432_v3  ;;  %v1582_v2 = vld [vmem:[#allocation13 + $0x148] sm:$0xff]  ;;  %v6267_v3 = vcombine.high %v1590_v56, %v1594_v59 }
 0x299   :  { %3145 = vmatprep.subr.bf16.mxu1 %v6297_v4  ;;  %3186 = vmatprep.subr.bf16.mxu0 %v6425_v5  ;;  %v6395_v4 = vcombine.high %v1718_v60, %v1722_v61  ;;  %v1586_v5 = vld [vmem:[#allocation13 + $0x168] sm:$0xff] }
 0x29a   :  { %v6259_v10 = vcombine.high %v1582_v2, %v1586_v5  ;;  %v6258_v19 = vcombine.low %v1582_v2, %v1586_v5  ;;  %v1790_v59 = vld [vmem:[#allocation13 + $0x7c8] sm:$0xff] }
 0x29b   :  { %v1794_v60 = vld [vmem:[#allocation13 + $0x7e8] sm:$0xff] }
 0x29c   :  { %3146 = vmatpush2.bf16.msra.mxu1 %v6296_v6  ;;  %3187 = vmatpush2.bf16.msra.mxu0 %v6424_v7  ;;  %v1710_v6 = vld [vmem:[#allocation13 + $0x548] sm:$0xff] }
 0x29d   :  { %3147 = vmatprep.subr.bf16.mxu1 %v6289_v11  ;;  %3188 = vmatprep.subr.bf16.mxu0 %v6417_v18  ;;  %v1714_v7 = vld [vmem:[#allocation13 + $0x568] sm:$0xff] }
 0x29e   :  { %v6387_v11 = vcombine.high %v1710_v6, %v1714_v7  ;;  %v1706_v18 = vld [vmem:[#allocation13 + $0x528] sm:$0xff]  ;;  %v6386_v20 = vcombine.low %v1710_v6, %v1714_v7 }
 0x29f   :  { %v1654_v5 = vld [vmem:[#allocation13 + $0x388] sm:$0xff] }
 0x2a0   :  { %3148 = vmatpush2.bf16.msra.mxu1 %v6288_v15  ;;  %3189 = vmatpush2.bf16.msra.mxu0 %v6416_v17  ;;  %v1578_v15 = vld [vmem:[#allocation13 + $0x128] sm:$0xff] }
 0x2a1   :  { %3149 = vmatprep.subr.bf16.mxu1 %v6281_v22  ;;  %3190 = vmatprep.subr.bf16.mxu0 %v6409_v26  ;;  %v1702_v17 = vld [vmem:[#allocation13 + $0x508] sm:$0xff]  ;;  %v6251_v21 = vcombine.high %v1574_v12, %v1578_v15  ;;  %v6250_v27 = vcombine.low %v1574_v12, %v1578_v15 }
 0x2a2   :  { %v6379_v22 = vcombine.high %v1702_v17, %v1706_v18  ;;  %v1698_v26 = vld [vmem:[#allocation13 + $0x4e8] sm:$0xff]  ;;  %v6378_v28 = vcombine.low %v1702_v17, %v1706_v18 }
 0x2a3   :  { %v1658_v6 = vld [vmem:[#allocation13 + $0x3a8] sm:$0xff] }
 0x2a4   :  { %3150 = vmatpush2.bf16.msra.mxu1 %v6280_v24  ;;  %3191 = vmatpush2.bf16.msra.mxu0 %v6408_v25  ;;  %v1570_v24 = vld [vmem:[#allocation13 + $0xe8] sm:$0xff] }
 0x2a5   :  { %3201 = vmatprep.subr.bf16.mxu1 %v6275_v30  ;;  %3242 = vmatprep.subr.bf16.mxu0 %v6403_v34  ;;  %v1694_v25 = vld [vmem:[#allocation13 + $0x4c8] sm:$0xff]  ;;  %v6243_v29 = vcombine.high %v1566_v23, %v1570_v24  ;;  %v6242_v36 = vcombine.low %v1566_v23, %v1570_v24 }
 0x2a6   :  { %v6371_v30 = vcombine.high %v1694_v25, %v1698_v26  ;;  %v1690_v34 = vld [vmem:[#allocation13 + $0x4a8] sm:$0xff] }
 0x2a7   :  { %v1782_v7 = vld [vmem:[#allocation13 + $0x788] sm:$0xff] }
 0x2a8   :  { %v1646_v15 = vld [vmem:[#allocation13 + $0x348] sm:$0xff] }
 0x2a9   :  { %v1650_v17 = vld [vmem:[#allocation13 + $0x368] sm:$0xff] }
 0x2aa   :  { %v1774_v18 = vld [vmem:[#allocation13 + $0x748] sm:$0xff] }
 0x2ab   :  { %v1638_v24 = vld [vmem:[#allocation13 + $0x308] sm:$0xff] }
 0x327   :  { %v1485_v42 = vpop.f32.mrf.mxu1  ;;  %v1526_v43 = vpop.f32.mrf.mxu0 }
 0x328   :  { %v1486_v44 = vadd.f32 %v1485_v42, %v1114_v38  ;;  %v1527_v45 = vadd.f32 %v1526_v43, %v1122_v39  ;;  %v6370_v38 = vcombine.low %v1694_v25, %v1698_v26  ;;  %v1554_v42 = vld [vmem:[#allocation13 + $0x68] sm:$0xff] }
 0x329   :  { %v1487_v46 = vpop.f32.mrf.mxu1  ;;  %v1528_v47 = vpop.f32.mrf.mxu0  ;;  %v1678_v43 = vld [vmem:[#allocation13 + $0x448] sm:$0xff] }
 0x32a   :  { %v1488_v48 = vadd.f32 %v1487_v46, %v1118_v40  ;;  %v1529_v49 = vadd.f32 %v1528_v47, %v1126_v41  ;;  %v1533_v50 = vmax.f32 %v1486_v44, 0.0  ;;  %v1535_v51 = vmax.f32 %v1527_v45, 0.0  ;;  %v1550_v41 = vld [vmem:[#allocation13 + $0x48] sm:$0xff] }
 0x32b   :  { %v1489_v52 = vpop.f32.mrf.mxu1  ;;  %v1530_v53 = vpop.f32.mrf.mxu0  ;;  %v1682_v44 = vld [vmem:[#allocation13 + $0x468] sm:$0xff]  ;;  %v6227_v47 = vcombine.high %v1550_v41, %v1554_v42 }
 0x32c   :  { %v1534_v54 = vmax.f32 %v1488_v48, 0.0  ;;  %v1536_v55 = vmax.f32 %v1529_v49, 0.0  ;;  %v8082_v0 = vpack.c.bf16 %v1533_v50, %v1533_v50  ;;  %v8084_v1 = vpack.c.bf16 %v1535_v51, %v1535_v51  ;;  %v1542_v49 = vld [vmem:[#allocation13 + $0x8] sm:$0xff] }
 0x32d   :  { %v1490_v57 = vpop.f32.mrf.mxu1  ;;  %v1531_v58 = vpop.f32.mrf.mxu0  ;;  %v6355_v48 = vcombine.high %v1678_v43, %v1682_v44  ;;  %v1546_v50 = vld [vmem:[#allocation13 + $0x28] sm:$0xff]  ;;  %v6226_v53 = vcombine.low %v1550_v41, %v1554_v42 }
 0x32e   :  { %v8078_v62 = vpack.c.bf16 %v1534_v54, %v1534_v54  ;;  %v8080_v63 = vpack.c.bf16 %v1536_v55, %v1536_v55  ;;  %v1670_v51 = vld [vmem:[#allocation13 + $0x408] sm:$0xff]  ;;  %v6354_v54 = vcombine.low %v1678_v43, %v1682_v44  ;;  %v6219_v55 = vcombine.high %v1542_v49, %v1546_v50 }
 0x32f   :  { %v1674_v52 = vld [vmem:[#allocation13 + $0x428] sm:$0xff]  ;;  %v6218_v61 = vcombine.low %v1542_v49, %v1546_v50 }
 0x330   :  { %3151 = vmatprep.mubr.bf16.mxu1 %v8078_v62  ;;  %3192 = vmatprep.mubr.bf16.mxu0 %v8080_v63  ;;  %v6347_v56 = vcombine.high %v1670_v51, %v1674_v52  ;;  %v1662_v57 = vld [vmem:[#allocation13 + $0x3c8] sm:$0xff]  ;;  %v6346_v2 = vcombine.low %v1670_v51, %v1674_v52 }
 0x331   :  { %3152 = vmatmul.mubr.bf16.vlgmr.msra.gmra.mxu1 %v8082_v0  ;;  %3193 = vmatmul.mubr.bf16.vlgmr.msra.gmra.mxu0 %v8084_v1  ;;  %v1666_v58 = vld [vmem:[#allocation13 + $0x3e8] sm:$0xff] }
 0x332   :  { %3202 = vmatpush1.bf16.msra.mxu1 %v6274_v32  ;;  %3243 = vmatpush1.bf16.msra.mxu0 %v6402_v33  ;;  %v1562_v32 = vld [vmem:[#allocation13 + $0xa8] sm:$0xff] }
 0x333   :  { %3233 = vmatprep.mubr.bf16.mxu1 %v8078_v62  ;;  %3274 = vmatprep.mubr.bf16.mxu0 %v8080_v63  ;;  %v1686_v33 = vld [vmem:[#allocation13 + $0x488] sm:$0xff]  ;;  %v6235_v39 = vcombine.high %v1558_v31, %v1562_v32  ;;  %v6234_v45 = vcombine.low %v1558_v31, %v1562_v32 }
 0x334   :  { %3203 = vmatprep.subr.bf16.mxu1 %v6267_v3  ;;  %3244 = vmatprep.subr.bf16.mxu0 %v6395_v4  ;;  %v6363_v40 = vcombine.high %v1686_v33, %v1690_v34  ;;  %v6362_v46 = vcombine.low %v1686_v33, %v1690_v34  ;;  %v6339_v3 = vcombine.high %v1662_v57, %v1666_v58  ;;  %v1642_v25 = vld [vmem:[#allocation13 + $0x328] sm:$0xff] }
 0x335   :  { %v6467_v4 = vcombine.high %v1790_v59, %v1794_v60  ;;  %v1766_v26 = vld [vmem:[#allocation13 + $0x708] sm:$0xff] }
 0x336   :  { %3204 = vmatpush1.bf16.msra.mxu1 %v6266_v8  ;;  %3245 = vmatpush1.bf16.msra.mxu0 %v6394_v9  ;;  %v1786_v8 = vld [vmem:[#allocation13 + $0x7a8] sm:$0xff]  ;;  %v6338_v9 = vcombine.low %v1662_v57, %v1666_v58 }
 0x337   :  { %3205 = vmatprep.subr.bf16.mxu1 %v6259_v10  ;;  %3246 = vmatprep.subr.bf16.mxu0 %v6387_v11  ;;  %v6466_v10 = vcombine.low %v1790_v59, %v1794_v60  ;;  %v6331_v11 = vcombine.high %v1654_v5, %v1658_v6  ;;  %v6459_v12 = vcombine.high %v1782_v7, %v1786_v8  ;;  %v1630_v32 = vld [vmem:[#allocation13 + $0x2c8] sm:$0xff] }
 0x338   :  { %v1634_v33 = vld [vmem:[#allocation13 + $0x2e8] sm:$0xff] }
 0x339   :  { %v1758_v34 = vld [vmem:[#allocation13 + $0x6c8] sm:$0xff] }
 0x33a   :  { %3206 = vmatpush1.bf16.msra.mxu1 %v6258_v19  ;;  %3247 = vmatpush1.bf16.msra.mxu0 %v6386_v20  ;;  %v1778_v19 = vld [vmem:[#allocation13 + $0x768] sm:$0xff]  ;;  %v6330_v20 = vcombine.low %v1654_v5, %v1658_v6  ;;  %v1599_v6 = vld [vmem:[#allocation13 + $0x1d0] sm:$0xff] }
 0x33b   :  { %3207 = vmatprep.subr.bf16.mxu1 %v6251_v21  ;;  %3248 = vmatprep.subr.bf16.mxu0 %v6379_v22  ;;  %v6458_v21 = vcombine.low %v1782_v7, %v1786_v8  ;;  %v6323_v22 = vcombine.high %v1646_v15, %v1650_v17  ;;  %v6451_v23 = vcombine.high %v1774_v18, %v1778_v19  ;;  %v1622_v42 = vld [vmem:[#allocation13 + $0x288] sm:$0xff]  ;;  %v1603_v7 = vld [vmem:[#allocation13 + $0x1f0] sm:$0xff] }
 0x33c   :  { %v1626_v43 = vld [vmem:[#allocation13 + $0x2a8] sm:$0xff]  ;;  %v1727_v8 = vld [vmem:[#allocation13 + $0x5d0] sm:$0xff] }
 0x33d   :  { %v1750_v44 = vld [vmem:[#allocation13 + $0x688] sm:$0xff] }
 0x33e   :  { %3208 = vmatpush1.bf16.msra.mxu1 %v6250_v27  ;;  %3249 = vmatpush1.bf16.msra.mxu0 %v6378_v28  ;;  %v1770_v27 = vld [vmem:[#allocation13 + $0x728] sm:$0xff]  ;;  %v6322_v28 = vcombine.low %v1646_v15, %v1650_v17  ;;  %v1591_v17 = vld [vmem:[#allocation13 + $0x190] sm:$0xff] }
 0x33f   :  { %3209 = vmatprep.subr.bf16.mxu1 %v6243_v29  ;;  %3250 = vmatprep.subr.bf16.mxu0 %v6371_v30  ;;  %v6450_v29 = vcombine.low %v1774_v18, %v1778_v19  ;;  %v6315_v30 = vcombine.high %v1638_v24, %v1642_v25  ;;  %v6443_v31 = vcombine.high %v1766_v26, %v1770_v27  ;;  %v1614_v50 = vld [vmem:[#allocation13 + $0x248] sm:$0xff]  ;;  %v1595_v18 = vld [vmem:[#allocation13 + $0x1b0] sm:$0xff] }
 0x340   :  { %v1618_v51 = vld [vmem:[#allocation13 + $0x268] sm:$0xff]  ;;  %v1719_v19 = vld [vmem:[#allocation13 + $0x590] sm:$0xff] }
 0x341   :  { %v1742_v52 = vld [vmem:[#allocation13 + $0x648] sm:$0xff] }
 0x342   :  { %3210 = vmatpush1.bf16.msra.mxu1 %v6242_v36  ;;  %3251 = vmatpush1.bf16.msra.mxu0 %v6370_v38  ;;  %v1762_v36 = vld [vmem:[#allocation13 + $0x6e8] sm:$0xff]  ;;  %v6314_v38 = vcombine.low %v1638_v24, %v1642_v25  ;;  %v1583_v25 = vld [vmem:[#allocation13 + $0x150] sm:$0xff] }
 0x343   :  { %3211 = vmatprep.subr.bf16.mxu1 %v6235_v39  ;;  %3252 = vmatprep.subr.bf16.mxu0 %v6363_v40  ;;  %v6442_v39 = vcombine.low %v1766_v26, %v1770_v27  ;;  %v6307_v40 = vcombine.high %v1630_v32, %v1634_v33  ;;  %v6435_v41 = vcombine.high %v1758_v34, %v1762_v36  ;;  %v1606_v58 = vld [vmem:[#allocation13 + $0x208] sm:$0xff]  ;;  %v1587_v26 = vld [vmem:[#allocation13 + $0x170] sm:$0xff] }
 0x344   :  { %v1610_v59 = vld [vmem:[#allocation13 + $0x228] sm:$0xff]  ;;  %v1711_v27 = vld [vmem:[#allocation13 + $0x550] sm:$0xff] }
 0x345   :  { %v1734_v60 = vld [vmem:[#allocation13 + $0x608] sm:$0xff] }
 0x346   :  { %3212 = vmatpush1.bf16.msra.mxu1 %v6234_v45  ;;  %3253 = vmatpush1.bf16.msra.mxu0 %v6362_v46  ;;  %v1754_v45 = vld [vmem:[#allocation13 + $0x6a8] sm:$0xff]  ;;  %v6306_v46 = vcombine.low %v1630_v32, %v1634_v33  ;;  %v1575_v33 = vld [vmem:[#allocation13 + $0x110] sm:$0xff] }
 0x347   :  { %3213 = vmatprep.subr.bf16.mxu1 %v6227_v47  ;;  %3254 = vmatprep.subr.bf16.mxu0 %v6355_v48  ;;  %v6434_v47 = vcombine.low %v1758_v34, %v1762_v36  ;;  %v6299_v48 = vcombine.high %v1622_v42, %v1626_v43  ;;  %v6427_v49 = vcombine.high %v1750_v44, %v1754_v45  ;;  %v1579_v34 = vld [vmem:[#allocation13 + $0x130] sm:$0xff] }
 0x348   :  { %v1703_v36 = vld [vmem:[#allocation13 + $0x510] sm:$0xff] }
 0x34a   :  { %3214 = vmatpush1.bf16.msra.mxu1 %v6226_v53  ;;  %3255 = vmatpush1.bf16.msra.mxu0 %v6354_v54  ;;  %v1746_v53 = vld [vmem:[#allocation13 + $0x668] sm:$0xff]  ;;  %v6298_v54 = vcombine.low %v1622_v42, %v1626_v43  ;;  %v1567_v43 = vld [vmem:[#allocation13 + $0xd0] sm:$0xff] }
 0x34b   :  { %3215 = vmatprep.subr.bf16.mxu1 %v6219_v55  ;;  %3256 = vmatprep.subr.bf16.mxu0 %v6347_v56  ;;  %v6426_v55 = vcombine.low %v1750_v44, %v1754_v45  ;;  %v6291_v56 = vcombine.high %v1614_v50, %v1618_v51  ;;  %v6419_v57 = vcombine.high %v1742_v52, %v1746_v53  ;;  %v1571_v44 = vld [vmem:[#allocation13 + $0xf0] sm:$0xff] }
 0x34c   :  { %v1695_v45 = vld [vmem:[#allocation13 + $0x4d0] sm:$0xff] }
 0x34e   :  { %3216 = vmatpush1.bf16.msra.mxu1 %v6218_v61  ;;  %3257 = vmatpush1.bf16.msra.mxu0 %v6346_v2  ;;  %v1738_v61 = vld [vmem:[#allocation13 + $0x628] sm:$0xff]  ;;  %v6290_v2 = vcombine.low %v1614_v50, %v1618_v51  ;;  %v1559_v51 = vld [vmem:[#allocation13 + $0x90] sm:$0xff] }
 0x34f   :  { %3217 = vmatprep.subr.bf16.mxu1 %v6339_v3  ;;  %3258 = vmatprep.subr.bf16.mxu0 %v6467_v4  ;;  %v6418_v3 = vcombine.low %v1742_v52, %v1746_v53  ;;  %v6283_v4 = vcombine.high %v1606_v58, %v1610_v59  ;;  %v6411_v5 = vcombine.high %v1734_v60, %v1738_v61  ;;  %v1563_v52 = vld [vmem:[#allocation13 + $0xb0] sm:$0xff] }
 0x350   :  { %v1687_v53 = vld [vmem:[#allocation13 + $0x490] sm:$0xff] }
 0x352   :  { %3218 = vmatpush2.bf16.msra.mxu1 %v6338_v9  ;;  %3259 = vmatpush2.bf16.msra.mxu0 %v6466_v10  ;;  %v1731_v9 = vld [vmem:[#allocation13 + $0x5f0] sm:$0xff]  ;;  %v6282_v10 = vcombine.low %v1606_v58, %v1610_v59 }
 0x353   :  { %3219 = vmatprep.subr.bf16.mxu1 %v6331_v11  ;;  %3260 = vmatprep.subr.bf16.mxu0 %v6459_v12  ;;  %v6410_v11 = vcombine.low %v1734_v60, %v1738_v61  ;;  %v6277_v12 = vcombine.high %v1599_v6, %v1603_v7  ;;  %v6405_v15 = vcombine.high %v1727_v8, %v1731_v9  ;;  %v1551_v59 = vld [vmem:[#allocation13 + $0x50] sm:$0xff] }
 0x354   :  { %v1555_v60 = vld [vmem:[#allocation13 + $0x70] sm:$0xff] }
 0x355   :  { %v1679_v61 = vld [vmem:[#allocation13 + $0x450] sm:$0xff] }
 0x356   :  { %3220 = vmatpush2.bf16.msra.mxu1 %v6330_v20  ;;  %3261 = vmatpush2.bf16.msra.mxu0 %v6458_v21  ;;  %v1723_v20 = vld [vmem:[#allocation13 + $0x5b0] sm:$0xff]  ;;  %v6276_v21 = vcombine.low %v1599_v6, %v1603_v7 }
 0x357   :  { %3221 = vmatprep.subr.bf16.mxu1 %v6323_v22  ;;  %3262 = vmatprep.subr.bf16.mxu0 %v6451_v23  ;;  %v6404_v22 = vcombine.low %v1727_v8, %v1731_v9  ;;  %v6269_v23 = vcombine.high %v1591_v17, %v1595_v18  ;;  %v6397_v24 = vcombine.high %v1719_v19, %v1723_v20  ;;  %v1543_v7 = vld [vmem:[#allocation13 + $0x10] sm:$0xff] }
 0x358   :  { %v1547_v8 = vld [vmem:[#allocation13 + $0x30] sm:$0xff] }
 0x359   :  { %v1671_v9 = vld [vmem:[#allocation13 + $0x410] sm:$0xff] }
 0x35a   :  { %3222 = vmatpush2.bf16.msra.mxu1 %v6322_v28  ;;  %3263 = vmatpush2.bf16.msra.mxu0 %v6450_v29  ;;  %v1715_v28 = vld [vmem:[#allocation13 + $0x570] sm:$0xff]  ;;  %v6268_v29 = vcombine.low %v1591_v17, %v1595_v18 }
 0x35b   :  { %3223 = vmatprep.subr.bf16.mxu1 %v6315_v30  ;;  %3264 = vmatprep.subr.bf16.mxu0 %v6443_v31  ;;  %v6396_v30 = vcombine.low %v1719_v19, %v1723_v20  ;;  %v6261_v31 = vcombine.high %v1583_v25, %v1587_v26  ;;  %v6389_v32 = vcombine.high %v1711_v27, %v1715_v28  ;;  %v1663_v18 = vld [vmem:[#allocation13 + $0x3d0] sm:$0xff] }
 0x35c   :  { %v1667_v19 = vld [vmem:[#allocation13 + $0x3f0] sm:$0xff] }
 0x35d   :  { %v1791_v20 = vld [vmem:[#allocation13 + $0x7d0] sm:$0xff] }
 0x35e   :  { %3224 = vmatpush2.bf16.msra.mxu1 %v6314_v38  ;;  %3265 = vmatpush2.bf16.msra.mxu0 %v6442_v39  ;;  %v1707_v38 = vld [vmem:[#allocation13 + $0x530] sm:$0xff]  ;;  %v6260_v39 = vcombine.low %v1583_v25, %v1587_v26 }
 0x35f   :  { %3225 = vmatprep.subr.bf16.mxu1 %v6307_v40  ;;  %3266 = vmatprep.subr.bf16.mxu0 %v6435_v41  ;;  %v6388_v40 = vcombine.low %v1711_v27, %v1715_v28  ;;  %v6253_v41 = vcombine.high %v1575_v33, %v1579_v34  ;;  %v6381_v42 = vcombine.high %v1703_v36, %v1707_v38  ;;  %v1655_v26 = vld [vmem:[#allocation13 + $0x390] sm:$0xff] }
 0x360   :  { %v1659_v27 = vld [vmem:[#allocation13 + $0x3b0] sm:$0xff] }
 0x361   :  { %v1783_v28 = vld [vmem:[#allocation13 + $0x790] sm:$0xff] }
 0x362   :  { %3226 = vmatpush2.bf16.msra.mxu1 %v6306_v46  ;;  %3267 = vmatpush2.bf16.msra.mxu0 %v6434_v47  ;;  %v1699_v46 = vld [vmem:[#allocation13 + $0x4f0] sm:$0xff]  ;;  %v6252_v47 = vcombine.low %v1575_v33, %v1579_v34 }
 0x363   :  { %3227 = vmatprep.subr.bf16.mxu1 %v6299_v48  ;;  %3268 = vmatprep.subr.bf16.mxu0 %v6427_v49  ;;  %v6380_v48 = vcombine.low %v1703_v36, %v1707_v38  ;;  %v6245_v49 = vcombine.high %v1567_v43, %v1571_v44  ;;  %v6373_v50 = vcombine.high %v1695_v45, %v1699_v46  ;;  %v1647_v34 = vld [vmem:[#allocation13 + $0x350] sm:$0xff] }
 0x364   :  { %v1651_v36 = vld [vmem:[#allocation13 + $0x370] sm:$0xff] }
 0x365   :  { %v1775_v38 = vld [vmem:[#allocation13 + $0x750] sm:$0xff] }
 0x366   :  { %3228 = vmatpush2.bf16.msra.mxu1 %v6298_v54  ;;  %3269 = vmatpush2.bf16.msra.mxu0 %v6426_v55  ;;  %v1691_v54 = vld [vmem:[#allocation13 + $0x4b0] sm:$0xff]  ;;  %v6244_v55 = vcombine.low %v1567_v43, %v1571_v44 }
 0x367   :  { %3229 = vmatprep.subr.bf16.mxu1 %v6291_v56  ;;  %3270 = vmatprep.subr.bf16.mxu0 %v6419_v57  ;;  %v6372_v56 = vcombine.low %v1695_v45, %v1699_v46  ;;  %v6237_v57 = vcombine.high %v1559_v51, %v1563_v52  ;;  %v6365_v58 = vcombine.high %v1687_v53, %v1691_v54  ;;  %v1639_v44 = vld [vmem:[#allocation13 + $0x310] sm:$0xff] }
 0x368   :  { %v1643_v45 = vld [vmem:[#allocation13 + $0x330] sm:$0xff] }
 0x369   :  { %v1767_v46 = vld [vmem:[#allocation13 + $0x710] sm:$0xff] }
 0x36a   :  { %3230 = vmatpush2.bf16.msra.mxu1 %v6290_v2  ;;  %3271 = vmatpush2.bf16.msra.mxu0 %v6418_v3  ;;  %v1683_v2 = vld [vmem:[#allocation13 + $0x470] sm:$0xff]  ;;  %v6236_v3 = vcombine.low %v1559_v51, %v1563_v52 }
 0x36b   :  { %3231 = vmatprep.subr.bf16.mxu1 %v6283_v4  ;;  %3272 = vmatprep.subr.bf16.mxu0 %v6411_v5  ;;  %v6364_v4 = vcombine.low %v1687_v53, %v1691_v54  ;;  %v6229_v5 = vcombine.high %v1551_v59, %v1555_v60  ;;  %v6357_v6 = vcombine.high %v1679_v61, %v1683_v2  ;;  %v1631_v52 = vld [vmem:[#allocation13 + $0x2d0] sm:$0xff] }
 0x36c   :  { %v1635_v53 = vld [vmem:[#allocation13 + $0x2f0] sm:$0xff] }
 0x36d   :  { %v1759_v54 = vld [vmem:[#allocation13 + $0x6d0] sm:$0xff] }
 0x36e   :  { %3232 = vmatpush2.bf16.msra.mxu1 %v6282_v10  ;;  %3273 = vmatpush2.bf16.msra.mxu0 %v6410_v11  ;;  %v1675_v10 = vld [vmem:[#allocation13 + $0x430] sm:$0xff]  ;;  %v6228_v11 = vcombine.low %v1551_v59, %v1555_v60 }
 0x36f   :  { %3283 = vmatprep.subr.bf16.mxu1 %v6277_v12  ;;  %3324 = vmatprep.subr.bf16.mxu0 %v6405_v15  ;;  %v6356_v12 = vcombine.low %v1679_v61, %v1683_v2  ;;  %v6221_v15 = vcombine.high %v1543_v7, %v1547_v8  ;;  %v6349_v17 = vcombine.high %v1671_v9, %v1675_v10  ;;  %v1623_v60 = vld [vmem:[#allocation13 + $0x290] sm:$0xff] }
 0x370   :  { %v1627_v61 = vld [vmem:[#allocation13 + $0x2b0] sm:$0xff] }
 0x371   :  { %3234 = vmatmul.mubr.bf16.vlgmr.msra.gmra.mxu1 %v8082_v0  ;;  %3275 = vmatmul.mubr.bf16.vlgmr.msra.gmra.mxu0 %v8084_v1  ;;  %v1751_v2 = vld [vmem:[#allocation13 + $0x690] sm:$0xff] }
 0x372   :  { %3284 = vmatpush1.bf16.msra.mxu1 %v6276_v21  ;;  %3315 = vmatprep.mubr.bf16.mxu1 %v8078_v62  ;;  %v1795_v21 = vld [vmem:[#allocation13 + $0x7f0] sm:$0xff] }
 0x373   :  { %3325 = vmatpush1.bf16.msra.mxu0 %v6404_v22  ;;  %3356 = vmatprep.mubr.bf16.mxu0 %v8080_v63  ;;  %v6220_v22 = vcombine.low %v1543_v7, %v1547_v8  ;;  %v6469_v25 = vcombine.high %v1791_v20, %v1795_v21  ;;  %v1615_v8 = vld [vmem:[#allocation13 + $0x250] sm:$0xff] }
 0x374   :  { %3285 = vmatprep.subr.bf16.mxu1 %v6269_v23  ;;  %3326 = vmatprep.subr.bf16.mxu0 %v6397_v24  ;;  %v6348_v23 = vcombine.low %v1671_v9, %v1675_v10  ;;  %v6341_v24 = vcombine.high %v1663_v18, %v1667_v19  ;;  %v1619_v9 = vld [vmem:[#allocation13 + $0x270] sm:$0xff] }
 0x375   :  { %v1743_v10 = vld [vmem:[#allocation13 + $0x650] sm:$0xff] }
 0x376   :  { %3286 = vmatpush1.bf16.msra.mxu1 %v6268_v29  ;;  %v1787_v29 = vld [vmem:[#allocation13 + $0x7b0] sm:$0xff] }
 0x377   :  { %3327 = vmatpush1.bf16.msra.mxu0 %v6396_v30  ;;  %3287 = vmatprep.subr.bf16.mxu1 %v6261_v31  ;;  %v6340_v30 = vcombine.low %v1663_v18, %v1667_v19  ;;  %v6468_v31 = vcombine.low %v1791_v20, %v1795_v21  ;;  %v6461_v33 = vcombine.high %v1783_v28, %v1787_v29  ;;  %v1607_v19 = vld [vmem:[#allocation13 + $0x210] sm:$0xff] }
 0x378   :  { %3328 = vmatprep.subr.bf16.mxu0 %v6389_v32  ;;  %v6333_v32 = vcombine.high %v1655_v26, %v1659_v27  ;;  %v1611_v20 = vld [vmem:[#allocation13 + $0x230] sm:$0xff] }
 0x379   :  { %v1735_v21 = vld [vmem:[#allocation13 + $0x610] sm:$0xff] }
 0x37a   :  { %3288 = vmatpush1.bf16.msra.mxu1 %v6260_v39  ;;  %v1779_v39 = vld [vmem:[#allocation13 + $0x770] sm:$0xff] }
 0x37b   :  { %3329 = vmatpush1.bf16.msra.mxu0 %v6388_v40  ;;  %3289 = vmatprep.subr.bf16.mxu1 %v6253_v41  ;;  %v6332_v40 = vcombine.low %v1655_v26, %v1659_v27  ;;  %v6460_v41 = vcombine.low %v1783_v28, %v1787_v29  ;;  %v6453_v43 = vcombine.high %v1775_v38, %v1779_v39  ;;  %v1600_v27 = vld [vmem:[#allocation13 + $0x1d8] sm:$0xff] }
 0x37c   :  { %3330 = vmatprep.subr.bf16.mxu0 %v6381_v42  ;;  %v6325_v42 = vcombine.high %v1647_v34, %v1651_v36  ;;  %v1604_v28 = vld [vmem:[#allocation13 + $0x1f8] sm:$0xff] }
 0x37d   :  { %v1728_v29 = vld [vmem:[#allocation13 + $0x5d8] sm:$0xff] }
 0x37e   :  { %3290 = vmatpush1.bf16.msra.mxu1 %v6252_v47  ;;  %v1771_v47 = vld [vmem:[#allocation13 + $0x730] sm:$0xff] }
 0x37f   :  { %3331 = vmatpush1.bf16.msra.mxu0 %v6380_v48  ;;  %3291 = vmatprep.subr.bf16.mxu1 %v6245_v49  ;;  %v6324_v48 = vcombine.low %v1647_v34, %v1651_v36  ;;  %v6452_v49 = vcombine.low %v1775_v38, %v1779_v39  ;;  %v6445_v51 = vcombine.high %v1767_v46, %v1771_v47  ;;  %v1592_v36 = vld [vmem:[#allocation13 + $0x198] sm:$0xff] }
 0x380   :  { %3332 = vmatprep.subr.bf16.mxu0 %v6373_v50  ;;  %v6317_v50 = vcombine.high %v1639_v44, %v1643_v45  ;;  %v1596_v38 = vld [vmem:[#allocation13 + $0x1b8] sm:$0xff]  ;;  %v6278_v39 = vcombine.low %v1600_v27, %v1604_v28 }
 0x382   :  { %3292 = vmatpush1.bf16.msra.mxu1 %v6244_v55  ;;  %v1763_v55 = vld [vmem:[#allocation13 + $0x6f0] sm:$0xff] }
 0x383   :  { %3333 = vmatpush1.bf16.msra.mxu0 %v6372_v56  ;;  %3293 = vmatprep.subr.bf16.mxu1 %v6237_v57  ;;  %v6316_v56 = vcombine.low %v1639_v44, %v1643_v45  ;;  %v6444_v57 = vcombine.low %v1767_v46, %v1771_v47  ;;  %v6437_v59 = vcombine.high %v1759_v54, %v1763_v55  ;;  %v1584_v44 = vld [vmem:[#allocation13 + $0x158] sm:$0xff] }
 0x384   :  { %3334 = vmatprep.subr.bf16.mxu0 %v6365_v58  ;;  %v6309_v58 = vcombine.high %v1631_v52, %v1635_v53  ;;  %v1588_v45 = vld [vmem:[#allocation13 + $0x178] sm:$0xff] }
 0x385   :  { %v1712_v47 = vld [vmem:[#allocation13 + $0x558] sm:$0xff] }
 0x386   :  { %3294 = vmatpush1.bf16.msra.mxu1 %v6236_v3  ;;  %v1755_v3 = vld [vmem:[#allocation13 + $0x6b0] sm:$0xff] }
 0x387   :  { %3335 = vmatpush1.bf16.msra.mxu0 %v6364_v4  ;;  %3295 = vmatprep.subr.bf16.mxu1 %v6229_v5  ;;  %v6308_v4 = vcombine.low %v1631_v52, %v1635_v53  ;;  %v6436_v5 = vcombine.low %v1759_v54, %v1763_v55  ;;  %v6429_v7 = vcombine.high %v1751_v2, %v1755_v3  ;;  %v1576_v53 = vld [vmem:[#allocation13 + $0x118] sm:$0xff] }
 0x388   :  { %3336 = vmatprep.subr.bf16.mxu0 %v6357_v6  ;;  %v6301_v6 = vcombine.high %v1623_v60, %v1627_v61  ;;  %v1580_v54 = vld [vmem:[#allocation13 + $0x138] sm:$0xff] }
 0x389   :  { %v1704_v55 = vld [vmem:[#allocation13 + $0x518] sm:$0xff] }
 0x38a   :  { %3296 = vmatpush1.bf16.msra.mxu1 %v6228_v11  ;;  %v1747_v11 = vld [vmem:[#allocation13 + $0x670] sm:$0xff] }
 0x38b   :  { %3337 = vmatpush1.bf16.msra.mxu0 %v6356_v12  ;;  %3297 = vmatprep.subr.bf16.mxu1 %v6221_v15  ;;  %v6300_v12 = vcombine.low %v1623_v60, %v1627_v61  ;;  %v6428_v15 = vcombine.low %v1751_v2, %v1755_v3  ;;  %v6421_v18 = vcombine.high %v1743_v10, %v1747_v11  ;;  %v1568_v60 = vld [vmem:[#allocation13 + $0xd8] sm:$0xff] }
 0x38c   :  { %3338 = vmatprep.subr.bf16.mxu0 %v6349_v17  ;;  %v6293_v17 = vcombine.high %v1615_v8, %v1619_v9  ;;  %v1572_v61 = vld [vmem:[#allocation13 + $0xf8] sm:$0xff] }
 0x38d   :  { %v1696_v2 = vld [vmem:[#allocation13 + $0x4d8] sm:$0xff] }
 0x38e   :  { %3298 = vmatpush1.bf16.msra.mxu1 %v6220_v22  ;;  %v1739_v22 = vld [vmem:[#allocation13 + $0x630] sm:$0xff]  ;;  %v1700_v3 = vld [vmem:[#allocation13 + $0x4f8] sm:$0xff] }
 0x38f   :  { %3339 = vmatpush1.bf16.msra.mxu0 %v6348_v23  ;;  %3299 = vmatprep.subr.bf16.mxu1 %v6341_v24  ;;  %v6292_v23 = vcombine.low %v1615_v8, %v1619_v9  ;;  %v6420_v24 = vcombine.low %v1743_v10, %v1747_v11  ;;  %v6413_v26 = vcombine.high %v1735_v21, %v1739_v22  ;;  %v1564_v8 = vld [vmem:[#allocation13 + $0xb8] sm:$0xff] }
 0x390   :  { %3340 = vmatprep.subr.bf16.mxu0 %v6469_v25  ;;  %v6285_v25 = vcombine.high %v1607_v19, %v1611_v20  ;;  %v1688_v9 = vld [vmem:[#allocation13 + $0x498] sm:$0xff]  ;;  %v6246_v11 = vcombine.low %v1568_v60, %v1572_v61 }
 0x391   :  { %v1692_v10 = vld [vmem:[#allocation13 + $0x4b8] sm:$0xff] }
 0x392   :  { %3300 = vmatpush2.bf16.msra.mxu1 %v6340_v30  ;;  %v1732_v30 = vld [vmem:[#allocation13 + $0x5f8] sm:$0xff] }
 0x393   :  { %3341 = vmatpush2.bf16.msra.mxu0 %v6468_v31  ;;  %3301 = vmatprep.subr.bf16.mxu1 %v6333_v32  ;;  %v6284_v31 = vcombine.low %v1607_v19, %v1611_v20  ;;  %v6412_v32 = vcombine.low %v1735_v21, %v1739_v22  ;;  %v6407_v34 = vcombine.high %v1728_v29, %v1732_v30  ;;  %v1556_v19 = vld [vmem:[#allocation13 + $0x78] sm:$0xff] }
 0x394   :  { %3342 = vmatprep.subr.bf16.mxu0 %v6461_v33  ;;  %v6279_v33 = vcombine.high %v1600_v27, %v1604_v28  ;;  %v1680_v20 = vld [vmem:[#allocation13 + $0x458] sm:$0xff] }
 0x395   :  { %v1684_v21 = vld [vmem:[#allocation13 + $0x478] sm:$0xff] }
 0x396   :  { %3302 = vmatpush2.bf16.msra.mxu1 %v6332_v40  ;;  %v1720_v40 = vld [vmem:[#allocation13 + $0x598] sm:$0xff] }
 0x397   :  { %3343 = vmatpush2.bf16.msra.mxu0 %v6460_v41  ;;  %3303 = vmatprep.subr.bf16.mxu1 %v6325_v42  ;;  %v1724_v41 = vld [vmem:[#allocation13 + $0x5b8] sm:$0xff]  ;;  %v6406_v42 = vcombine.low %v1728_v29, %v1732_v30 }
 0x398   :  { %3344 = vmatprep.subr.bf16.mxu0 %v6453_v43  ;;  %v6271_v43 = vcombine.high %v1592_v36, %v1596_v38  ;;  %v6399_v46 = vcombine.high %v1720_v40, %v1724_v41  ;;  %v1548_v27 = vld [vmem:[#allocation13 + $0x38] sm:$0xff] }
 0x399   :  { %v1672_v28 = vld [vmem:[#allocation13 + $0x418] sm:$0xff] }
 0x39a   :  { %3304 = vmatpush2.bf16.msra.mxu1 %v6324_v48  ;;  %v1716_v48 = vld [vmem:[#allocation13 + $0x578] sm:$0xff] }
 0x39b   :  { %3345 = vmatpush2.bf16.msra.mxu0 %v6452_v49  ;;  %3305 = vmatprep.subr.bf16.mxu1 %v6317_v50  ;;  %v6270_v49 = vcombine.low %v1592_v36, %v1596_v38  ;;  %v6398_v50 = vcombine.low %v1720_v40, %v1724_v41  ;;  %v6391_v52 = vcombine.high %v1712_v47, %v1716_v48  ;;  %v1676_v29 = vld [vmem:[#allocation13 + $0x438] sm:$0xff] }
 0x39c   :  { %3346 = vmatprep.subr.bf16.mxu0 %v6445_v51  ;;  %v6263_v51 = vcombine.high %v1584_v44, %v1588_v45  ;;  %v1668_v36 = vld [vmem:[#allocation13 + $0x3f8] sm:$0xff]  ;;  %v6350_v41 = vcombine.low %v1672_v28, %v1676_v29 }
 0x39d   :  { %v1792_v38 = vld [vmem:[#allocation13 + $0x7d8] sm:$0xff] }
 0x39e   :  { %3306 = vmatpush2.bf16.msra.mxu1 %v6316_v56  ;;  %v1708_v56 = vld [vmem:[#allocation13 + $0x538] sm:$0xff] }
 0x39f   :  { %3347 = vmatpush2.bf16.msra.mxu0 %v6444_v57  ;;  %3307 = vmatprep.subr.bf16.mxu1 %v6309_v58  ;;  %v6262_v57 = vcombine.low %v1584_v44, %v1588_v45  ;;  %v6390_v58 = vcombine.low %v1712_v47, %v1716_v48  ;;  %v1656_v44 = vld [vmem:[#allocation13 + $0x398] sm:$0xff] }
 0x3a0   :  { %3348 = vmatprep.subr.bf16.mxu0 %v6437_v59  ;;  %v6255_v59 = vcombine.high %v1576_v53, %v1580_v54  ;;  %v1660_v45 = vld [vmem:[#allocation13 + $0x3b8] sm:$0xff] }
 0x3a1   :  { %v1788_v47 = vld [vmem:[#allocation13 + $0x7b8] sm:$0xff] }
 0x3a2   :  { %3308 = vmatpush2.bf16.msra.mxu1 %v6308_v4  ;;  %v6382_v4 = vcombine.low %v1704_v55, %v1708_v56 }
 0x3a3   :  { %3349 = vmatpush2.bf16.msra.mxu0 %v6436_v5  ;;  %3309 = vmatprep.subr.bf16.mxu1 %v6301_v6  ;;  %v6247_v5 = vcombine.high %v1568_v60, %v1572_v61  ;;  %v6375_v6 = vcombine.high %v1696_v2, %v1700_v3  ;;  %v1644_v60 = vld [vmem:[#allocation13 + $0x338] sm:$0xff] }
 0x3a4   :  { %3350 = vmatprep.subr.bf16.mxu0 %v6429_v7  ;;  %v1560_v7 = vld [vmem:[#allocation13 + $0x98] sm:$0xff] }
 0x3a5   :  { %v6238_v22 = vcombine.low %v1560_v7, %v1564_v8  ;;  %v1768_v61 = vld [vmem:[#allocation13 + $0x718] sm:$0xff] }
 0x3a6   :  { %3310 = vmatpush2.bf16.msra.mxu1 %v6300_v12  ;;  %v6374_v12 = vcombine.low %v1696_v2, %v1700_v3  ;;  %v1772_v2 = vld [vmem:[#allocation13 + $0x738] sm:$0xff] }
 0x3a7   :  { %3351 = vmatpush2.bf16.msra.mxu0 %v6428_v15  ;;  %3311 = vmatprep.subr.bf16.mxu1 %v6293_v17  ;;  %v6239_v15 = vcombine.high %v1560_v7, %v1564_v8  ;;  %v6367_v17 = vcombine.high %v1688_v9, %v1692_v10  ;;  %v1636_v7 = vld [vmem:[#allocation13 + $0x2f8] sm:$0xff] }
 0x3a8   :  { %3352 = vmatprep.subr.bf16.mxu0 %v6421_v18  ;;  %v1552_v18 = vld [vmem:[#allocation13 + $0x58] sm:$0xff] }
 0x3a9   :  { %v6230_v30 = vcombine.low %v1552_v18, %v1556_v19  ;;  %v1760_v8 = vld [vmem:[#allocation13 + $0x6d8] sm:$0xff] }
 0x3aa   :  { %3312 = vmatpush2.bf16.msra.mxu1 %v6292_v23  ;;  %v6366_v23 = vcombine.low %v1688_v9, %v1692_v10  ;;  %v1764_v9 = vld [vmem:[#allocation13 + $0x6f8] sm:$0xff] }
 0x3ab   :  { %3353 = vmatpush2.bf16.msra.mxu0 %v6420_v24  ;;  %3313 = vmatprep.subr.bf16.mxu1 %v6285_v25  ;;  %v6231_v24 = vcombine.high %v1552_v18, %v1556_v19  ;;  %v6359_v25 = vcombine.high %v1680_v20, %v1684_v21  ;;  %v1628_v18 = vld [vmem:[#allocation13 + $0x2b8] sm:$0xff] }
 0x3ac   :  { %3354 = vmatprep.subr.bf16.mxu0 %v6413_v26  ;;  %v1544_v26 = vld [vmem:[#allocation13 + $0x18] sm:$0xff] }
 0x3ad   :  { %v6222_v40 = vcombine.low %v1544_v26, %v1548_v27  ;;  %v1752_v19 = vld [vmem:[#allocation13 + $0x698] sm:$0xff] }
 0x3ae   :  { %3314 = vmatpush2.bf16.msra.mxu1 %v6284_v31  ;;  %v6358_v31 = vcombine.low %v1680_v20, %v1684_v21  ;;  %v1756_v20 = vld [vmem:[#allocation13 + $0x6b8] sm:$0xff] }
 0x3af   :  { %3355 = vmatpush2.bf16.msra.mxu0 %v6412_v32  ;;  %3365 = vmatprep.subr.bf16.mxu1 %v6279_v33  ;;  %v6223_v32 = vcombine.high %v1544_v26, %v1548_v27  ;;  %v6351_v33 = vcombine.high %v1672_v28, %v1676_v29  ;;  %v1620_v26 = vld [vmem:[#allocation13 + $0x278] sm:$0xff] }
 0x3b0   :  { %3406 = vmatprep.subr.bf16.mxu0 %v6407_v34  ;;  %v1664_v34 = vld [vmem:[#allocation13 + $0x3d8] sm:$0xff] }
 0x3b1   :  { %3316 = vmatmul.mubr.bf16.vlgmr.msra.gmra.mxu1 %v8082_v0  ;;  %v6342_v48 = vcombine.low %v1664_v34, %v1668_v36  ;;  %v1744_v27 = vld [vmem:[#allocation13 + $0x658] sm:$0xff] }
 0x3b2   :  { %3357 = vmatmul.mubr.bf16.vlgmr.msra.gmra.mxu0 %v8084_v1  ;;  %3366 = vmatpush1.bf16.msra.mxu1 %v6278_v39  ;;  %v1796_v39 = vld [vmem:[#allocation13 + $0x7f8] sm:$0xff] }
 0x3b3   :  { %3397 = vmatprep.mubr.bf16.mxu1 %v8078_v62  ;;  %3407 = vmatpush1.bf16.msra.mxu0 %v6406_v42  ;;  %v6383_v62 = vcombine.high %v1704_v55, %v1708_v56  ;;  %v6343_v42 = vcombine.high %v1664_v34, %v1668_v36  ;;  %v1780_v55 = vld [vmem:[#allocation13 + $0x778] sm:$0xff]  ;;  %v6334_v56 = vcombine.low %v1656_v44, %v1660_v45 }
 0x3b4   :  { %3438 = vmatprep.mubr.bf16.mxu0 %v8080_v63  ;;  %3367 = vmatprep.subr.bf16.mxu1 %v6271_v43  ;;  %v6254_v63 = vcombine.low %v1576_v53, %v1580_v54  ;;  %v6471_v43 = vcombine.high %v1792_v38, %v1796_v39  ;;  %v1652_v53 = vld [vmem:[#allocation13 + $0x378] sm:$0xff] }
 0x3b5   :  { %3408 = vmatprep.subr.bf16.mxu0 %v6399_v46  ;;  %v1784_v46 = vld [vmem:[#allocation13 + $0x798] sm:$0xff] }
 0x3b6   :  { %3368 = vmatpush1.bf16.msra.mxu1 %v6270_v49  ;;  %v6470_v49 = vcombine.low %v1792_v38, %v1796_v39  ;;  %v1776_v54 = vld [vmem:[#allocation13 + $0x758] sm:$0xff] }
 0x3b7   :  { %3409 = vmatpush1.bf16.msra.mxu0 %v6398_v50  ;;  %3369 = vmatprep.subr.bf16.mxu1 %v6263_v51  ;;  %v6335_v50 = vcombine.high %v1656_v44, %v1660_v45  ;;  %v6463_v51 = vcombine.high %v1784_v46, %v1788_v47  ;;  %v1748_v28 = vld [vmem:[#allocation13 + $0x678] sm:$0xff]  ;;  %v7127_v45 = vld [vmem:[#allocation14 + $0xe4] ss:$16 sps:$4 sm:$0xff]  }
 0x3b8   :  { %3410 = vmatprep.subr.bf16.mxu0 %v6391_v52  ;;  %v1648_v52 = vld [vmem:[#allocation13 + $0x358] sm:$0xff] }
 0x3b9   :  { %v6326_v3 = vcombine.low %v1648_v52, %v1652_v53  ;;  %v1612_v34 = vld [vmem:[#allocation13 + $0x238] sm:$0xff] }
 0x3ba   :  { %3370 = vmatpush1.bf16.msra.mxu1 %v6262_v57  ;;  %v6462_v57 = vcombine.low %v1784_v46, %v1788_v47  ;;  %v1736_v36 = vld [vmem:[#allocation13 + $0x618] sm:$0xff]  ;;  %v7139_v47 = vld [vmem:[#allocation14 + $0x2e4] ss:$16 sps:$4 sm:$0xff]  }
 0x3bb   :  { %3411 = vmatpush1.bf16.msra.mxu0 %v6390_v58  ;;  %3371 = vmatprep.subr.bf16.mxu1 %v6255_v59  ;;  %v6327_v58 = vcombine.high %v1648_v52, %v1652_v53  ;;  %v6455_v59 = vcombine.high %v1776_v54, %v1780_v55  ;;  %v1740_v38 = vld [vmem:[#allocation13 + $0x638] sm:$0xff]  ;;  %v7145_v53 = vld [vmem:[#allocation14 + $0x2c4] ss:$16 sps:$4 sm:$0xff]  }
 0x3bc   :  { %3412 = vmatprep.subr.bf16.mxu0 %v6383_v62  ;;  %v1640_v62 = vld [vmem:[#allocation13 + $0x318] sm:$0xff]  ;;  %v6414_v44 = vcombine.low %v1736_v36, %v1740_v38 }
 0x3bd   :  { %v6318_v10 = vcombine.low %v1640_v62, %v1644_v60  ;;  %v8103_v46 = vld [vmem:[%s8207_s8] sm:$0xff] }
 0x3be   :  { %3372 = vmatpush1.bf16.msra.mxu1 %v6254_v63  ;;  %v6454_v63 = vcombine.low %v1776_v54, %v1780_v55  ;;  %v1806_v52 = vrot.slane %v8103_v46, %v8061_v16 }
 0x3bf   :  { %3413 = vmatpush1.bf16.msra.mxu0 %v6382_v4  ;;  %3373 = vmatprep.subr.bf16.mxu1 %v6247_v5  ;;  %v6319_v4 = vcombine.high %v1640_v62, %v1644_v60  ;;  %v6447_v5 = vcombine.high %v1768_v61, %v1772_v2  ;;  %v7133_v62 = vld [vmem:[#allocation14 + $0xa4] ss:$16 sps:$4 sm:$0xff]   ;;  %v7143_v60 = vld [vmem:[#allocation14 + $0x2c0] ss:$16 sps:$4 sm:$0xff]  }
 0x3c0   :  { %3414 = vmatprep.subr.bf16.mxu0 %v6375_v6  ;;  %v1632_v6 = vld [vmem:[#allocation13 + $0x2d8] sm:$0xff] }
 0x3c1   :  { %v6310_v21 = vcombine.low %v1632_v6, %v1636_v7 }
 0x3c2   :  { %3374 = vmatpush1.bf16.msra.mxu1 %v6246_v11  ;;  %v6446_v11 = vcombine.low %v1768_v61, %v1772_v2 }
 0x3c3   :  { %3415 = vmatpush1.bf16.msra.mxu0 %v6374_v12  ;;  %3375 = vmatprep.subr.bf16.mxu1 %v6239_v15  ;;  %v6311_v12 = vcombine.high %v1632_v6, %v1636_v7  ;;  %v6439_v15 = vcombine.high %v1760_v8, %v1764_v9 }
 0x3c4   :  { %3416 = vmatprep.subr.bf16.mxu0 %v6367_v17  ;;  %v1624_v17 = vld [vmem:[#allocation13 + $0x298] sm:$0xff] }
 0x3c5   :  { %v6302_v29 = vcombine.low %v1624_v17, %v1628_v18 }
 0x3c6   :  { %3376 = vmatpush1.bf16.msra.mxu1 %v6238_v22  ;;  %v6438_v22 = vcombine.low %v1760_v8, %v1764_v9  ;;  %v7136_v8 = vld [vmem:[#allocation14 + $0x84] ss:$16 sps:$4 sm:$0xff]   ;;  %v7149_v9 = vld [vmem:[#allocation14 + $0x2a0] ss:$16 sps:$4 sm:$0xff]  }
 0x3c7   :  { %3417 = vmatpush1.bf16.msra.mxu0 %v6366_v23  ;;  %3377 = vmatprep.subr.bf16.mxu1 %v6231_v24  ;;  %v6303_v23 = vcombine.high %v1624_v17, %v1628_v18  ;;  %v6431_v24 = vcombine.high %v1752_v19, %v1756_v20  ;;  %v7142_v17 = vld [vmem:[#allocation14 + $0x64] ss:$16 sps:$4 sm:$0xff]   ;;  %v7155_v18 = vld [vmem:[#allocation14 + $0x280] ss:$16 sps:$4 sm:$0xff]  }
 0x3c8   :  { %3418 = vmatprep.subr.bf16.mxu0 %v6359_v25  ;;  %v1616_v25 = vld [vmem:[#allocation13 + $0x258] sm:$0xff] }
 0x3c9   :  { %v6294_v39 = vcombine.low %v1616_v25, %v1620_v26 }
 0x3ca   :  { %3378 = vmatpush1.bf16.msra.mxu1 %v6230_v30  ;;  %v6430_v30 = vcombine.low %v1752_v19, %v1756_v20  ;;  %v7163_v19 = vld [vmem:[#allocation14 + $0x264] ss:$16 sps:$4 sm:$0xff]   ;;  %v7140_v20 = vld [vmem:[#allocation14 + $0x60] ss:$16 sps:$4 sm:$0xff]  }
 0x3cb   :  { %3419 = vmatpush1.bf16.msra.mxu0 %v6358_v31  ;;  %3379 = vmatprep.subr.bf16.mxu1 %v6223_v32  ;;  %v6295_v31 = vcombine.high %v1616_v25, %v1620_v26  ;;  %v6423_v32 = vcombine.high %v1744_v27, %v1748_v28  ;;  %v7154_v25 = vld [vmem:[#allocation14 + $0x24] ss:$16 sps:$4 sm:$0xff]   ;;  %v7167_v26 = vld [vmem:[#allocation14 + $0x240] ss:$16 sps:$4 sm:$0xff]  }
 0x3cc   :  { %3420 = vmatprep.subr.bf16.mxu0 %v6351_v33  ;;  %v1608_v33 = vld [vmem:[#allocation13 + $0x218] sm:$0xff] }
 0x3ce   :  { %3380 = vmatpush1.bf16.msra.mxu1 %v6222_v40  ;;  %v6422_v40 = vcombine.low %v1744_v27, %v1748_v28  ;;  %v7175_v27 = vld [vmem:[#allocation14 + $0x224] ss:$16 sps:$4 sm:$0xff]   ;;  %v7152_v28 = vld [vmem:[#allocation14 + $0x20] ss:$16 sps:$4 sm:$0xff]  }
 0x3cf   :  { %3421 = vmatpush1.bf16.msra.mxu0 %v6350_v41  ;;  %3381 = vmatprep.subr.bf16.mxu1 %v6343_v42  ;;  %v6287_v41 = vcombine.high %v1608_v33, %v1612_v34  ;;  %v6415_v42 = vcombine.high %v1736_v36, %v1740_v38  ;;  %v7187_v36 = vld [vmem:[#allocation14 + $0x3e4] ss:$16 sps:$4 sm:$0xff]   ;;  %v7164_v38 = vld [vmem:[#allocation14 + $0x1e0] ss:$16 sps:$4 sm:$0xff]  }
 0x3d0   :  { %3422 = vmatprep.subr.bf16.mxu0 %v6471_v43  ;;  %v6286_v43 = vcombine.low %v1608_v33, %v1612_v34  ;;  %v7166_v33 = vld [vmem:[#allocation14 + $0x1e4] ss:$16 sps:$4 sm:$0xff]   ;;  %v7179_v34 = vld [vmem:[#allocation14 + $0x200] ss:$16 sps:$4 sm:$0xff]  }
 0x3d2   :  { %3382 = vmatpush2.bf16.msra.mxu1 %v6342_v48  ;;  %v7125_v48 = vld [vmem:[#allocation14 + $0xe0] ss:$16 sps:$4 sm:$0xff]  }
 0x3d3   :  { %3423 = vmatpush2.bf16.msra.mxu0 %v6470_v49  ;;  %3383 = vmatprep.subr.bf16.mxu1 %v6335_v50  ;;  %v1802_v49 = vrot.slane %v8103_v46, %v8058_v14  ;;  %v7130_v50 = vld [vmem:[#allocation14 + $0xc4] ss:$16 sps:$4 sm:$0xff]  }
 0x3d4   :  { %3424 = vmatprep.subr.bf16.mxu0 %v6463_v51  ;;  %v7137_v51 = vld [vmem:[#allocation14 + $0x2e0] ss:$16 sps:$4 sm:$0xff]  }
 0x3d6   :  { %3384 = vmatpush2.bf16.msra.mxu1 %v6334_v56 }
 0x3d7   :  { %3425 = vmatpush2.bf16.msra.mxu0 %v6462_v57  ;;  %3385 = vmatprep.subr.bf16.mxu1 %v6327_v58  ;;  %v7128_v57 = vld [vmem:[#allocation14 + $0xc0] ss:$16 sps:$4 sm:$0xff]  }
 0x3d8   :  { %3426 = vmatprep.subr.bf16.mxu0 %v6455_v59 }
 0x3da   :  { %3386 = vmatpush2.bf16.msra.mxu1 %v6326_v3  ;;  %v7151_v3 = vld [vmem:[#allocation14 + $0x2a4] ss:$16 sps:$4 sm:$0xff]  }
 0x3db   :  { %3427 = vmatpush2.bf16.msra.mxu0 %v6454_v63  ;;  %3387 = vmatprep.subr.bf16.mxu1 %v6319_v4 }
 0x3dc   :  { %3428 = vmatprep.subr.bf16.mxu0 %v6447_v5 }
 0x3de   :  { %3388 = vmatpush2.bf16.msra.mxu1 %v6318_v10 }
 0x3df   :  { %3429 = vmatpush2.bf16.msra.mxu0 %v6446_v11  ;;  %3389 = vmatprep.subr.bf16.mxu1 %v6311_v12  ;;  %v7157_v11 = vld [vmem:[#allocation14 + $0x284] ss:$16 sps:$4 sm:$0xff]  }
 0x3e0   :  { %3430 = vmatprep.subr.bf16.mxu0 %v6439_v15  ;;  %v7134_v15 = vld [vmem:[#allocation14 + $0x80] ss:$16 sps:$4 sm:$0xff]  }
 0x3e2   :  { %3390 = vmatpush2.bf16.msra.mxu1 %v6310_v21  ;;  %v7148_v21 = vld [vmem:[#allocation14 + $0x44] ss:$16 sps:$4 sm:$0xff]  }
 0x3e3   :  { %3431 = vmatpush2.bf16.msra.mxu0 %v6438_v22  ;;  %3391 = vmatprep.subr.bf16.mxu1 %v6303_v23  ;;  %v7161_v22 = vld [vmem:[#allocation14 + $0x260] ss:$16 sps:$4 sm:$0xff]   ;;  %v7169_v23 = vld [vmem:[#allocation14 + $0x244] ss:$16 sps:$4 sm:$0xff]  }
 0x3e4   :  { %3432 = vmatprep.subr.bf16.mxu0 %v6431_v24  ;;  %v7146_v24 = vld [vmem:[#allocation14 + $0x40] ss:$16 sps:$4 sm:$0xff]  }
 0x3e6   :  { %3392 = vmatpush2.bf16.msra.mxu1 %v6302_v29  ;;  %v7160_v29 = vld [vmem:[#allocation14 + $0x4] ss:$16 sps:$4 sm:$0xff]  }
 0x3e7   :  { %3433 = vmatpush2.bf16.msra.mxu0 %v6430_v30  ;;  %3393 = vmatprep.subr.bf16.mxu1 %v6295_v31  ;;  %v7173_v30 = vld [vmem:[#allocation14 + $0x220] ss:$16 sps:$4 sm:$0xff]   ;;  %v7181_v31 = vld [vmem:[#allocation14 + $0x204] ss:$16 sps:$4 sm:$0xff]  }
 0x3e8   :  { %3434 = vmatprep.subr.bf16.mxu0 %v6423_v32  ;;  %v7158_v32 = vld [vmem:[#allocation14] ss:$16 sps:$4 sm:$0xff]  }
 0x3ea   :  { %3394 = vmatpush2.bf16.msra.mxu1 %v6294_v39  ;;  %v7172_v39 = vld [vmem:[#allocation14 + $0x1c4] ss:$16 sps:$4 sm:$0xff]  }
 0x3eb   :  { %3435 = vmatpush2.bf16.msra.mxu0 %v6422_v40  ;;  %3395 = vmatprep.subr.bf16.mxu1 %v6287_v41  ;;  %v7185_v40 = vld [vmem:[#allocation14 + $0x3e0] ss:$16 sps:$4 sm:$0xff]   ;;  %v7193_v41 = vld [vmem:[#allocation14 + $0x3c4] ss:$16 sps:$4 sm:$0xff]  }
 0x3ec   :  { %3436 = vmatprep.subr.bf16.mxu0 %v6415_v42  ;;  %v7170_v42 = vld [vmem:[#allocation14 + $0x1c0] ss:$16 sps:$4 sm:$0xff]  }
 0x3ee   :  { %3396 = vmatpush2.bf16.msra.mxu1 %v6286_v43  ;;  %v7178_v43 = vld [vmem:[#allocation14 + $0x1a4] ss:$16 sps:$4 sm:$0xff]  }
 0x3ef   :  { %3437 = vmatpush2.bf16.msra.mxu0 %v6414_v44  ;;  %5029 = vmatprep.subr.bf16.mxu1 %v7127_v45  ;;  %v7191_v44 = vld [vmem:[#allocation14 + $0x3c0] ss:$16 sps:$4 sm:$0xff]   ;;  %v7199_v45 = vld [vmem:[#allocation14 + $0x3a4] ss:$16 sps:$4 sm:$0xff]  }
 0x3f0   :  { %5070 = vmatprep.subr.bf16.mxu0 %v7139_v47  ;;  %v7176_v47 = vld [vmem:[#allocation14 + $0x1a0] ss:$16 sps:$4 sm:$0xff]  }
 0x3f1   :  { %3398 = vmatmul.mubr.bf16.vlgmr.msra.gmra.mxu1 %v8082_v0  ;;  %v3153_v54 = vpop.f32.mrf.mxu1  ;;  %v3194_v55 = vpop.f32.mrf.mxu0 }
 0x3f2   :  { %3439 = vmatmul.mubr.bf16.vlgmr.msra.gmra.mxu0 %v8084_v1  ;;  %v3154_v56 = vadd.f32 %v3153_v54, %v1802_v49  ;;  %5030 = vmatpush1.bf16.msra.mxu1 %v7125_v48  ;;  %v7131_v1 = vld [vmem:[#allocation14 + $0xa0] ss:$16 sps:$4 sm:$0xff]   ;;  %v7184_v48 = vld [vmem:[#allocation14 + $0x184] ss:$16 sps:$4 sm:$0xff]  }
 0x3f3   :  { %v3155_v58 = vpop.f32.mrf.mxu1  ;;  %v3196_v59 = vpop.f32.mrf.mxu0  ;;  %5031 = vmatprep.subr.bf16.mxu1 %v7130_v50  ;;  %5071 = vmatpush1.bf16.msra.mxu0 %v7137_v51  ;;  %v7197_v49 = vld [vmem:[#allocation14 + $0x3a0] ss:$16 sps:$4 sm:$0xff]   ;;  %v7205_v50 = vld [vmem:[#allocation14 + $0x384] ss:$16 sps:$4 sm:$0xff]  }
 0x3f4   :  { %v3195_v61 = vadd.f32 %v3194_v55, %v3154_v56  ;;  %v3156_v2 = vadd.f32 %v3155_v58, %v1806_v52  ;;  %5072 = vmatprep.subr.bf16.mxu0 %v7145_v53  ;;  %v7182_v51 = vld [vmem:[#allocation14 + $0x180] ss:$16 sps:$4 sm:$0xff]   ;;  %v7190_v52 = vld [vmem:[#allocation14 + $0x164] ss:$16 sps:$4 sm:$0xff]  }
 0x3f5   :  { %v3157_v63 = vpop.f32.mrf.mxu1  ;;  %v3198_v4 = vpop.f32.mrf.mxu0  ;;  %v7203_v53 = vld [vmem:[#allocation14 + $0x380] ss:$16 sps:$4 sm:$0xff]   ;;  %v7211_v54 = vld [vmem:[#allocation14 + $0x364] ss:$16 sps:$4 sm:$0xff]  }
 0x3f6   :  { %v8111_v0 = vmax.f32 %v3195_v61, 0.0  ;;  %v3197_v5 = vadd.f32 %v3196_v59, %v3156_v2  ;;  %5032 = vmatpush1.bf16.msra.mxu1 %v7128_v57  ;;  %v7188_v55 = vld [vmem:[#allocation14 + $0x160] ss:$16 sps:$4 sm:$0xff]   ;;  %v7196_v56 = vld [vmem:[#allocation14 + $0x144] ss:$16 sps:$4 sm:$0xff]  }
 0x3f7   :  { %v3158_v6 = vpop.f32.mrf.mxu1  ;;  %v3199_v7 = vpop.f32.mrf.mxu0  ;;  %5033 = vmatprep.subr.bf16.mxu1 %v7133_v62  ;;  %5073 = vmatpush1.bf16.msra.mxu0 %v7143_v60  ;;  %v7209_v57 = vld [vmem:[#allocation14 + $0x360] ss:$16 sps:$4 sm:$0xff]   ;;  %v7214_v58 = vld [vmem:[#allocation14 + $0x344] ss:$16 sps:$4 sm:$0xff]  }
 0x3f8   :  { %3455 = vst [vmem:[#allocation20] sm:$0xff] %v8111_v0  ;;  %v3448_v10 = vmax.f32 %v3197_v5, 0.0  ;;  %5074 = vmatprep.subr.bf16.mxu0 %v7151_v3  ;;  %v7194_v59 = vld [vmem:[#allocation14 + $0x140] ss:$16 sps:$4 sm:$0xff]   ;;  %v7202_v62 = vld [vmem:[#allocation14 + $0x124] ss:$16 sps:$4 sm:$0xff]  }
 0x3f9   :  { %v7212_v60 = vld [vmem:[#allocation14 + $0x340] ss:$16 sps:$4 sm:$0xff]   ;;  %v7217_v61 = vld [vmem:[#allocation14 + $0x324] ss:$16 sps:$4 sm:$0xff]  }
 0x3fa   :  { %3456 = vst [vmem:[#allocation20 + $0x8] sm:$0xff] %v3448_v10  ;;  %v8114_v12 = vpack.c.bf16 %v3448_v10, %v3448_v10  ;;  %5034 = vmatpush1.bf16.msra.mxu1 %v7131_v1  ;;  %v7200_v2 = vld [vmem:[#allocation14 + $0x120] ss:$16 sps:$4 sm:$0xff]   ;;  %v7208_v3 = vld [vmem:[#allocation14 + $0x104] ss:$16 sps:$4 sm:$0xff]   ;;  %v8121_v10 = vpack.c.bf16 %v8111_v0, %v8111_v0 }
 0x3fb   :  { %5035 = vmatprep.subr.bf16.mxu1 %v7136_v8  ;;  %5075 = vmatpush1.bf16.msra.mxu0 %v7149_v9  ;;  %v7215_v63 = vld [vmem:[#allocation14 + $0x320] ss:$16 sps:$4 sm:$0xff]   ;;  %v7220_v4 = vld [vmem:[#allocation14 + $0x304] ss:$16 sps:$4 sm:$0xff]   ;;  %v1810_v8 = vrot.slane %v8103_v46, %v8066_v35 }
 0x3fc   :  { %5061 = vmatprep.mubr.bf16.mxu1 %v8114_v12  ;;  %5076 = vmatprep.subr.bf16.mxu0 %v7157_v11  ;;  %v7206_v5 = vld [vmem:[#allocation14 + $0x100] ss:$16 sps:$4 sm:$0xff]   ;;  %v7223_v6 = vld [vmem:[#allocation14 + $0x4e4] ss:$16 sps:$4 sm:$0xff]  }
 0x3fd   :  { %v7218_v1 = vld [vmem:[#allocation14 + $0x300] ss:$16 sps:$4 sm:$0xff]   ;;  %v7271_v7 = vld [vmem:[#allocation14 + $0x6e4] ss:$16 sps:$4 sm:$0xff]  }
 0x3fe   :  { %5036 = vmatpush1.bf16.msra.mxu1 %v7134_v15  ;;  %v7221_v9 = vld [vmem:[#allocation14 + $0x4e0] ss:$16 sps:$4 sm:$0xff]   ;;  %v7226_v11 = vld [vmem:[#allocation14 + $0x4c4] ss:$16 sps:$4 sm:$0xff]   ;;  %v1814_v15 = vrot.slane %v8103_v46, %v8072_v37 }
 0x3ff   :  { %5037 = vmatprep.subr.bf16.mxu1 %v7142_v17  ;;  %5077 = vmatpush1.bf16.msra.mxu0 %v7155_v18 }
 0x400   :  { %5078 = vmatprep.subr.bf16.mxu0 %v7163_v19 }
 0x402   :  { %5038 = vmatpush1.bf16.msra.mxu1 %v7140_v20  ;;  %v7224_v20 = vld [vmem:[#allocation14 + $0x4c0] ss:$16 sps:$4 sm:$0xff]  }
 0x403   :  { %5039 = vmatprep.subr.bf16.mxu1 %v7148_v21  ;;  %5079 = vmatpush1.bf16.msra.mxu0 %v7161_v22 }
 0x404   :  { %5080 = vmatprep.subr.bf16.mxu0 %v7169_v23  ;;  %v7229_v23 = vld [vmem:[#allocation14 + $0x4a4] ss:$16 sps:$4 sm:$0xff]  }
 0x406   :  { %5040 = vmatpush1.bf16.msra.mxu1 %v7146_v24 }
 0x407   :  { %5041 = vmatprep.subr.bf16.mxu1 %v7154_v25  ;;  %5081 = vmatpush1.bf16.msra.mxu0 %v7167_v26 }
 0x408   :  { %5082 = vmatprep.subr.bf16.mxu0 %v7175_v27 }
 0x40a   :  { %5042 = vmatpush1.bf16.msra.mxu1 %v7152_v28 }
 0x40b   :  { %5043 = vmatprep.subr.bf16.mxu1 %v7160_v29  ;;  %5083 = vmatpush1.bf16.msra.mxu0 %v7173_v30  ;;  %v7227_v29 = vld [vmem:[#allocation14 + $0x4a0] ss:$16 sps:$4 sm:$0xff]  }
 0x40c   :  { %5084 = vmatprep.subr.bf16.mxu0 %v7181_v31 }
 0x40e   :  { %5044 = vmatpush1.bf16.msra.mxu1 %v7158_v32  ;;  %v7232_v32 = vld [vmem:[#allocation14 + $0x484] ss:$16 sps:$4 sm:$0xff]  }
 0x40f   :  { %5045 = vmatprep.subr.bf16.mxu1 %v7166_v33  ;;  %5085 = vmatpush1.bf16.msra.mxu0 %v7179_v34 }
 0x410   :  { %5086 = vmatprep.subr.bf16.mxu0 %v7187_v36  ;;  %v7230_v36 = vld [vmem:[#allocation14 + $0x480] ss:$16 sps:$4 sm:$0xff]  }
 0x412   :  { %5046 = vmatpush2.bf16.msra.mxu1 %v7164_v38  ;;  %v7269_v38 = vld [vmem:[#allocation14 + $0x6e0] ss:$16 sps:$4 sm:$0xff]  }
 0x413   :  { %5047 = vmatprep.subr.bf16.mxu1 %v7172_v39  ;;  %5087 = vmatpush2.bf16.msra.mxu0 %v7185_v40  ;;  %v7235_v40 = vld [vmem:[#allocation14 + $0x464] ss:$16 sps:$4 sm:$0xff]  }
 0x414   :  { %5088 = vmatprep.subr.bf16.mxu0 %v7193_v41  ;;  %v7277_v41 = vld [vmem:[#allocation14 + $0x6c4] ss:$16 sps:$4 sm:$0xff]  }
 0x416   :  { %5048 = vmatpush2.bf16.msra.mxu1 %v7170_v42  ;;  %v7233_v42 = vld [vmem:[#allocation14 + $0x460] ss:$16 sps:$4 sm:$0xff]  }
 0x417   :  { %5049 = vmatprep.subr.bf16.mxu1 %v7178_v43  ;;  %5089 = vmatpush2.bf16.msra.mxu0 %v7191_v44  ;;  %v7275_v43 = vld [vmem:[#allocation14 + $0x6c0] ss:$16 sps:$4 sm:$0xff]   ;;  %v7238_v44 = vld [vmem:[#allocation14 + $0x444] ss:$16 sps:$4 sm:$0xff]  }
 0x418   :  { %5090 = vmatprep.subr.bf16.mxu0 %v7199_v45  ;;  %v7283_v45 = vld [vmem:[#allocation14 + $0x6a4] ss:$16 sps:$4 sm:$0xff]  }
 0x41a   :  { %5050 = vmatpush2.bf16.msra.mxu1 %v7176_v47  ;;  %v7236_v47 = vld [vmem:[#allocation14 + $0x440] ss:$16 sps:$4 sm:$0xff]  }
 0x41b   :  { %5051 = vmatprep.subr.bf16.mxu1 %v7184_v48  ;;  %5091 = vmatpush2.bf16.msra.mxu0 %v7197_v49  ;;  %v7281_v48 = vld [vmem:[#allocation14 + $0x6a0] ss:$16 sps:$4 sm:$0xff]   ;;  %v7241_v49 = vld [vmem:[#allocation14 + $0x424] ss:$16 sps:$4 sm:$0xff]  }
 0x41c   :  { %5092 = vmatprep.subr.bf16.mxu0 %v7205_v50  ;;  %v7289_v50 = vld [vmem:[#allocation14 + $0x684] ss:$16 sps:$4 sm:$0xff]  }
 0x41e   :  { %5052 = vmatpush2.bf16.msra.mxu1 %v7182_v51  ;;  %v7239_v51 = vld [vmem:[#allocation14 + $0x420] ss:$16 sps:$4 sm:$0xff]  }
 0x41f   :  { %5053 = vmatprep.subr.bf16.mxu1 %v7190_v52  ;;  %5093 = vmatpush2.bf16.msra.mxu0 %v7203_v53  ;;  %v7287_v52 = vld [vmem:[#allocation14 + $0x680] ss:$16 sps:$4 sm:$0xff]   ;;  %v7244_v53 = vld [vmem:[#allocation14 + $0x404] ss:$16 sps:$4 sm:$0xff]  }
 0x420   :  { %5094 = vmatprep.subr.bf16.mxu0 %v7211_v54  ;;  %v7295_v54 = vld [vmem:[#allocation14 + $0x664] ss:$16 sps:$4 sm:$0xff]  }
 0x422   :  { %5054 = vmatpush2.bf16.msra.mxu1 %v7188_v55  ;;  %v7242_v55 = vld [vmem:[#allocation14 + $0x400] ss:$16 sps:$4 sm:$0xff]  }
 0x423   :  { %5055 = vmatprep.subr.bf16.mxu1 %v7196_v56  ;;  %5095 = vmatpush2.bf16.msra.mxu0 %v7209_v57  ;;  %v7293_v56 = vld [vmem:[#allocation14 + $0x660] ss:$16 sps:$4 sm:$0xff]   ;;  %v7247_v57 = vld [vmem:[#allocation14 + $0x5e4] ss:$16 sps:$4 sm:$0xff]  }
 0x424   :  { %5096 = vmatprep.subr.bf16.mxu0 %v7214_v58  ;;  %v7301_v58 = vld [vmem:[#allocation14 + $0x644] ss:$16 sps:$4 sm:$0xff]  }
 0x426   :  { %5056 = vmatpush2.bf16.msra.mxu1 %v7194_v59  ;;  %v7245_v59 = vld [vmem:[#allocation14 + $0x5e0] ss:$16 sps:$4 sm:$0xff]  }
 0x427   :  { %5057 = vmatprep.subr.bf16.mxu1 %v7202_v62  ;;  %5097 = vmatpush2.bf16.msra.mxu0 %v7212_v60  ;;  %v7299_v62 = vld [vmem:[#allocation14 + $0x640] ss:$16 sps:$4 sm:$0xff]   ;;  %v7250_v60 = vld [vmem:[#allocation14 + $0x5c4] ss:$16 sps:$4 sm:$0xff]  }
 0x428   :  { %5098 = vmatprep.subr.bf16.mxu0 %v7217_v61  ;;  %v7307_v61 = vld [vmem:[#allocation14 + $0x624] ss:$16 sps:$4 sm:$0xff]  }
 0x42a   :  { %5058 = vmatpush2.bf16.msra.mxu1 %v7200_v2  ;;  %v7248_v2 = vld [vmem:[#allocation14 + $0x5c0] ss:$16 sps:$4 sm:$0xff]  }
 0x42b   :  { %5059 = vmatprep.subr.bf16.mxu1 %v7208_v3  ;;  %5099 = vmatpush2.bf16.msra.mxu0 %v7215_v63  ;;  %v7305_v3 = vld [vmem:[#allocation14 + $0x620] ss:$16 sps:$4 sm:$0xff]   ;;  %v7253_v63 = vld [vmem:[#allocation14 + $0x5a4] ss:$16 sps:$4 sm:$0xff]  }
 0x42c   :  { %5100 = vmatprep.subr.bf16.mxu0 %v7220_v4  ;;  %v7313_v4 = vld [vmem:[#allocation14 + $0x604] ss:$16 sps:$4 sm:$0xff]  }
 0x42e   :  { %5060 = vmatpush2.bf16.msra.mxu1 %v7206_v5  ;;  %v7251_v5 = vld [vmem:[#allocation14 + $0x5a0] ss:$16 sps:$4 sm:$0xff]  }
 0x42f   :  { %5101 = vmatpush2.bf16.msra.mxu0 %v7218_v1  ;;  %5111 = vmatprep.subr.bf16.mxu1 %v7223_v6  ;;  %v7311_v1 = vld [vmem:[#allocation14 + $0x600] ss:$16 sps:$4 sm:$0xff]   ;;  %v7256_v6 = vld [vmem:[#allocation14 + $0x584] ss:$16 sps:$4 sm:$0xff]  }
 0x430   :  { %5152 = vmatprep.subr.bf16.mxu0 %v7271_v7  ;;  %v7319_v7 = vld [vmem:[#allocation14 + $0x7e4] ss:$16 sps:$4 sm:$0xff]  }
 0x431   :  { %v3235_v17 = vpop.f32.mrf.mxu1  ;;  %v3276_v18 = vpop.f32.mrf.mxu0  ;;  %5062 = vmatmul.mubr.bf16.vlgmr.msra.gmra.mxu1 %v8121_v10 }
 0x432   :  { %v3236_v19 = vadd.f32 %v3235_v17, %v1810_v8  ;;  %5112 = vmatpush1.bf16.msra.mxu1 %v7221_v9  ;;  %v7254_v8 = vld [vmem:[#allocation14 + $0x580] ss:$16 sps:$4 sm:$0xff]  }
 0x433   :  { %v3237_v21 = vpop.f32.mrf.mxu1  ;;  %v3278_v22 = vpop.f32.mrf.mxu0  ;;  %5113 = vmatprep.subr.bf16.mxu1 %v7226_v11  ;;  %v7317_v9 = vld [vmem:[#allocation14 + $0x7e0] ss:$16 sps:$4 sm:$0xff]   ;;  %v7259_v11 = vld [vmem:[#allocation14 + $0x564] ss:$16 sps:$4 sm:$0xff]  }
 0x434   :  { %v3277_v0 = vadd.f32 %v3276_v18, %v3236_v19  ;;  %v3238_v24 = vadd.f32 %v3237_v21, %v1814_v15  ;;  %v7325_v15 = vld [vmem:[#allocation14 + $0x7c4] ss:$16 sps:$4 sm:$0xff]   ;;  %v7257_v17 = vld [vmem:[#allocation14 + $0x560] ss:$16 sps:$4 sm:$0xff]  }
 0x435   :  { %v3239_v25 = vpop.f32.mrf.mxu1  ;;  %v3280_v26 = vpop.f32.mrf.mxu0  ;;  %v7323_v18 = vld [vmem:[#allocation14 + $0x7c0] ss:$16 sps:$4 sm:$0xff]   ;;  %v7262_v19 = vld [vmem:[#allocation14 + $0x544] ss:$16 sps:$4 sm:$0xff]  }
 0x436   :  { %v3449_v27 = vmax.f32 %v3277_v0, 0.0  ;;  %v3279_v28 = vadd.f32 %v3278_v22, %v3238_v24  ;;  %5114 = vmatpush1.bf16.msra.mxu1 %v7224_v20  ;;  %v7331_v20 = vld [vmem:[#allocation14 + $0x7a4] ss:$16 sps:$4 sm:$0xff]   ;;  %v7260_v21 = vld [vmem:[#allocation14 + $0x540] ss:$16 sps:$4 sm:$0xff]  }
 0x437   :  { %v3240_v30 = vpop.f32.mrf.mxu1  ;;  %v3281_v31 = vpop.f32.mrf.mxu0  ;;  %5115 = vmatprep.subr.bf16.mxu1 %v7229_v23  ;;  %v7329_v22 = vld [vmem:[#allocation14 + $0x7a0] ss:$16 sps:$4 sm:$0xff]   ;;  %v7265_v23 = vld [vmem:[#allocation14 + $0x524] ss:$16 sps:$4 sm:$0xff]  }
 0x438   :  { %3457 = vst [vmem:[#allocation20 + $0x10] sm:$0xff] %v3449_v27  ;;  %v3450_v33 = vmax.f32 %v3279_v28, 0.0  ;;  %v8128_v39 = vpack.c.bf16 %v3449_v27, %v3449_v27  ;;  %v7337_v0 = vld [vmem:[#allocation14 + $0x784] ss:$16 sps:$4 sm:$0xff]   ;;  %v7263_v24 = vld [vmem:[#allocation14 + $0x520] ss:$16 sps:$4 sm:$0xff]  }
 0x439   :  { %v7335_v25 = vld [vmem:[#allocation14 + $0x780] ss:$16 sps:$4 sm:$0xff]   ;;  %v7268_v26 = vld [vmem:[#allocation14 + $0x504] ss:$16 sps:$4 sm:$0xff]   ;;  %v1817_v28 = vsub.s32 4, %v8055_v13 }
 0x43a   :  { %3458 = vst [vmem:[#allocation20 + $0x18] sm:$0xff] %v3450_v33  ;;  %v8126_v34 = vpack.c.bf16 %v3450_v33, %v3450_v33  ;;  %5116 = vmatpush1.bf16.msra.mxu1 %v7227_v29  ;;  %v7343_v27 = vld [vmem:[#allocation14 + $0x764] ss:$16 sps:$4 sm:$0xff]   ;;  %v7266_v29 = vld [vmem:[#allocation14 + $0x500] ss:$16 sps:$4 sm:$0xff]   ;;  %v1821_v33 = vsub.s32 5, %v8055_v13 }
 0x43b   :  { %5117 = vmatprep.subr.bf16.mxu1 %v7232_v32  ;;  %v7341_v30 = vld [vmem:[#allocation14 + $0x760] ss:$16 sps:$4 sm:$0xff]   ;;  %v7274_v31 = vld [vmem:[#allocation14 + $0xec] ss:$16 sps:$4 sm:$0xff]   ;;  %v7349_v32 = vld [vmem:[#allocation14 + $0x744] ss:$16 sps:$4 sm:$0xff]  }
 0x43c   :  { %5102 = vmatprep.mubr.bf16.mxu0 %v8126_v34 }
 0x43d   :  { %5103 = vmatmul.mubr.bf16.vlgmr.msra.gmra.mxu0 %v8128_v39 }
 0x43e   :  { %5118 = vmatpush1.bf16.msra.mxu1 %v7230_v36  ;;  %5153 = vmatpush1.bf16.msra.mxu0 %v7269_v38  ;;  %v1818_v36 = vrot.slane %v8103_v46, %v1817_v28  ;;  %v7347_v38 = vld [vmem:[#allocation14 + $0x740] ss:$16 sps:$4 sm:$0xff]   ;;  %v1825_v28 = vsub.s32 6, %v8055_v13 }
 0x43f   :  { %5119 = vmatprep.subr.bf16.mxu1 %v7235_v40  ;;  %5154 = vmatprep.subr.bf16.mxu0 %v7277_v41  ;;  %v7355_v40 = vld [vmem:[#allocation14 + $0x724] ss:$16 sps:$4 sm:$0xff]   ;;  %v1822_v41 = vrot.slane %v8103_v46, %v1821_v33  ;;  %v7358_v33 = vld [vmem:[#allocation14 + $0x12c] ss:$16 sps:$4 sm:$0xff]  }
 0x442   :  { %5120 = vmatpush1.bf16.msra.mxu1 %v7233_v42  ;;  %5155 = vmatpush1.bf16.msra.mxu0 %v7275_v43 }
 0x443   :  { %5121 = vmatprep.subr.bf16.mxu1 %v7238_v44  ;;  %5156 = vmatprep.subr.bf16.mxu0 %v7283_v45  ;;  %v7353_v45 = vld [vmem:[#allocation14 + $0x720] ss:$16 sps:$4 sm:$0xff]  }
 0x446   :  { %5122 = vmatpush1.bf16.msra.mxu1 %v7236_v47  ;;  %5157 = vmatpush1.bf16.msra.mxu0 %v7281_v48  ;;  %v7361_v48 = vld [vmem:[#allocation14 + $0x704] ss:$16 sps:$4 sm:$0xff]  }
 0x447   :  { %5123 = vmatprep.subr.bf16.mxu1 %v7241_v49  ;;  %5158 = vmatprep.subr.bf16.mxu0 %v7289_v50 }
 0x44a   :  { %5124 = vmatpush1.bf16.msra.mxu1 %v7239_v51  ;;  %5159 = vmatpush1.bf16.msra.mxu0 %v7287_v52 }
 0x44b   :  { %5125 = vmatprep.subr.bf16.mxu1 %v7244_v53  ;;  %5160 = vmatprep.subr.bf16.mxu0 %v7295_v54 }
 0x44e   :  { %5126 = vmatpush1.bf16.msra.mxu1 %v7242_v55  ;;  %5161 = vmatpush1.bf16.msra.mxu0 %v7293_v56  ;;  %v7359_v56 = vld [vmem:[#allocation14 + $0x700] ss:$16 sps:$4 sm:$0xff]  }
 0x44f   :  { %5127 = vmatprep.subr.bf16.mxu1 %v7247_v57  ;;  %5162 = vmatprep.subr.bf16.mxu0 %v7301_v58  ;;  %v7367_v58 = vld [vmem:[#allocation14 + $0x2ec] ss:$16 sps:$4 sm:$0xff]  }
 0x452   :  { %5128 = vmatpush2.bf16.msra.mxu1 %v7245_v59  ;;  %5163 = vmatpush1.bf16.msra.mxu0 %v7299_v62 }
 0x453   :  { %5129 = vmatprep.subr.bf16.mxu1 %v7250_v60  ;;  %5164 = vmatprep.subr.bf16.mxu0 %v7307_v61  ;;  %v7272_v61 = vld [vmem:[#allocation14 + $0xe8] ss:$16 sps:$4 sm:$0xff]  }
 0x456   :  { %5130 = vmatpush2.bf16.msra.mxu1 %v7248_v2  ;;  %5165 = vmatpush1.bf16.msra.mxu0 %v7305_v3  ;;  %v7280_v3 = vld [vmem:[#allocation14 + $0xcc] ss:$16 sps:$4 sm:$0xff]  }
 0x457   :  { %5131 = vmatprep.subr.bf16.mxu1 %v7253_v63  ;;  %5166 = vmatprep.subr.bf16.mxu0 %v7313_v4  ;;  %v7278_v63 = vld [vmem:[#allocation14 + $0xc8] ss:$16 sps:$4 sm:$0xff]   ;;  %v7286_v4 = vld [vmem:[#allocation14 + $0xac] ss:$16 sps:$4 sm:$0xff]  }
 0x45a   :  { %5132 = vmatpush2.bf16.msra.mxu1 %v7251_v5  ;;  %5167 = vmatpush1.bf16.msra.mxu0 %v7311_v1  ;;  %v7284_v5 = vld [vmem:[#allocation14 + $0xa8] ss:$16 sps:$4 sm:$0xff]   ;;  %v7292_v1 = vld [vmem:[#allocation14 + $0x8c] ss:$16 sps:$4 sm:$0xff]  }
 0x45b   :  { %5133 = vmatprep.subr.bf16.mxu1 %v7256_v6  ;;  %5168 = vmatprep.subr.bf16.mxu0 %v7319_v7  ;;  %v7290_v6 = vld [vmem:[#allocation14 + $0x88] ss:$16 sps:$4 sm:$0xff]   ;;  %v7298_v7 = vld [vmem:[#allocation14 + $0x6c] ss:$16 sps:$4 sm:$0xff]  }
 0x45e   :  { %5134 = vmatpush2.bf16.msra.mxu1 %v7254_v8  ;;  %5169 = vmatpush2.bf16.msra.mxu0 %v7317_v9  ;;  %v7296_v8 = vld [vmem:[#allocation14 + $0x68] ss:$16 sps:$4 sm:$0xff]   ;;  %v7304_v9 = vld [vmem:[#allocation14 + $0x4c] ss:$16 sps:$4 sm:$0xff]  }
 0x45f   :  { %5135 = vmatprep.subr.bf16.mxu1 %v7259_v11  ;;  %5170 = vmatprep.subr.bf16.mxu0 %v7325_v15  ;;  %v7302_v11 = vld [vmem:[#allocation14 + $0x48] ss:$16 sps:$4 sm:$0xff]   ;;  %v7310_v15 = vld [vmem:[#allocation14 + $0x2c] ss:$16 sps:$4 sm:$0xff]  }
 0x462   :  { %5136 = vmatpush2.bf16.msra.mxu1 %v7257_v17  ;;  %5171 = vmatpush2.bf16.msra.mxu0 %v7323_v18  ;;  %v7316_v17 = vld [vmem:[#allocation14 + $0xc] ss:$16 sps:$4 sm:$0xff]   ;;  %v7314_v18 = vld [vmem:[#allocation14 + $0x8] ss:$16 sps:$4 sm:$0xff]  }
 0x463   :  { %5137 = vmatprep.subr.bf16.mxu1 %v7262_v19  ;;  %5172 = vmatprep.subr.bf16.mxu0 %v7331_v20  ;;  %v7322_v19 = vld [vmem:[#allocation14 + $0x1ec] ss:$16 sps:$4 sm:$0xff]   ;;  %v7320_v20 = vld [vmem:[#allocation14 + $0x1e8] ss:$16 sps:$4 sm:$0xff]  }
 0x466   :  { %5138 = vmatpush2.bf16.msra.mxu1 %v7260_v21  ;;  %5173 = vmatpush2.bf16.msra.mxu0 %v7329_v22  ;;  %v7328_v21 = vld [vmem:[#allocation14 + $0x1cc] ss:$16 sps:$4 sm:$0xff]   ;;  %v7326_v22 = vld [vmem:[#allocation14 + $0x1c8] ss:$16 sps:$4 sm:$0xff]  }
 0x467   :  { %5139 = vmatprep.subr.bf16.mxu1 %v7265_v23  ;;  %5174 = vmatprep.subr.bf16.mxu0 %v7337_v0  ;;  %v7334_v23 = vld [vmem:[#allocation14 + $0x1ac] ss:$16 sps:$4 sm:$0xff]   ;;  %v7332_v0 = vld [vmem:[#allocation14 + $0x1a8] ss:$16 sps:$4 sm:$0xff]  }
 0x46a   :  { %5140 = vmatpush2.bf16.msra.mxu1 %v7263_v24  ;;  %5175 = vmatpush2.bf16.msra.mxu0 %v7335_v25  ;;  %v7340_v24 = vld [vmem:[#allocation14 + $0x18c] ss:$16 sps:$4 sm:$0xff]   ;;  %v7338_v25 = vld [vmem:[#allocation14 + $0x188] ss:$16 sps:$4 sm:$0xff]  }
 0x46b   :  { %5141 = vmatprep.subr.bf16.mxu1 %v7268_v26  ;;  %5176 = vmatprep.subr.bf16.mxu0 %v7343_v27  ;;  %v7346_v26 = vld [vmem:[#allocation14 + $0x16c] ss:$16 sps:$4 sm:$0xff]   ;;  %v7344_v27 = vld [vmem:[#allocation14 + $0x168] ss:$16 sps:$4 sm:$0xff]  }
 0x46e   :  { %5142 = vmatpush2.bf16.msra.mxu1 %v7266_v29  ;;  %5177 = vmatpush2.bf16.msra.mxu0 %v7341_v30  ;;  %v7352_v29 = vld [vmem:[#allocation14 + $0x14c] ss:$16 sps:$4 sm:$0xff]   ;;  %v1829_v30 = vsub.s32 7, %v8055_v13 }
 0x46f   :  { %5193 = vmatprep.subr.bf16.mxu1 %v7274_v31  ;;  %5178 = vmatprep.subr.bf16.mxu0 %v7349_v32  ;;  %v7350_v31 = vld [vmem:[#allocation14 + $0x148] ss:$16 sps:$4 sm:$0xff]   ;;  %v1826_v32 = vrot.slane %v8103_v46, %v1825_v28  ;;  %v7418_v28 = vld [vmem:[#allocation14 + $0x5ec] ss:$16 sps:$4 sm:$0xff]  }
 0x471   :  { %v3317_v42 = vpop.f32.mrf.mxu1 }
 0x472   :  { %v3318_v43 = vadd.f32 %v3317_v42, %v1818_v36  ;;  %v3358_v44 = vpop.f32.mrf.mxu0  ;;  %5179 = vmatpush2.bf16.msra.mxu0 %v7347_v38  ;;  %v1830_v36 = vrot.slane %v8103_v46, %v1829_v30  ;;  %v7356_v42 = vld [vmem:[#allocation14 + $0x128] ss:$16 sps:$4 sm:$0xff]   ;;  %v7370_v46 = vld [vmem:[#allocation14 + $0x4ec] ss:$16 sps:$4 sm:$0xff]  }
 0x473   :  { %v3319_v47 = vpop.f32.mrf.mxu1  ;;  %5180 = vmatprep.subr.bf16.mxu0 %v7355_v40  ;;  %v7416_v30 = vld [vmem:[#allocation14 + $0x5e8] ss:$16 sps:$4 sm:$0xff]  }
 0x474   :  { %v3359_v49 = vadd.f32 %v3358_v44, %v3318_v43  ;;  %v3320_v50 = vadd.f32 %v3319_v47, %v1822_v41  ;;  %v3360_v51 = vpop.f32.mrf.mxu0  ;;  %v7364_v44 = vld [vmem:[#allocation14 + $0x10c] ss:$16 sps:$4 sm:$0xff]  }
 0x475   :  { %v3321_v52 = vpop.f32.mrf.mxu1 }
 0x476   :  { %v3451_v53 = vmax.f32 %v3359_v49, 0.0  ;;  %v3361_v54 = vadd.f32 %v3360_v51, %v3320_v50  ;;  %v3362_v55 = vpop.f32.mrf.mxu0  ;;  %5181 = vmatpush2.bf16.msra.mxu0 %v7353_v45  ;;  %v7362_v52 = vld [vmem:[#allocation14 + $0x108] ss:$16 sps:$4 sm:$0xff]  }
 0x477   :  { %v3322_v57 = vpop.f32.mrf.mxu1  ;;  %5182 = vmatprep.subr.bf16.mxu0 %v7361_v48 }
 0x478   :  { %3459 = vst [vmem:[#allocation20 + $0x20] sm:$0xff] %v3451_v53  ;;  %v3452_v59 = vmax.f32 %v3361_v54, 0.0  ;;  %v3363_v62 = vpop.f32.mrf.mxu0  ;;  %v8138_v2 = vpack.c.bf16 %v3451_v53, %v3451_v53  ;;  %v7365_v57 = vld [vmem:[#allocation14 + $0x2e8] ss:$16 sps:$4 sm:$0xff]  }
 0x479   :  { %v7373_v62 = vld [vmem:[#allocation14 + $0x2cc] ss:$16 sps:$4 sm:$0xff]  }
 0x47a   :  { %3460 = vst [vmem:[#allocation20 + $0x28] sm:$0xff] %v3452_v59  ;;  %v8136_v60 = vpack.c.bf16 %v3452_v59, %v3452_v59  ;;  %5183 = vmatpush2.bf16.msra.mxu0 %v7359_v56 }
 0x47b   :  { %5234 = vmatprep.subr.bf16.mxu0 %v7367_v58  ;;  %v7368_v58 = vld [vmem:[#allocation14 + $0x4e8] ss:$16 sps:$4 sm:$0xff]  }
 0x47c   :  { %5143 = vmatprep.mubr.bf16.mxu1 %v8136_v60 }
 0x47d   :  { %5144 = vmatmul.mubr.bf16.vlgmr.msra.gmra.mxu1 %v8138_v2 }
 0x47e   :  { %5194 = vmatpush1.bf16.msra.mxu1 %v7272_v61  ;;  %5225 = vmatprep.mubr.bf16.mxu1 %v8114_v12  ;;  %v7308_v12 = vld [vmem:[#allocation14 + $0x28] ss:$16 sps:$4 sm:$0xff]   ;;  %v7376_v61 = vld [vmem:[#allocation14 + $0x4cc] ss:$16 sps:$4 sm:$0xff]  }
 0x47f   :  { %5195 = vmatprep.subr.bf16.mxu1 %v7280_v3  ;;  %v7371_v3 = vld [vmem:[#allocation14 + $0x2c8] ss:$16 sps:$4 sm:$0xff]  }
 0x482   :  { %5196 = vmatpush1.bf16.msra.mxu1 %v7278_v63  ;;  %v7374_v63 = vld [vmem:[#allocation14 + $0x4c8] ss:$16 sps:$4 sm:$0xff]  }
 0x483   :  { %5197 = vmatprep.subr.bf16.mxu1 %v7286_v4  ;;  %v7379_v4 = vld [vmem:[#allocation14 + $0x2ac] ss:$16 sps:$4 sm:$0xff]  }
 0x486   :  { %5198 = vmatpush1.bf16.msra.mxu1 %v7284_v5  ;;  %v7382_v5 = vld [vmem:[#allocation14 + $0x4ac] ss:$16 sps:$4 sm:$0xff]  }
 0x487   :  { %5199 = vmatprep.subr.bf16.mxu1 %v7292_v1  ;;  %v7377_v1 = vld [vmem:[#allocation14 + $0x2a8] ss:$16 sps:$4 sm:$0xff]  }
 0x48a   :  { %5200 = vmatpush1.bf16.msra.mxu1 %v7290_v6  ;;  %v7380_v6 = vld [vmem:[#allocation14 + $0x4a8] ss:$16 sps:$4 sm:$0xff]  }
 0x48b   :  { %5201 = vmatprep.subr.bf16.mxu1 %v7298_v7  ;;  %v7388_v7 = vld [vmem:[#allocation14 + $0x48c] ss:$16 sps:$4 sm:$0xff]  }
 0x48e   :  { %5202 = vmatpush1.bf16.msra.mxu1 %v7296_v8  ;;  %v7383_v8 = vld [vmem:[#allocation14 + $0x288] ss:$16 sps:$4 sm:$0xff]  }
 0x48f   :  { %5203 = vmatprep.subr.bf16.mxu1 %v7304_v9  ;;  %v7386_v9 = vld [vmem:[#allocation14 + $0x488] ss:$16 sps:$4 sm:$0xff]  }
 0x492   :  { %5204 = vmatpush1.bf16.msra.mxu1 %v7302_v11  ;;  %v7389_v11 = vld [vmem:[#allocation14 + $0x268] ss:$16 sps:$4 sm:$0xff]  }
 0x493   :  { %5205 = vmatprep.subr.bf16.mxu1 %v7310_v15  ;;  %v7392_v15 = vld [vmem:[#allocation14 + $0x468] ss:$16 sps:$4 sm:$0xff]  }
 0x496   :  { %5206 = vmatpush1.bf16.msra.mxu1 %v7308_v12  ;;  %v7397_v12 = vld [vmem:[#allocation14 + $0x24c] ss:$16 sps:$4 sm:$0xff]  }
 0x497   :  { %5207 = vmatprep.subr.bf16.mxu1 %v7316_v17  ;;  %v7400_v17 = vld [vmem:[#allocation14 + $0x44c] ss:$16 sps:$4 sm:$0xff]  }
 0x49a   :  { %5208 = vmatpush1.bf16.msra.mxu1 %v7314_v18  ;;  %v7395_v18 = vld [vmem:[#allocation14 + $0x248] ss:$16 sps:$4 sm:$0xff]  }
 0x49b   :  { %5209 = vmatprep.subr.bf16.mxu1 %v7322_v19  ;;  %v7398_v19 = vld [vmem:[#allocation14 + $0x448] ss:$16 sps:$4 sm:$0xff]  }
 0x49e   :  { %5210 = vmatpush2.bf16.msra.mxu1 %v7320_v20  ;;  %v7403_v20 = vld [vmem:[#allocation14 + $0x22c] ss:$16 sps:$4 sm:$0xff]  }
 0x49f   :  { %5211 = vmatprep.subr.bf16.mxu1 %v7328_v21  ;;  %v7406_v21 = vld [vmem:[#allocation14 + $0x42c] ss:$16 sps:$4 sm:$0xff]  }
 0x4a2   :  { %5212 = vmatpush2.bf16.msra.mxu1 %v7326_v22  ;;  %v7401_v22 = vld [vmem:[#allocation14 + $0x228] ss:$16 sps:$4 sm:$0xff]  }
 0x4a3   :  { %5213 = vmatprep.subr.bf16.mxu1 %v7334_v23  ;;  %v7404_v23 = vld [vmem:[#allocation14 + $0x428] ss:$16 sps:$4 sm:$0xff]  }
 0x4a6   :  { %5214 = vmatpush2.bf16.msra.mxu1 %v7332_v0  ;;  %v7409_v0 = vld [vmem:[#allocation14 + $0x20c] ss:$16 sps:$4 sm:$0xff]  }
 0x4a7   :  { %5215 = vmatprep.subr.bf16.mxu1 %v7340_v24  ;;  %v7412_v24 = vld [vmem:[#allocation14 + $0x40c] ss:$16 sps:$4 sm:$0xff]  }
 0x4aa   :  { %5216 = vmatpush2.bf16.msra.mxu1 %v7338_v25  ;;  %v7407_v25 = vld [vmem:[#allocation14 + $0x208] ss:$16 sps:$4 sm:$0xff]  }
 0x4ab   :  { %5217 = vmatprep.subr.bf16.mxu1 %v7346_v26  ;;  %v7410_v26 = vld [vmem:[#allocation14 + $0x408] ss:$16 sps:$4 sm:$0xff]  }
 0x4ae   :  { %5218 = vmatpush2.bf16.msra.mxu1 %v7344_v27  ;;  %v7415_v27 = vld [vmem:[#allocation14 + $0x3ec] ss:$16 sps:$4 sm:$0xff]  }
 0x4af   :  { %5219 = vmatprep.subr.bf16.mxu1 %v7352_v29  ;;  %v7413_v29 = vld [vmem:[#allocation14 + $0x3e8] ss:$16 sps:$4 sm:$0xff]  }
 0x4b1   :  { %v3399_v38 = vpop.f32.mrf.mxu1 }
 0x4b2   :  { %v3400_v40 = vadd.f32 %v3399_v38, %v1826_v32  ;;  %v3440_v41 = vpop.f32.mrf.mxu0  ;;  %5220 = vmatpush2.bf16.msra.mxu1 %v7350_v31  ;;  %v7421_v31 = vld [vmem:[#allocation14 + $0x3cc] ss:$16 sps:$4 sm:$0xff]  }
 0x4b3   :  { %v3401_v43 = vpop.f32.mrf.mxu1  ;;  %5221 = vmatprep.subr.bf16.mxu1 %v7358_v33  ;;  %v7424_v32 = vld [vmem:[#allocation14 + $0x5cc] ss:$16 sps:$4 sm:$0xff]   ;;  %v7419_v33 = vld [vmem:[#allocation14 + $0x3c8] ss:$16 sps:$4 sm:$0xff]  }
 0x4b4   :  { %v3441_v45 = vadd.f32 %v3440_v41, %v3400_v40  ;;  %v3402_v47 = vadd.f32 %v3401_v43, %v1830_v36  ;;  %v3442_v48 = vpop.f32.mrf.mxu0  ;;  %v7422_v36 = vld [vmem:[#allocation14 + $0x5c8] ss:$16 sps:$4 sm:$0xff]   ;;  %v7427_v38 = vld [vmem:[#allocation14 + $0x3ac] ss:$16 sps:$4 sm:$0xff]  }
 0x4b5   :  { %v3403_v13 = vpop.f32.mrf.mxu1  ;;  %v7430_v40 = vld [vmem:[#allocation14 + $0x5ac] ss:$16 sps:$4 sm:$0xff]   ;;  %v7425_v41 = vld [vmem:[#allocation14 + $0x3a8] ss:$16 sps:$4 sm:$0xff]  }
 0x4b6   :  { %v3453_v49 = vmax.f32 %v3441_v45, 0.0  ;;  %v3443_v50 = vadd.f32 %v3442_v48, %v3402_v47  ;;  %v3444_v51 = vpop.f32.mrf.mxu0  ;;  %5222 = vmatpush2.bf16.msra.mxu1 %v7356_v42  ;;  %v7428_v42 = vld [vmem:[#allocation14 + $0x5a8] ss:$16 sps:$4 sm:$0xff]   ;;  %v7433_v43 = vld [vmem:[#allocation14 + $0x38c] ss:$16 sps:$4 sm:$0xff]  }
 0x4b7   :  { %v3404_v53 = vpop.f32.mrf.mxu1  ;;  %5223 = vmatprep.subr.bf16.mxu1 %v7364_v44  ;;  %v7436_v44 = vld [vmem:[#allocation14 + $0x58c] ss:$16 sps:$4 sm:$0xff]   ;;  %v7431_v45 = vld [vmem:[#allocation14 + $0x388] ss:$16 sps:$4 sm:$0xff]  }
 0x4b8   :  { %3461 = vst [vmem:[#allocation20 + $0x30] sm:$0xff] %v3453_v49  ;;  %v3454_v54 = vmax.f32 %v3443_v50, 0.0  ;;  %v3445_v55 = vpop.f32.mrf.mxu0  ;;  %v8149_v59 = vpack.c.bf16 %v3453_v49, %v3453_v49  ;;  %v7434_v47 = vld [vmem:[#allocation14 + $0x588] ss:$16 sps:$4 sm:$0xff]   ;;  %v7439_v48 = vld [vmem:[#allocation14 + $0x36c] ss:$16 sps:$4 sm:$0xff]  }
 0x4b9   :  { %v7442_v13 = vld [vmem:[#allocation14 + $0x56c] ss:$16 sps:$4 sm:$0xff]   ;;  %v7437_v49 = vld [vmem:[#allocation14 + $0x368] ss:$16 sps:$4 sm:$0xff]  }
 0x4ba   :  { %3462 = vst [vmem:[#allocation20 + $0x38] sm:$0xff] %v3454_v54  ;;  %v8147_v56 = vpack.c.bf16 %v3454_v54, %v3454_v54  ;;  %5224 = vmatpush2.bf16.msra.mxu1 %v7362_v52  ;;  %v7440_v50 = vld [vmem:[#allocation14 + $0x568] ss:$16 sps:$4 sm:$0xff]   ;;  %v7445_v51 = vld [vmem:[#allocation14 + $0x34c] ss:$16 sps:$4 sm:$0xff]  }
 0x4bb   :  { %5275 = vmatprep.subr.bf16.mxu1 %v7370_v46  ;;  %v7448_v52 = vld [vmem:[#allocation14 + $0x54c] ss:$16 sps:$4 sm:$0xff]   ;;  %v7443_v53 = vld [vmem:[#allocation14 + $0x348] ss:$16 sps:$4 sm:$0xff]  }
 0x4bc   :  { %5184 = vmatprep.mubr.bf16.mxu0 %v8147_v56  ;;  %v7446_v46 = vld [vmem:[#allocation14 + $0x548] ss:$16 sps:$4 sm:$0xff]   ;;  %v7451_v54 = vld [vmem:[#allocation14 + $0x32c] ss:$16 sps:$4 sm:$0xff]  }
 0x4bd   :  { %5226 = vmatmul.mubr.bf16.vlgmr.msra.gmra.mxu1 %v8121_v10  ;;  %5185 = vmatmul.mubr.bf16.vlgmr.msra.gmra.mxu0 %v8149_v59  ;;  %v7385_v10 = vld [vmem:[#allocation14 + $0x28c] ss:$16 sps:$4 sm:$0xff]  }
 0x4be   :  { %5235 = vmatpush1.bf16.msra.mxu0 %v7365_v57  ;;  %5276 = vmatpush1.bf16.msra.mxu1 %v7368_v58  ;;  %v7454_v55 = vld [vmem:[#allocation14 + $0x52c] ss:$16 sps:$4 sm:$0xff]   ;;  %v7449_v58 = vld [vmem:[#allocation14 + $0x328] ss:$16 sps:$4 sm:$0xff]  }
 0x4bf   :  { %5307 = vmatprep.mubr.bf16.mxu1 %v8136_v60  ;;  %5266 = vmatprep.mubr.bf16.mxu0 %v8126_v34  ;;  %v7391_v60 = vld [vmem:[#allocation14 + $0x26c] ss:$16 sps:$4 sm:$0xff]  }
 0x4c0   :  { %5236 = vmatprep.subr.bf16.mxu0 %v7373_v62  ;;  %5277 = vmatprep.subr.bf16.mxu1 %v7376_v61  ;;  %v7394_v34 = vld [vmem:[#allocation14 + $0x46c] ss:$16 sps:$4 sm:$0xff]   ;;  %v7452_v62 = vld [vmem:[#allocation14 + $0x528] ss:$16 sps:$4 sm:$0xff]  }
 0x4c2   :  { %5237 = vmatpush1.bf16.msra.mxu0 %v7371_v3  ;;  %5278 = vmatpush1.bf16.msra.mxu1 %v7374_v63  ;;  %v7457_v3 = vld [vmem:[#allocation14 + $0x30c] ss:$16 sps:$4 sm:$0xff]  }
 0x4c3   :  { %5238 = vmatprep.subr.bf16.mxu0 %v7379_v4  ;;  %5279 = vmatprep.subr.bf16.mxu1 %v7382_v5  ;;  %v7460_v63 = vld [vmem:[#allocation14 + $0x50c] ss:$16 sps:$4 sm:$0xff]  }
 0x4c4   :  { %v8159_v4 = vld [vmem:[%s8209_s10] sm:$0xf] }
 0x4c6   :  { %5239 = vmatpush1.bf16.msra.mxu0 %v7377_v1  ;;  %5280 = vmatpush1.bf16.msra.mxu1 %v7380_v6  ;;  %v7455_v1 = vld [vmem:[#allocation14 + $0x308] ss:$16 sps:$4 sm:$0xff]  }
 0x4c7   :  { %5240 = vmatprep.subr.bf16.mxu0 %v7385_v10  ;;  %5281 = vmatprep.subr.bf16.mxu1 %v7388_v7  ;;  %v7458_v6 = vld [vmem:[#allocation14 + $0x508] ss:$16 sps:$4 sm:$0xff]   ;;  %v7463_v7 = vld [vmem:[#allocation14 + $0x6ec] ss:$16 sps:$4 sm:$0xff]  }
 0x4ca   :  { %5241 = vmatpush1.bf16.msra.mxu0 %v7383_v8  ;;  %5282 = vmatpush1.bf16.msra.mxu1 %v7386_v9  ;;  %v7511_v8 = vld [vmem:[#allocation16 + $0x74] ss:$8 sps:$4 sm:$0xff]   ;;  %v3732_v9 = vrot.slane %v8159_v4, %v8058_v14 }
 0x4cb   :  { %5242 = vmatprep.subr.bf16.mxu0 %v7391_v60  ;;  %5283 = vmatprep.subr.bf16.mxu1 %v7394_v34  ;;  %v3736_v60 = vrot.slane %v8159_v4, %v8061_v16  ;;  %v7461_v34 = vld [vmem:[#allocation14 + $0x6e8] ss:$16 sps:$4 sm:$0xff]  }
 0x4ce   :  { %5243 = vmatpush1.bf16.msra.mxu0 %v7389_v11  ;;  %5284 = vmatpush1.bf16.msra.mxu1 %v7392_v15  ;;  %v7466_v11 = vld [vmem:[#allocation14 + $0x6cc] ss:$16 sps:$4 sm:$0xff]   ;;  %v7509_v15 = vld [vmem:[#allocation16 + $0x70] ss:$8 sps:$4 sm:$0xff]  }
 0x4cf   :  { %5244 = vmatprep.subr.bf16.mxu0 %v7397_v12  ;;  %5285 = vmatprep.subr.bf16.mxu1 %v7400_v17  ;;  %v7514_v17 = vld [vmem:[#allocation16 + $0x64] ss:$8 sps:$4 sm:$0xff]  }
 0x4d2   :  { %5245 = vmatpush1.bf16.msra.mxu0 %v7395_v18  ;;  %5286 = vmatpush1.bf16.msra.mxu1 %v7398_v19 }
 0x4d3   :  { %5246 = vmatprep.subr.bf16.mxu0 %v7403_v20  ;;  %5287 = vmatprep.subr.bf16.mxu1 %v7406_v21  ;;  %v7464_v21 = vld [vmem:[#allocation14 + $0x6c8] ss:$16 sps:$4 sm:$0xff]  }
 0x4d6   :  { %5247 = vmatpush1.bf16.msra.mxu0 %v7401_v22  ;;  %5288 = vmatpush1.bf16.msra.mxu1 %v7404_v23  ;;  %v7469_v23 = vld [vmem:[#allocation14 + $0x6ac] ss:$16 sps:$4 sm:$0xff]  }
 0x4d7   :  { %5248 = vmatprep.subr.bf16.mxu0 %v7409_v0  ;;  %5289 = vmatprep.subr.bf16.mxu1 %v7412_v24  ;;  %v7512_v0 = vld [vmem:[#allocation16 + $0x60] ss:$8 sps:$4 sm:$0xff]  }
 0x4da   :  { %5249 = vmatpush1.bf16.msra.mxu0 %v7407_v25  ;;  %5290 = vmatpush1.bf16.msra.mxu1 %v7410_v26  ;;  %v7517_v25 = vld [vmem:[#allocation16 + $0x54] ss:$8 sps:$4 sm:$0xff]  }
 0x4db   :  { %5250 = vmatprep.subr.bf16.mxu0 %v7415_v27  ;;  %5291 = vmatprep.subr.bf16.mxu1 %v7418_v28  ;;  %v7472_v27 = vld [vmem:[#allocation14 + $0x68c] ss:$16 sps:$4 sm:$0xff]   ;;  %v7515_v28 = vld [vmem:[#allocation16 + $0x50] ss:$8 sps:$4 sm:$0xff]  }
 0x4de   :  { %5251 = vmatpush2.bf16.msra.mxu0 %v7413_v29  ;;  %5292 = vmatpush2.bf16.msra.mxu1 %v7416_v30  ;;  %v7470_v29 = vld [vmem:[#allocation14 + $0x688] ss:$16 sps:$4 sm:$0xff]   ;;  %v7475_v30 = vld [vmem:[#allocation14 + $0x66c] ss:$16 sps:$4 sm:$0xff]  }
 0x4df   :  { %5252 = vmatprep.subr.bf16.mxu0 %v7421_v31  ;;  %5293 = vmatprep.subr.bf16.mxu1 %v7424_v32  ;;  %v7518_v31 = vld [vmem:[#allocation16 + $0x40] ss:$8 sps:$4 sm:$0xff]   ;;  %v7523_v32 = vld [vmem:[#allocation16 + $0x34] ss:$8 sps:$4 sm:$0xff]  }
 0x4e2   :  { %5253 = vmatpush2.bf16.msra.mxu0 %v7419_v33  ;;  %5294 = vmatpush2.bf16.msra.mxu1 %v7422_v36  ;;  %v7473_v33 = vld [vmem:[#allocation14 + $0x668] ss:$16 sps:$4 sm:$0xff]   ;;  %v7478_v36 = vld [vmem:[#allocation14 + $0x64c] ss:$16 sps:$4 sm:$0xff]  }
 0x4e3   :  { %5254 = vmatprep.subr.bf16.mxu0 %v7427_v38  ;;  %5295 = vmatprep.subr.bf16.mxu1 %v7430_v40  ;;  %v7521_v38 = vld [vmem:[#allocation16 + $0x30] ss:$8 sps:$4 sm:$0xff]   ;;  %v7526_v40 = vld [vmem:[#allocation16 + $0x24] ss:$8 sps:$4 sm:$0xff]  }
 0x4e6   :  { %5255 = vmatpush2.bf16.msra.mxu0 %v7425_v41  ;;  %5296 = vmatpush2.bf16.msra.mxu1 %v7428_v42  ;;  %v7476_v41 = vld [vmem:[#allocation14 + $0x648] ss:$16 sps:$4 sm:$0xff]   ;;  %v7481_v42 = vld [vmem:[#allocation14 + $0x62c] ss:$16 sps:$4 sm:$0xff]  }
 0x4e7   :  { %5256 = vmatprep.subr.bf16.mxu0 %v7433_v43  ;;  %5297 = vmatprep.subr.bf16.mxu1 %v7436_v44  ;;  %v7524_v43 = vld [vmem:[#allocation16 + $0x20] ss:$8 sps:$4 sm:$0xff]   ;;  %v7529_v44 = vld [vmem:[#allocation16 + $0x14] ss:$8 sps:$4 sm:$0xff]  }
 0x4ea   :  { %5257 = vmatpush2.bf16.msra.mxu0 %v7431_v45  ;;  %5298 = vmatpush2.bf16.msra.mxu1 %v7434_v47  ;;  %v7479_v45 = vld [vmem:[#allocation14 + $0x628] ss:$16 sps:$4 sm:$0xff]   ;;  %v7484_v47 = vld [vmem:[#allocation14 + $0x60c] ss:$16 sps:$4 sm:$0xff]  }
 0x4eb   :  { %5258 = vmatprep.subr.bf16.mxu0 %v7439_v48  ;;  %5299 = vmatprep.subr.bf16.mxu1 %v7442_v13  ;;  %v7527_v48 = vld [vmem:[#allocation16 + $0x10] ss:$8 sps:$4 sm:$0xff]   ;;  %v7532_v13 = vld [vmem:[#allocation16 + $0x4] ss:$8 sps:$4 sm:$0xff]  }
 0x4ee   :  { %5259 = vmatpush2.bf16.msra.mxu0 %v7437_v49  ;;  %5300 = vmatpush2.bf16.msra.mxu1 %v7440_v50  ;;  %v7482_v49 = vld [vmem:[#allocation14 + $0x608] ss:$16 sps:$4 sm:$0xff]   ;;  %v7487_v50 = vld [vmem:[#allocation14 + $0x7ec] ss:$16 sps:$4 sm:$0xff]  }
 0x4ef   :  { %5260 = vmatprep.subr.bf16.mxu0 %v7445_v51  ;;  %5301 = vmatprep.subr.bf16.mxu1 %v7448_v52  ;;  %v7530_v51 = vld [vmem:[#allocation16] ss:$8 sps:$4 sm:$0xff]   ;;  %v7535_v52 = vld [vmem:[#allocation16 + $0xf4] ss:$8 sps:$4 sm:$0xff]  }
 0x4f1   :  { %v5063_v57 = vpop.f32.mrf.mxu1 }
 0x4f2   :  { %5261 = vmatpush2.bf16.msra.mxu0 %v7443_v53  ;;  %5302 = vmatpush2.bf16.msra.mxu1 %v7446_v46  ;;  %v5064_v12 = vadd.f32 %v5063_v57, %v3732_v9  ;;  %v7485_v53 = vld [vmem:[#allocation14 + $0x7e8] ss:$16 sps:$4 sm:$0xff]   ;;  %v7490_v46 = vld [vmem:[#allocation14 + $0x7cc] ss:$16 sps:$4 sm:$0xff]  }
 0x4f3   :  { %v5065_v61 = vpop.f32.mrf.mxu1  ;;  %5262 = vmatprep.subr.bf16.mxu0 %v7451_v54  ;;  %5303 = vmatprep.subr.bf16.mxu1 %v7454_v55  ;;  %v7533_v54 = vld [vmem:[#allocation16 + $0xf0] ss:$8 sps:$4 sm:$0xff]   ;;  %v7538_v55 = vld [vmem:[#allocation16 + $0xe4] ss:$8 sps:$4 sm:$0xff]  }
 0x4f4   :  { %v5066_v19 = vadd.f32 %v5065_v61, %v3736_v60  ;;  %v7488_v57 = vld [vmem:[#allocation14 + $0x7c8] ss:$16 sps:$4 sm:$0xff]   ;;  %v7541_v61 = vld [vmem:[#allocation16 + $0xd4] ss:$8 sps:$4 sm:$0xff]  }
 0x4f5   :  { %v5067_v5 = vpop.f32.mrf.mxu1  ;;  %v7497_v9 = vld [vmem:[#allocation14 + $0x768] ss:$16 sps:$4 sm:$0xff]   ;;  %v7502_v60 = vld [vmem:[#allocation14 + $0x74c] ss:$16 sps:$4 sm:$0xff]  }
 0x4f6   :  { %5263 = vmatpush2.bf16.msra.mxu0 %v7449_v58  ;;  %5304 = vmatpush2.bf16.msra.mxu1 %v7452_v62  ;;  %v7493_v58 = vld [vmem:[#allocation14 + $0x7ac] ss:$16 sps:$4 sm:$0xff]   ;;  %v7536_v62 = vld [vmem:[#allocation16 + $0xe0] ss:$8 sps:$4 sm:$0xff]   ;;  %v7539_v5 = vld [vmem:[#allocation16 + $0xd0] ss:$8 sps:$4 sm:$0xff]  }
 0x4f7   :  { %v5068_v10 = vpop.f32.mrf.mxu1  ;;  %5264 = vmatprep.subr.bf16.mxu0 %v7457_v3  ;;  %5305 = vmatprep.subr.bf16.mxu1 %v7460_v63  ;;  %v7491_v3 = vld [vmem:[#allocation14 + $0x7a8] ss:$16 sps:$4 sm:$0xff]   ;;  %v7496_v63 = vld [vmem:[#allocation14 + $0x78c] ss:$16 sps:$4 sm:$0xff]  }
 0x4f8   :  { %v7499_v10 = vld [vmem:[#allocation14 + $0x76c] ss:$16 sps:$4 sm:$0xff]  }
 0x4fa   :  { %5265 = vmatpush2.bf16.msra.mxu0 %v7455_v1  ;;  %5306 = vmatpush2.bf16.msra.mxu1 %v7458_v6  ;;  %v7544_v1 = vld [vmem:[#allocation16 + $0xc4] ss:$8 sps:$4 sm:$0xff]   ;;  %v7494_v6 = vld [vmem:[#allocation14 + $0x788] ss:$16 sps:$4 sm:$0xff]  }
 0x4fb   :  { %5316 = vmatprep.subr.bf16.mxu0 %v7463_v7  ;;  %5761 = vmatprep.subr.bf16.mxu1 %v7511_v8  ;;  %v7542_v7 = vld [vmem:[#allocation16 + $0xc0] ss:$8 sps:$4 sm:$0xff]   ;;  %v7547_v8 = vld [vmem:[#allocation16 + $0xb4] ss:$8 sps:$4 sm:$0xff]  }
 0x4fd   :  { %5267 = vmatmul.mubr.bf16.vlgmr.msra.gmra.mxu0 %v8128_v39  ;;  %5308 = vmatmul.mubr.bf16.vlgmr.msra.gmra.mxu1 %v8138_v2  ;;  %v5104_v18 = vpop.f32.mrf.mxu0  ;;  %v7467_v2 = vld [vmem:[#allocation14 + $0x6a8] ss:$16 sps:$4 sm:$0xff]  }
 0x4fe   :  { %v8167_v20 = vadd.f32 %v5104_v18, %v5064_v12  ;;  %5317 = vmatpush1.bf16.msra.mxu0 %v7461_v34  ;;  %5348 = vmatprep.mubr.bf16.mxu0 %v8147_v56  ;;  %v7520_v56 = vld [vmem:[#allocation16 + $0x44] ss:$8 sps:$4 sm:$0xff]   ;;  %v7545_v34 = vld [vmem:[#allocation16 + $0xb0] ss:$8 sps:$4 sm:$0xff]   ;;  %v7553_v18 = vld [vmem:[#allocation16 + $0x94] ss:$8 sps:$4 sm:$0xff]  }
 0x4ff   :  { %v5106_v22 = vpop.f32.mrf.mxu0  ;;  %5318 = vmatprep.subr.bf16.mxu0 %v7466_v11  ;;  %5762 = vmatpush1.bf16.msra.mxu1 %v7509_v15  ;;  %v7550_v11 = vld [vmem:[#allocation16 + $0xa4] ss:$8 sps:$4 sm:$0xff]   ;;  %v7500_v15 = vld [vmem:[#allocation14 + $0x748] ss:$16 sps:$4 sm:$0xff]  }
 0x500   :  { %v8170_v24 = vadd.f32 %v5106_v22, %v5066_v19  ;;  %5763 = vmatprep.subr.bf16.mxu1 %v7514_v17  ;;  %v7505_v12 = vld [vmem:[#allocation14 + $0x72c] ss:$16 sps:$4 sm:$0xff]   ;;  %v7548_v17 = vld [vmem:[#allocation16 + $0xa0] ss:$8 sps:$4 sm:$0xff]   ;;  %v7551_v22 = vld [vmem:[#allocation16 + $0x90] ss:$8 sps:$4 sm:$0xff]  }
 0x501   :  { %v5108_v39 = vpop.f32.mrf.mxu0  ;;  %v7503_v19 = vld [vmem:[#allocation14 + $0x728] ss:$16 sps:$4 sm:$0xff]  }
 0x502   :  { %5319 = vmatpush1.bf16.msra.mxu0 %v7464_v21  ;;  %v7508_v21 = vld [vmem:[#allocation14 + $0x70c] ss:$16 sps:$4 sm:$0xff]  }
 0x503   :  { %v5109_v26 = vpop.f32.mrf.mxu0  ;;  %5320 = vmatprep.subr.bf16.mxu0 %v7469_v23  ;;  %5764 = vmatpush1.bf16.msra.mxu1 %v7512_v0  ;;  %v7556_v23 = vld [vmem:[#allocation16 + $0x84] ss:$8 sps:$4 sm:$0xff]   ;;  %v7506_v0 = vld [vmem:[#allocation14 + $0x708] ss:$16 sps:$4 sm:$0xff]  }
 0x504   :  { %5765 = vmatprep.subr.bf16.mxu1 %v7517_v25  ;;  %v7554_v25 = vld [vmem:[#allocation16 + $0x80] ss:$8 sps:$4 sm:$0xff]  }
 0x506   :  { %5321 = vmatpush1.bf16.msra.mxu0 %v7467_v2 }
 0x507   :  { %5322 = vmatprep.subr.bf16.mxu0 %v7472_v27  ;;  %5766 = vmatpush1.bf16.msra.mxu1 %v7515_v28 }
 0x508   :  { %5767 = vmatprep.subr.bf16.mxu1 %v7520_v56  ;;  %v7557_v56 = vld [vmem:[#allocation16 + $0x170] ss:$8 sps:$4 sm:$0xff]  }
 0x50a   :  { %5323 = vmatpush1.bf16.msra.mxu0 %v7470_v29  ;;  %v7559_v29 = vld [vmem:[#allocation16 + $0x174] ss:$8 sps:$4 sm:$0xff]  }
 0x50b   :  { %5324 = vmatprep.subr.bf16.mxu0 %v7475_v30  ;;  %5768 = vmatpush1.bf16.msra.mxu1 %v7518_v31  ;;  %v7562_v30 = vld [vmem:[#allocation16 + $0x164] ss:$8 sps:$4 sm:$0xff]   ;;  %v7560_v31 = vld [vmem:[#allocation16 + $0x160] ss:$8 sps:$4 sm:$0xff]  }
 0x50c   :  { %5769 = vmatprep.subr.bf16.mxu1 %v7523_v32  ;;  %v7565_v32 = vld [vmem:[#allocation16 + $0x154] ss:$8 sps:$4 sm:$0xff]  }
 0x50e   :  { %5325 = vmatpush1.bf16.msra.mxu0 %v7473_v33  ;;  %v7563_v33 = vld [vmem:[#allocation16 + $0x150] ss:$8 sps:$4 sm:$0xff]  }
 0x50f   :  { %5326 = vmatprep.subr.bf16.mxu0 %v7478_v36  ;;  %5770 = vmatpush1.bf16.msra.mxu1 %v7521_v38  ;;  %v7568_v36 = vld [vmem:[#allocation16 + $0x144] ss:$8 sps:$4 sm:$0xff]   ;;  %v7569_v38 = vld [vmem:[#allocation16 + $0x130] ss:$8 sps:$4 sm:$0xff]  }
 0x510   :  { %5771 = vmatprep.subr.bf16.mxu1 %v7526_v40  ;;  %v7574_v40 = vld [vmem:[#allocation16 + $0x124] ss:$8 sps:$4 sm:$0xff]  }
 0x512   :  { %5327 = vmatpush1.bf16.msra.mxu0 %v7476_v41  ;;  %v7572_v41 = vld [vmem:[#allocation16 + $0x120] ss:$8 sps:$4 sm:$0xff]  }
 0x513   :  { %5328 = vmatprep.subr.bf16.mxu0 %v7481_v42  ;;  %5772 = vmatpush1.bf16.msra.mxu1 %v7524_v43  ;;  %v7577_v42 = vld [vmem:[#allocation16 + $0x114] ss:$8 sps:$4 sm:$0xff]   ;;  %v7575_v43 = vld [vmem:[#allocation16 + $0x110] ss:$8 sps:$4 sm:$0xff]  }
 0x514   :  { %5773 = vmatprep.subr.bf16.mxu1 %v7529_v44  ;;  %v7580_v44 = vld [vmem:[#allocation16 + $0x104] ss:$8 sps:$4 sm:$0xff]  }
 0x516   :  { %5329 = vmatpush1.bf16.msra.mxu0 %v7479_v45  ;;  %v7578_v45 = vld [vmem:[#allocation16 + $0x100] ss:$8 sps:$4 sm:$0xff]  }
 0x517   :  { %5330 = vmatprep.subr.bf16.mxu0 %v7484_v47  ;;  %5774 = vmatpush1.bf16.msra.mxu1 %v7527_v48  ;;  %v7583_v47 = vld [vmem:[#allocation16 + $0x1f4] ss:$8 sps:$4 sm:$0xff]   ;;  %v7581_v48 = vld [vmem:[#allocation16 + $0x1f0] ss:$8 sps:$4 sm:$0xff]  }
 0x518   :  { %5775 = vmatprep.subr.bf16.mxu1 %v7532_v13  ;;  %v7586_v13 = vld [vmem:[#allocation16 + $0x1e4] ss:$8 sps:$4 sm:$0xff]  }
 0x51a   :  { %5331 = vmatpush1.bf16.msra.mxu0 %v7482_v49  ;;  %v7584_v49 = vld [vmem:[#allocation16 + $0x1e0] ss:$8 sps:$4 sm:$0xff]  }
 0x51b   :  { %5332 = vmatprep.subr.bf16.mxu0 %v7487_v50  ;;  %5776 = vmatpush1.bf16.msra.mxu1 %v7530_v51  ;;  %v7589_v50 = vld [vmem:[#allocation16 + $0x1d4] ss:$8 sps:$4 sm:$0xff]   ;;  %v7587_v51 = vld [vmem:[#allocation16 + $0x1d0] ss:$8 sps:$4 sm:$0xff]  }
 0x51c   :  { %5777 = vmatprep.subr.bf16.mxu1 %v7535_v52  ;;  %v7592_v52 = vld [vmem:[#allocation16 + $0x1c4] ss:$8 sps:$4 sm:$0xff]  }
 0x51e   :  { %5333 = vmatpush2.bf16.msra.mxu0 %v7485_v53  ;;  %v7590_v53 = vld [vmem:[#allocation16 + $0x1c0] ss:$8 sps:$4 sm:$0xff]  }
 0x51f   :  { %5334 = vmatprep.subr.bf16.mxu0 %v7490_v46  ;;  %5778 = vmatpush2.bf16.msra.mxu1 %v7533_v54  ;;  %v7595_v46 = vld [vmem:[#allocation16 + $0x1b4] ss:$8 sps:$4 sm:$0xff]   ;;  %v7593_v54 = vld [vmem:[#allocation16 + $0x1b0] ss:$8 sps:$4 sm:$0xff]  }
 0x520   :  { %5779 = vmatprep.subr.bf16.mxu1 %v7538_v55  ;;  %v7598_v55 = vld [vmem:[#allocation16 + $0x1a4] ss:$8 sps:$4 sm:$0xff]  }
 0x522   :  { %5335 = vmatpush2.bf16.msra.mxu0 %v7488_v57  ;;  %v7596_v57 = vld [vmem:[#allocation16 + $0x1a0] ss:$8 sps:$4 sm:$0xff]  }
 0x523   :  { %5336 = vmatprep.subr.bf16.mxu0 %v7493_v58  ;;  %5780 = vmatpush2.bf16.msra.mxu1 %v7536_v62 }
 0x524   :  { %5781 = vmatprep.subr.bf16.mxu1 %v7541_v61 }
 0x526   :  { %5337 = vmatpush2.bf16.msra.mxu0 %v7491_v3 }
 0x527   :  { %5338 = vmatprep.subr.bf16.mxu0 %v7496_v63  ;;  %5782 = vmatpush2.bf16.msra.mxu1 %v7539_v5  ;;  %v7601_v63 = vld [vmem:[#allocation16 + $0x194] ss:$8 sps:$4 sm:$0xff]  }
 0x528   :  { %5783 = vmatprep.subr.bf16.mxu1 %v7544_v1 }
 0x52a   :  { %5339 = vmatpush2.bf16.msra.mxu0 %v7494_v6  ;;  %v7599_v6 = vld [vmem:[#allocation16 + $0x190] ss:$8 sps:$4 sm:$0xff]  }
 0x52b   :  { %5340 = vmatprep.subr.bf16.mxu0 %v7499_v10  ;;  %5784 = vmatpush2.bf16.msra.mxu1 %v7542_v7 }
 0x52c   :  { %5785 = vmatprep.subr.bf16.mxu1 %v7547_v8 }
 0x52e   :  { %5341 = vmatpush2.bf16.msra.mxu0 %v7497_v9 }
 0x52f   :  { %5342 = vmatprep.subr.bf16.mxu0 %v7502_v60  ;;  %5786 = vmatpush2.bf16.msra.mxu1 %v7545_v34  ;;  %v7604_v34 = vld [vmem:[#allocation16 + $0x184] ss:$8 sps:$4 sm:$0xff]  }
 0x530   :  { %5787 = vmatprep.subr.bf16.mxu1 %v7550_v11 }
 0x532   :  { %5343 = vmatpush2.bf16.msra.mxu0 %v7500_v15 }
 0x533   :  { %5344 = vmatprep.subr.bf16.mxu0 %v7505_v12  ;;  %5788 = vmatpush2.bf16.msra.mxu1 %v7548_v17  ;;  %v7602_v12 = vld [vmem:[#allocation16 + $0x180] ss:$8 sps:$4 sm:$0xff]  }
 0x534   :  { %5789 = vmatprep.subr.bf16.mxu1 %v7553_v18  ;;  %v3740_v18 = vrot.slane %v8159_v4, %v8066_v35  ;;  %v7610_v35 = vld [vmem:[#allocation17 + $0x28] sm:$0xff]  }
 0x536   :  { %5345 = vmatpush2.bf16.msra.mxu0 %v7503_v19 }
 0x537   :  { %5346 = vmatprep.subr.bf16.mxu0 %v7508_v21  ;;  %5790 = vmatpush2.bf16.msra.mxu1 %v7551_v22 }
 0x538   :  { %5791 = vmatprep.subr.bf16.mxu1 %v7556_v23 }
 0x53a   :  { %5347 = vmatpush2.bf16.msra.mxu0 %v7506_v0 }
 0x53b   :  { %5792 = vmatpush2.bf16.msra.mxu1 %v7554_v25  ;;  %5802 = vmatprep.subr.bf16.mxu0 %v7559_v29  ;;  %v7606_v29 = vld [vmem:[#allocation17 + $0x38] sm:$0xff]  }
 0x53d   :  { %5349 = vmatmul.mubr.bf16.vlgmr.msra.gmra.mxu0 %v8149_v59  ;;  %v5145_v39 = vpop.f32.mrf.mxu1  ;;  %v7566_v59 = vld [vmem:[#allocation16 + $0x140] ss:$8 sps:$4 sm:$0xff]  }
 0x53e   :  { %v8174_v2 = vadd.f32 %v5145_v39, %v8167_v20  ;;  %5803 = vmatpush1.bf16.msra.mxu0 %v7557_v56  ;;  %v7571_v20 = vld [vmem:[#allocation16 + $0x134] ss:$8 sps:$4 sm:$0xff]  }
 0x53f   :  { %v5147_v26 = vpop.f32.mrf.mxu1  ;;  %5804 = vmatprep.subr.bf16.mxu0 %v7562_v30  ;;  %v7605_v56 = vld [vmem:[#allocation17 + $0x78] sm:$0xff]   ;;  %v7607_v30 = vld [vmem:[#allocation17 + $0x70] sm:$0xff]  }
 0x540   :  { %v5148_v61 = vadd.f32 %v5147_v26, %v8170_v24  ;;  %6897 = vmatprep.subr.bf16.mxu1 %v7605_v56 }
 0x541   :  { %v5149_v27 = vpop.f32.mrf.mxu1 }
 0x542   :  { %5805 = vmatpush1.bf16.msra.mxu0 %v7560_v31  ;;  %v7608_v31 = vld [vmem:[#allocation17 + $0x30] sm:$0xff]  }
 0x543   :  { %v5150_v28 = vpop.f32.mrf.mxu1  ;;  %5806 = vmatprep.subr.bf16.mxu0 %v7565_v32  ;;  %v7609_v32 = vld [vmem:[#allocation17 + $0x68] sm:$0xff]  }
 0x546   :  { %5807 = vmatpush1.bf16.msra.mxu0 %v7563_v33  ;;  %v7611_v33 = vld [vmem:[#allocation17 + $0x60] sm:$0xff]  }
 0x547   :  { %5808 = vmatprep.subr.bf16.mxu0 %v7568_v36  ;;  %v7612_v36 = vld [vmem:[#allocation17 + $0x20] sm:$0xff]  }
 0x54a   :  { %5809 = vmatpush1.bf16.msra.mxu0 %v7566_v59  ;;  %v7613_v59 = vld [vmem:[#allocation17 + $0x58] sm:$0xff]  }
 0x54b   :  { %5810 = vmatprep.subr.bf16.mxu0 %v7571_v20  ;;  %v7614_v20 = vld [vmem:[#allocation17 + $0x18] sm:$0xff]  }
 0x54e   :  { %5811 = vmatpush1.bf16.msra.mxu0 %v7569_v38  ;;  %v7615_v38 = vld [vmem:[#allocation17 + $0x50] sm:$0xff]  }
 0x54f   :  { %5812 = vmatprep.subr.bf16.mxu0 %v7574_v40  ;;  %v7616_v40 = vld [vmem:[#allocation17 + $0x10] sm:$0xff]  }
 0x552   :  { %5813 = vmatpush1.bf16.msra.mxu0 %v7572_v41  ;;  %v3744_v41 = vrot.slane %v8159_v4, %v8072_v37  ;;  %v7619_v4 = vld [vmem:[#allocation17 + $0x40] sm:$0xff]  }
 0x553   :  { %5814 = vmatprep.subr.bf16.mxu0 %v7577_v42 }
 0x556   :  { %5815 = vmatpush1.bf16.msra.mxu0 %v7575_v43 }
 0x557   :  { %5816 = vmatprep.subr.bf16.mxu0 %v7580_v44 }
 0x55a   :  { %5817 = vmatpush1.bf16.msra.mxu0 %v7578_v45 }
 0x55b   :  { %5818 = vmatprep.subr.bf16.mxu0 %v7583_v47 }
 0x55e   :  { %5819 = vmatpush2.bf16.msra.mxu0 %v7581_v48 }
 0x55f   :  { %5820 = vmatprep.subr.bf16.mxu0 %v7586_v13 }
 0x562   :  { %5821 = vmatpush2.bf16.msra.mxu0 %v7584_v49 }
 0x563   :  { %5822 = vmatprep.subr.bf16.mxu0 %v7589_v50 }
 0x566   :  { %5823 = vmatpush2.bf16.msra.mxu0 %v7587_v51 }
 0x567   :  { %5824 = vmatprep.subr.bf16.mxu0 %v7592_v52 }
 0x56a   :  { %5825 = vmatpush2.bf16.msra.mxu0 %v7590_v53 }
 0x56b   :  { %5826 = vmatprep.subr.bf16.mxu0 %v7595_v46 }
 0x56e   :  { %5827 = vmatpush2.bf16.msra.mxu0 %v7593_v54 }
 0x56f   :  { %5828 = vmatprep.subr.bf16.mxu0 %v7598_v55  ;;  %v7617_v55 = vld [vmem:[#allocation17 + $0x48] sm:$0xff]  }
 0x572   :  { %5829 = vmatpush2.bf16.msra.mxu0 %v7596_v57 }
 0x573   :  { %5830 = vmatprep.subr.bf16.mxu0 %v7601_v63 }
 0x576   :  { %5831 = vmatpush2.bf16.msra.mxu0 %v7599_v6 }
 0x577   :  { %5832 = vmatprep.subr.bf16.mxu0 %v7604_v34 }
 0x57a   :  { %5833 = vmatpush2.bf16.msra.mxu0 %v7602_v12 }
 0x57d   :  { %v5227_v58 = vpop.f32.mrf.mxu1  ;;  %v5186_v62 = vpop.f32.mrf.mxu0 }
 0x57e   :  { %v5187_v3 = vadd.f32 %v5186_v62, %v8174_v2  ;;  %v5228_v19 = vadd.f32 %v5227_v58, %v3740_v18  ;;  %v7618_v58 = vld [vmem:[#allocation17 + $0x8] sm:$0xff]  }
 0x57f   :  { %v5229_v5 = vpop.f32.mrf.mxu1  ;;  %v5188_v1 = vpop.f32.mrf.mxu0 }
 0x580   :  { %v5189_v10 = vadd.f32 %v5188_v1, %v5148_v61  ;;  %v5357_v7 = vmax.f32 %v5187_v3, 0.0  ;;  %v5230_v42 = vadd.f32 %v5229_v5, %v3744_v41  ;;  %v7620_v61 = vld [vmem:[#allocation17] sm:$0xff]   ;;  %v5429_v3 = vld [vmem:[%s8211_s12] sm:$0x3]  ;;  %s6040_s12 = sshll.u32 %s7920_s24, 4  ;;  %s6041_s12 = int_to_ptr.vmem [resolvable:$true] %s6040_s12 }
 0x581   :  { %v5231_v8 = vpop.f32.mrf.mxu1  ;;  %v5190_v9 = vpop.f32.mrf.mxu0  ;;  %v5434_v63 = vrot.slane %v5429_v3, %v8058_v14  ;;  %v5438_v5 = vrot.slane %v5429_v3, %v8061_v16  ;;  %s7825_s5 = scalar_lea.vmem %s6041_s12, 1024  ;;  %p7830_p9 = scmp.lt.s32.totalorder %s6041_s12, %s6041_s12 }
 0x582   :  { %v5358_v60 = vmax.f32 %v5189_v10, 0.0  ;;  %v5361_v24 = vpack.c.bf16 %v5357_v7, %v5357_v7  ;;  %p7826_p8 = scmp.ne.s32.totalorder %s6041_s12, %s7825_s5  ;;  %p7831_p10 = scmp.lt.s32.totalorder %s7825_s5, %s7825_s5 }
 0x583   :  { %v5232_v11 = vpop.f32.mrf.mxu1  ;;  %v5191_v15 = vpop.f32.mrf.mxu0 }
 0x584   :  { %v5362_v17 = vpack.c.bf16 %v5358_v60, %v5358_v60  ;;  %p7832_p11 = por %p7831_p10, %p7830_p9 }
 0x586   :  { %5793 = vmatprep.mubr.bf16.mxu1 %v5362_v17  ;;  %p7833_p12 = pnand %p7832_p11, %p7826_p8 }
 0x587   :  { %5794 = vmatmul.mubr.bf16.vlgmr.msra.gmra.mxu1 %v5361_v24 }
 0x588   :  { %6898 = vmatpush3.bf16.msra.mxu1 %v7606_v29 }
 0x589   :  { %6899 = vmatprep.subr.bf16.mxu1 %v7607_v30 }
 0x58c   :  { %6900 = vmatpush3.bf16.msra.mxu1 %v7608_v31 }
 0x58d   :  { %6901 = vmatprep.subr.bf16.mxu1 %v7609_v32 }
 0x590   :  { %6902 = vmatpush3.bf16.msra.mxu1 %v7610_v35 }
 0x591   :  { %6903 = vmatprep.subr.bf16.mxu1 %v7611_v33 }
 0x594   :  { %6904 = vmatpush3.bf16.msra.mxu1 %v7612_v36 }
 0x595   :  { %6905 = vmatprep.subr.bf16.mxu1 %v7613_v59 }
 0x598   :  { %6906 = vmatpush3.bf16.msra.mxu1 %v7614_v20 }
 0x599   :  { %6907 = vmatprep.subr.bf16.mxu1 %v7615_v38 }
 0x59c   :  { %6908 = vmatpush3.bf16.msra.mxu1 %v7616_v40 }
 0x59d   :  { %6909 = vmatprep.subr.bf16.mxu1 %v7617_v55 }
 0x5a0   :  { %6910 = vmatpush3.bf16.msra.mxu1 %v7618_v58 }
 0x5a1   :  { %6911 = vmatprep.subr.bf16.mxu1 %v7619_v4 }
 0x5a4   :  { %6912 = vmatpush3.bf16.msra.mxu1 %v7620_v61 }
 0x5bd   :  { %v5268_v21 = vpop.f32.mrf.mxu0  ;;  %v5309_v22 = vpop.f32.mrf.mxu1 }
 0x5be   :  { %v5269_v23 = vadd.f32 %v5268_v21, %v5228_v19 }
 0x5bf   :  { %v5270_v0 = vpop.f32.mrf.mxu0  ;;  %v5311_v25 = vpop.f32.mrf.mxu1 }
 0x5c0   :  { %v5310_v39 = vadd.f32 %v5309_v22, %v5269_v23  ;;  %v5271_v43 = vadd.f32 %v5270_v0, %v5230_v42 }
 0x5c1   :  { %v5272_v2 = vpop.f32.mrf.mxu0  ;;  %v5313_v26 = vpop.f32.mrf.mxu1 }
 0x5c2   :  { %v5312_v45 = vadd.f32 %v5311_v25, %v5271_v43 }
 0x5c3   :  { %v5273_v27 = vpop.f32.mrf.mxu0  ;;  %v5314_v28 = vpop.f32.mrf.mxu1 }
 0x5fd   :  { %v5350_v44 = vpop.f32.mrf.mxu0 }
 0x5fe   :  { %v5351_v47 = vadd.f32 %v5350_v44, %v5310_v39 }
 0x5ff   :  { %v5352_v48 = vpop.f32.mrf.mxu0 }
 0x600   :  { %v5353_v13 = vadd.f32 %v5352_v48, %v5312_v45  ;;  %v5359_v49 = vmax.f32 %v5351_v47, 0.0 }
 0x601   :  { %v5354_v50 = vpop.f32.mrf.mxu0 }
 0x602   :  { %v5360_v51 = vmax.f32 %v5353_v13, 0.0  ;;  %v5363_v46 = vpack.c.bf16 %v5359_v49, %v5359_v49 }
 0x603   :  { %v5355_v52 = vpop.f32.mrf.mxu0 }
 0x604   :  { %v5364_v53 = vpack.c.bf16 %v5360_v51, %v5360_v51 }
 0x606   :  { %5834 = vmatprep.mubr.bf16.mxu0 %v5364_v53 }
 0x607   :  { %5835 = vmatmul.mubr.bf16.vlgmr.msra.gmra.mxu0 %v5363_v46 }
 0x647   :  { %v5795_v54 = vpop.f32.mrf.mxu1 }
 0x648   :  { %v5796_v1 = vadd.f32 %v5795_v54, %v5434_v63 }
 0x649   :  { %v5797_v57 = vpop.f32.mrf.mxu1 }
 0x64a   :  { %v5798_v10 = vadd.f32 %v5797_v57, %v5438_v5 }
 0x64b   :  { %v5799_v37 = vpop.f32.mrf.mxu1 }
 0x64d   :  { %v5800_v62 = vpop.f32.mrf.mxu1 }
 0x6c7   :  { %v5836_v6 = vpop.f32.mrf.mxu0 }
 0x6c8   :  { %v5837_v7 = vadd.f32 %v5836_v6, %v5796_v1 }
 0x6c9   :  { %v5838_v8 = vpop.f32.mrf.mxu0 }
 0x6ca   :  { %v5839_v9 = vadd.f32 %v5838_v8, %v5798_v10  ;;  %v5843_v60 = vmax.f32 %v5837_v7, 0.0 }
 0x6cb   :  { %v5840_v34 = vpop.f32.mrf.mxu0 }
 0x6cc   :  { %v5844_v11 = vmax.f32 %v5839_v9, 0.0  ;;  %v5845_v17 = vpack.c.bf16 %v5843_v60, %v5843_v60 }
 0x6cd   :  { %v5841_v15 = vpop.f32.mrf.mxu0 }
 0x6ce   :  { %v5846_v12 = vpack.c.bf16 %v5844_v11, %v5844_v11 }
 0x6d0   :  { %6014 = vmatprep.mubr.bf16.mxu1 %v5846_v12 }
 0x6d1   :  { %6015 = vmatmul.mubr.bf16.vlgmr.msra.gmra.mxu1 %v5845_v17 }
 0x6d2   :  { %7836 = shalt.err (!%p7833_p12)
}
 0x6d3   :  { %6043 = dma.vmem_to_hbm [thread:$0]  %s6041_s12, 1024, %s8215_s16, [#allocation21]  }
 0x6d4   :  { %s7845_s18 = scalar_lea.vmem %s6031_s2, 128  ;;  %p7850_p0 = scmp.lt.s32.totalorder %s6031_s2, %s6031_s2 }
 0x6d5   :  { %p7846_p13 = scmp.ne.s32.totalorder %s6031_s2, %s7845_s18  ;;  %p7851_p1 = scmp.lt.s32.totalorder %s7845_s18, %s7845_s18 }
 0x6d7   :  { %p7852_p2 = por %p7851_p1, %p7850_p0 }
 0x6d9   :  { %p7853_p3 = pnand %p7852_p2, %p7846_p13 }
 0x6db   :  { %7856 = shalt.err (!%p7853_p3)
}
 0x6dc   :  { %6033 = dma.vmem_to_hbm [thread:$0]  %s6031_s2, 128, %s8214_s15, [#allocation4]   ;;  %v6792_v16 = vld [vmem:[%s8213_s14] ss:$0 sm:$0xff] }
 0x6dd   :  { %s7922_s16 = smov [#allocation22]  }
 0x6de   :  { %s6050_s9 = sshll.u32 %s7922_s16, 4  ;;  %s6051_s9 = int_to_ptr.vmem [resolvable:$true] %s6050_s9 }
 0x6df   :  { %s7865_s27 = scalar_lea.vmem %s6051_s9, 128  ;;  %p7870_p5 = scmp.lt.s32.totalorder %s6051_s9, %s6051_s9 }
 0x6e0   :  { %p7866_p4 = scmp.ne.s32.totalorder %s6051_s9, %s7865_s27  ;;  %p7871_p6 = scmp.lt.s32.totalorder %s7865_s27, %s7865_s27 }
 0x6e2   :  { %p7872_p7 = por %p7871_p6, %p7870_p5 }
 0x6e4   :  { %p7873_p8 = pnand %p7872_p7, %p7866_p4 }
 0x791   :  { %v6913_v14 = vpop.f32.mrf.mxu1 }
 0x793   :  { %v6914_v24 = vpop.f32.mrf.mxu1 }
 0x794   :  { %v6915_v18 = vadd.f32 %v6914_v24, %v6913_v14 }
 0x795   :  { %v6916_v19 = vpop.f32.mrf.mxu1 }
 0x796   :  { %v6017_v21 = vadd.f32 %v6915_v18, %v6792_v16 }
 0x797   :  { %v6917_v22 = vpop.f32.mrf.mxu1 }
 0x798   :  { %7623 = vtanh.f32 %v6017_v21 }
 0x7a5   :  { %v7624_v23 = vpop.eup %7623 }
 0x7a6   :  { %6023 = vst [vmem:[#allocation22] sm:$0xff] %v7624_v23 }
 0x7a7   :  { %7876 = shalt.err (!%p7873_p8)
}
 0x7a8   :  { %6053 = dma.vmem_to_hbm [thread:$0]  %s6051_s9, 128, %s8216_s17, [#allocation21]  }
 0x7a9   :  { %7897 = dma.done.wait [#allocation4], 128  }
 0x7aa   :  { %7898 = vsyncadd [#allocation4], 4294967168 }
 0x7ab   :  { %7899 = dma.done.wait [#allocation21], 1152  }
 0x7ac   :  { %7900 = vsyncadd [#allocation21], 4294966144 }
 0x7ad   :  { %6063 = vsyncpa [#allocation3], 1 }
 0x7ae   :  { %6064 = vsyncpa [#allocation6], 1 }
 0x7af   :  { %6065 = vsyncpa [#allocation9], 1 }
 0x7b0   :  { %6066 = vsyncpa [#allocation12], 1 }
 0x7b1   :  { %6067 = vsyncpa [#allocation15], 1 }
 0x7b2   :  { %6068 = vsyncpa [#allocation18], 1 }
 0x7b3   :  { %6069 = vsyncpa [#allocation4], 1 }
 0x7b4   :  { %6070 = vsyncpa [#allocation21], 1 }

</bundles_post_ra>
